<compile_context>
chip_gen: v7x
topology: tpu7x:2x2x1
jax: 0.10.0
libtpu: 0.0.40
codegen_flags: <defaults>
</compile_context>

<pallas_src>
import numpy as np
import jax
import jax.numpy as jnp
from jax import lax
from jax.experimental import pallas as pl
from jax.experimental.pallas import tpu as pltpu


def hybrid_kernel(xcol_ref, cw_ref, cb_ref,
                  wih_ref, whhf_ref, b_ref,
                  w1_ref, b1_ref, w2_ref, b2_ref,
                  out_ref, xg_ref):
    """One batch group (B_tile elements) per grid step; everything VMEM-resident.

    xcol_ref : (1, L*B_tile, KCp) bf16  time-major im2col rows (row = t*B_tile + b)
    cw_ref   : (KCp, C_out)       bf16  conv weight, im2col layout, zero-padded rows
    cb_ref   : (1, C_out)         f32
    wih_ref  : (C_out, 8H)        bf16  [fwd | bwd] input weights, gate cols (i,f,o,g)
    whhf_ref : (H, 4H)            bf16  forward recurrent weights, same gate order
    b_ref    : (1, 8H)            f32   [fwd | bwd] (b_ih + b_hh), same gate order
    w1_ref   : (2H, M) bf16, b1: (1, M) f32, w2: (M, n_cls) bf16, b2: (1, n_cls) f32
    out_ref  : (1, B_tile, n_cls) f32
    xg_ref   : (L*B_tile, 8H)     f32 VMEM scratch holding the input-gate projections
    """
    B_tile = out_ref.shape[1]
    H = whhf_ref.shape[0]
    L = xcol_ref.shape[1] // B_tile

    # ---- Conv1d (same padding) + ReLU: one im2col matmul on the MXU ----
    conv = jnp.dot(xcol_ref[0], cw_ref[...], preferred_element_type=jnp.float32)
    h_x = jnp.maximum(conv + cb_ref[...], 0.0)               # (L*B_tile, C_out) f32

    # ---- fused forward+backward input projections, parked in VMEM scratch ----
    xg_ref[...] = jnp.dot(h_x.astype(jnp.bfloat16), wih_ref[...],
                          preferred_element_type=jnp.float32) + b_ref[...]

    def gates_to_hc(g, c_prev):
        # gate columns are (i, f, o, g): one sigmoid over 3H lanes + one tanh.
        sig = jax.nn.sigmoid(g[:, :3 * H])
        i_g = sig[:, 0 * H:1 * H]
        f_g = sig[:, 1 * H:2 * H]
        o_g = sig[:, 2 * H:3 * H]
        g_g = jnp.tanh(g[:, 3 * H:4 * H])
        c = i_g * g_g if c_prev is None else f_g * c_prev + i_g * g_g
        h = o_g * jnp.tanh(c)
        return h, c

    whhf = whhf_ref[...]                                      # (H, 4H) bf16, ~8 vregs

    # ---- forward LSTM recurrence ----
    # t == 0: zero state, so the h @ W_hh matmul is skipped.
    h0, c0 = gates_to_hc(xg_ref[0:B_tile, 0:4 * H], None)

    def step(t, carry):
        h, c = carry
        row = pl.multiple_of(t * B_tile, B_tile)
        g = xg_ref[pl.ds(row, B_tile), 0:4 * H]               # (B_tile, 4H) f32
        g = g + jnp.dot(h.astype(jnp.bfloat16), whhf,
                        preferred_element_type=jnp.float32)
        return gates_to_hc(g, c)

    h_f, _ = lax.fori_loop(1, L, step, (h0, c0), unroll=True)

    # ---- backward LSTM shortcut ----
    # The head reads lstm_out[:, -1, H:], which for the reverse direction is its
    # FIRST step (zero state, consuming x[L-1]); W_hh_b never contributes.
    # Valid ONLY for a last-timestep readout; any other readout invalidates this.
    gb = xg_ref[(L - 1) * B_tile:L * B_tile, 4 * H:8 * H]
    h_b, _ = gates_to_hc(gb, None)

    # ---- MLP head ----
    feat = jnp.concatenate([h_f, h_b], axis=1).astype(jnp.bfloat16)   # (B_tile, 2H)
    z = jnp.maximum(jnp.dot(feat, w1_ref[...],
                            preferred_element_type=jnp.float32) + b1_ref[...], 0.0)
    out = jnp.dot(z.astype(jnp.bfloat16), w2_ref[...],
                  preferred_element_type=jnp.float32) + b2_ref[...]
    out_ref[0] = out                                          # single (B_tile, n_cls) store


def _tensorcores_per_chip():
    """2 on megacore/v7x-style chips, else 1 (safe default)."""
    try:
        kind = jax.devices()[0].device_kind.lower()
    except Exception:
        return 1
    if any(tag in kind for tag in ("v4", "v5p", "v7")):
        return 2
    return 1


def hybrid_classifier_forward(x, params):
    """x: (B, C_in, L) float32, NCL like PyTorch. Returns (B, num_classes) float32."""
    B, C_in, L = x.shape
    conv_w = params["conv_w"]                       # (C_out, C_in, K)
    C_out, _, K = conv_w.shape
    pad = (K - 1) // 2
    H = params["w_hh_f"].shape[1]
    n_cls = params["mlp_w2"].shape[0]

    # Only split the batch when the split maps to extra TensorCores AND keeps
    # the per-group tile sublane-aligned.  On single-TC v5e/v6e a split would
    # just run the serial recurrence twice.
    G = 2 if (_tensorcores_per_chip() >= 2 and B % 2 == 0 and (B // 2) % 8 == 0) else 1
    B_tile = B // G

    # ---- layout glue: channels-last, pad, im2col, pad contraction, time-major ----
    KC = K * C_in
    KC_pad = -(-KC // 8) * 8                                            # 21 -> 24
    x_blc = jnp.transpose(x, (0, 2, 1))                                 # (B, L, C_in)
    xpad = jnp.pad(x_blc, ((0, 0), (pad, pad), (0, 0)))                 # (B, L+K-1, C_in)
    cols = jnp.stack([xpad[:, k:k + L, :] for k in range(K)], axis=2)   # (B, L, K, C_in)
    x_col = jnp.pad(cols.reshape(B, L, KC), ((0, 0), (0, 0), (0, KC_pad - KC)))
    x_col = (x_col.reshape(G, B_tile, L, KC_pad)
                  .transpose(0, 2, 1, 3)
                  .reshape(G, L * B_tile, KC_pad)
                  .astype(jnp.bfloat16))                                # row = t*B_tile + b

    cw = jnp.transpose(conv_w, (2, 1, 0)).reshape(KC, C_out)            # im2col columns
    cw = jnp.pad(cw, ((0, KC_pad - KC), (0, 0))).astype(jnp.bfloat16)
    cb = params["conv_b"].reshape(1, C_out).astype(jnp.float32)

    # Gate columns: PyTorch (i, f, g, o) -> kernel (i, f, o, g) so each step runs
    # one sigmoid over [0:3H] and one tanh over [3H:4H].
    perm = np.concatenate([np.arange(0, 2 * H),
                           np.arange(3 * H, 4 * H),
                           np.arange(2 * H, 3 * H)])

    def prep_dir(w_ih, w_hh, b_ih, b_hh):
        return (w_ih.T[:, perm].astype(jnp.bfloat16),
                w_hh.T[:, perm].astype(jnp.bfloat16),
                (b_ih + b_hh)[perm].reshape(1, 4 * H).astype(jnp.float32))

    wihf, whhf, bf = prep_dir(params["w_ih_f"], params["w_hh_f"],
                              params["b_ih_f"], params["b_hh_f"])
    wihb, _whhb_unused, bb = prep_dir(params["w_ih_b"], params["w_hh_b"],
                                      params["b_ih_b"], params["b_hh_b"])
    wih = jnp.concatenate([wihf, wihb], axis=1)                         # (C_out, 8H)
    b_all = jnp.concatenate([bf, bb], axis=1)                           # (1, 8H)

    w1 = params["mlp_w1"].T.astype(jnp.bfloat16)                        # (2H, M)
    b1 = params["mlp_b1"].reshape(1, -1).astype(jnp.float32)
    w2 = params["mlp_w2"].T.astype(jnp.bfloat16)                        # (M, n_cls)
    b2 = params["mlp_b2"].reshape(1, -1).astype(jnp.float32)

    def full_spec(arr):
        nd = arr.ndim
        return pl.BlockSpec(arr.shape, lambda g, _nd=nd: (0,) * _nd)

    in_arrays = [x_col, cw, cb, wih, whhf, b_all, w1, b1, w2, b2]
    in_specs = ([pl.BlockSpec((1, L * B_tile, KC_pad), lambda g: (g, 0, 0))]
                + [full_spec(a) for a in in_arrays[1:]])

    out = pl.pallas_call(
        hybrid_kernel,
        out_shape=jax.ShapeDtypeStruct((G, B_tile, n_cls), jnp.float32),
        grid=(G,),
        in_specs=in_specs,
        out_specs=pl.BlockSpec((1, B_tile, n_cls), lambda g: (g, 0, 0)),
        scratch_shapes=[pltpu.VMEM((L * B_tile, 8 * H), jnp.float32)],
        # On multi-TC chips the G=2 "parallel" axis is sharded across cores; on
        # single-TC chips G == 1 so it is a no-op.
        compiler_params=pltpu.CompilerParams(
            dimension_semantics=("parallel",)),
    )(*in_arrays)
    return out.reshape(B, n_cls)


def reference_forward(x, params):
    """Pure-JAX f32 reference mirroring the PyTorch module (full bidirectional pass)."""
    B, C_in, L = x.shape
    conv_w, conv_b = params["conv_w"], params["conv_b"]
    K = conv_w.shape[2]
    pad = (K - 1) // 2
    H = params["w_hh_f"].shape[1]

    x_blc = jnp.transpose(x, (0, 2, 1))
    xpad = jnp.pad(x_blc, ((0, 0), (pad, pad), (0, 0)))
    cw = jnp.transpose(conv_w, (2, 1, 0))
    conv = sum(jnp.einsum("blc,co->blo", xpad[:, k:k + L, :], cw[k]) for k in range(K))
    h_x = jnp.maximum(conv + conv_b[None, None, :], 0.0)  # (B, L, C_out)

    def lstm_dir(hx, wih, whh, bih, bhh, reverse):
        seq = hx[:, ::-1, :] if reverse else hx
        h = jnp.zeros((B, H)); c = jnp.zeros((B, H))
        outs = []
        for t in range(L):
            g = seq[:, t, :] @ wih.T + h @ whh.T + bih + bhh
            i = jax.nn.sigmoid(g[:, :H])
            f = jax.nn.sigmoid(g[:, H:2 * H])
            gg = jnp.tanh(g[:, 2 * H:3 * H])
            o = jax.nn.sigmoid(g[:, 3 * H:])
            c = f * c + i * gg
            h = o * jnp.tanh(c)
            outs.append(h)
        out = jnp.stack(outs, axis=1)
        return out[:, ::-1, :] if reverse else out

    out_f = lstm_dir(h_x, params["w_ih_f"], params["w_hh_f"],
                     params["b_ih_f"], params["b_hh_f"], False)
    out_b = lstm_dir(h_x, params["w_ih_b"], params["w_hh_b"],
                     params["b_ih_b"], params["b_hh_b"], True)
    last = jnp.concatenate([out_f[:, -1, :], out_b[:, -1, :]], axis=-1)
    z = jnp.maximum(last @ params["mlp_w1"].T + params["mlp_b1"], 0.0)
    return z @ params["mlp_w2"].T + params["mlp_b2"]


if __name__ == "__main__":
    # module defaults: input_channels=3, conv out 32, kernel 7, H=64, MLP 128, 2 classes
    B, C_in, L = 16, 3, 16
    C_out, K, H, M, n_cls = 32, 7, 64, 128, 2

    key = jax.random.PRNGKey(0)
    ks = jax.random.split(key, 16)
    s = 0.1
    params = {
        "conv_w": jax.random.normal(ks[0], (C_out, C_in, K), jnp.float32) * s,
        "conv_b": jax.random.normal(ks[1], (C_out,), jnp.float32) * s,
        "w_ih_f": jax.random.normal(ks[2], (4 * H, C_out), jnp.float32) * s,
        "w_hh_f": jax.random.normal(ks[3], (4 * H, H), jnp.float32) * s,
        "b_ih_f": jax.random.normal(ks[4], (4 * H,), jnp.float32) * s,
        "b_hh_f": jax.random.normal(ks[5], (4 * H,), jnp.float32) * s,
        "w_ih_b": jax.random.normal(ks[6], (4 * H, C_out), jnp.float32) * s,
        "w_hh_b": jax.random.normal(ks[7], (4 * H, H), jnp.float32) * s,
        "b_ih_b": jax.random.normal(ks[8], (4 * H,), jnp.float32) * s,
        "b_hh_b": jax.random.normal(ks[9], (4 * H,), jnp.float32) * s,
        "mlp_w1": jax.random.normal(ks[10], (M, 2 * H), jnp.float32) * s,
        "mlp_b1": jax.random.normal(ks[11], (M,), jnp.float32) * s,
        "mlp_w2": jax.random.normal(ks[12], (n_cls, M), jnp.float32) * s,
        "mlp_b2": jax.random.normal(ks[13], (n_cls,), jnp.float32) * s,
    }
    x = jax.random.normal(ks[14], (B, C_in, L), jnp.float32)

    out = hybrid_classifier_forward(x, params)
    out = jax.block_until_ready(out)

    ref = jax.block_until_ready(reference_forward(x, params))
    # bf16 MXU operands (f32 accumulation) -> loosened tolerance vs f32 reference.
    np.testing.assert_allclose(np.asarray(out), np.asarray(ref), rtol=2e-2, atol=2e-2)

    print("KERNEL_OK")
</pallas_src>

<mosaic_0001>
module attributes {stable_mosaic.version = 11 : i64} {
  func.func @hybrid_kernel(%arg0: i32, %arg1: memref<1x256x24xbf16, #tpu.memory_space<vmem>>, %arg2: memref<24x32xbf16, #tpu.memory_space<vmem>>, %arg3: memref<1x32xf32, #tpu.memory_space<vmem>>, %arg4: memref<32x512xbf16, #tpu.memory_space<vmem>>, %arg5: memref<64x256xbf16, #tpu.memory_space<vmem>>, %arg6: memref<1x512xf32, #tpu.memory_space<vmem>>, %arg7: memref<128x128xbf16, #tpu.memory_space<vmem>>, %arg8: memref<1x128xf32, #tpu.memory_space<vmem>>, %arg9: memref<128x2xbf16, #tpu.memory_space<vmem>>, %arg10: memref<1x2xf32, #tpu.memory_space<vmem>>, %arg11: memref<1x16x2xf32, #tpu.memory_space<vmem>>, %arg12: memref<256x512xf32, #tpu.memory_space<vmem>>) attributes {dimension_semantics = [#tpu.dimension_semantics<parallel>], iteration_bounds = array<i64: 1>, scalar_prefetch = 0 : i64, scratch_operands = 1 : i64, tpu.core_type = #tpu.core_type<tc>, window_params = [{transform_indices = @transform_0, window_bounds = array<i64: 1, 256, 24>}, {pipeline_mode = #tpu.pipeline_mode<synchronous>, transform_indices = @transform_1, window_bounds = array<i64: 24, 32>}, {pipeline_mode = #tpu.pipeline_mode<synchronous>, transform_indices = @transform_2, window_bounds = array<i64: 1, 32>}, {pipeline_mode = #tpu.pipeline_mode<synchronous>, transform_indices = @transform_3, window_bounds = array<i64: 32, 512>}, {pipeline_mode = #tpu.pipeline_mode<synchronous>, transform_indices = @transform_4, window_bounds = array<i64: 64, 256>}, {pipeline_mode = #tpu.pipeline_mode<synchronous>, transform_indices = @transform_5, window_bounds = array<i64: 1, 512>}, {pipeline_mode = #tpu.pipeline_mode<synchronous>, transform_indices = @transform_6, window_bounds = array<i64: 128, 128>}, {pipeline_mode = #tpu.pipeline_mode<synchronous>, transform_indices = @transform_7, window_bounds = array<i64: 1, 128>}, {pipeline_mode = #tpu.pipeline_mode<synchronous>, transform_indices = @transform_8, window_bounds = array<i64: 128, 2>}, {pipeline_mode = #tpu.pipeline_mode<synchronous>, transform_indices = @transform_9, window_bounds = array<i64: 1, 2>}, {transform_indices = @transform_10, window_bounds = array<i64: 1, 16, 2>}]} {
    %c0 = arith.constant 0 : index
    %c0_0 = arith.constant 0 : index
    %c0_1 = arith.constant 0 : index
    %0 = vector.load %arg1[%c0, %c0_0, %c0_1] : memref<1x256x24xbf16, #tpu.memory_space<vmem>>, vector<1x256x24xbf16>
    %1 = vector.shape_cast %0 : vector<1x256x24xbf16> to vector<256x24xbf16>
    %c0_2 = arith.constant 0 : index
    %c0_3 = arith.constant 0 : index
    %2 = vector.load %arg2[%c0_2, %c0_3] : memref<24x32xbf16, #tpu.memory_space<vmem>>, vector<24x32xbf16>
    %cst = arith.constant dense<0.000000e+00> : vector<256x32xf32>
    %3 = tpu.matmul %1, %2, %cst {dimension_numbers = #tpu.dot_dimension_numbers<[1], [0], [0], [1], [0, 0, 1, 1], [], []>} : vector<256x24xbf16>, vector<24x32xbf16>, vector<256x32xf32> -> vector<256x32xf32>
    %c0_4 = arith.constant 0 : index
    %c0_5 = arith.constant 0 : index
    %4 = vector.load %arg3[%c0_4, %c0_5] : memref<1x32xf32, #tpu.memory_space<vmem>>, vector<1x32xf32>
    %5 = vector.broadcast %4 : vector<1x32xf32> to vector<256x32xf32>
    %6 = arith.addf %3, %5 : vector<256x32xf32>
    %cst_6 = arith.constant 0.000000e+00 : f32
    %7 = vector.broadcast %cst_6 : f32 to vector<256x32xf32>
    %8 = arith.maximumf %6, %7 : vector<256x32xf32>
    %9 = arith.truncf %8 : vector<256x32xf32> to vector<256x32xbf16>
    %c0_7 = arith.constant 0 : index
    %c0_8 = arith.constant 0 : index
    %10 = vector.load %arg4[%c0_7, %c0_8] : memref<32x512xbf16, #tpu.memory_space<vmem>>, vector<32x512xbf16>
    %cst_9 = arith.constant dense<0.000000e+00> : vector<256x512xf32>
    %11 = tpu.matmul %9, %10, %cst_9 {dimension_numbers = #tpu.dot_dimension_numbers<[1], [0], [0], [1], [0, 0, 1, 1], [], []>} : vector<256x32xbf16>, vector<32x512xbf16>, vector<256x512xf32> -> vector<256x512xf32>
    %c0_10 = arith.constant 0 : index
    %c0_11 = arith.constant 0 : index
    %12 = vector.load %arg6[%c0_10, %c0_11] : memref<1x512xf32, #tpu.memory_space<vmem>>, vector<1x512xf32>
    %13 = vector.broadcast %12 : vector<1x512xf32> to vector<256x512xf32>
    %14 = arith.addf %11, %13 : vector<256x512xf32>
    %c0_12 = arith.constant 0 : index
    %c0_13 = arith.constant 0 : index
    %15 = vector.load %arg12[%c0_12, %c0_13] : memref<256x512xf32, #tpu.memory_space<vmem>>, vector<256x512xf32>
    tpu.vector_store %arg12[%c0_12, %c0_13], %14 {strides = array<i32>} : memref<256x512xf32, #tpu.memory_space<vmem>>, vector<256x512xf32>,
    %c0_14 = arith.constant 0 : index
    %c0_15 = arith.constant 0 : index
    %16 = vector.load %arg5[%c0_14, %c0_15] : memref<64x256xbf16, #tpu.memory_space<vmem>>, vector<64x256xbf16>
    %c0_16 = arith.constant 0 : index
    %c0_17 = arith.constant 0 : index
    %17 = vector.load %arg12[%c0_16, %c0_17] : memref<256x512xf32, #tpu.memory_space<vmem>>, vector<16x256xf32>
    %18 = vector.extract_strided_slice %17 {offsets = [0, 0], sizes = [16, 192], strides = [1, 1]} : vector<16x256xf32> to vector<16x192xf32>
    %19 = arith.negf %18 : vector<16x192xf32>
    %20 = math.exp %19 : vector<16x192xf32>
    %cst_18 = arith.constant 1.000000e+00 : f32
    %21 = vector.broadcast %cst_18 : f32 to vector<16x192xf32>
    %22 = arith.addf %21, %20 : vector<16x192xf32>
    %23 = arith.divf %21, %22 : vector<16x192xf32>
    %24 = vector.extract_strided_slice %23 {offsets = [0, 0], sizes = [16, 64], strides = [1, 1]} : vector<16x192xf32> to vector<16x64xf32>
    %25 = vector.extract_strided_slice %23 {offsets = [0, 128], sizes = [16, 64], strides = [1, 1]} : vector<16x192xf32> to vector<16x64xf32>
    %26 = vector.extract_strided_slice %17 {offsets = [0, 192], sizes = [16, 64], strides = [1, 1]} : vector<16x256xf32> to vector<16x64xf32>
    %27 = math.tanh %26 : vector<16x64xf32>
    %28 = arith.mulf %24, %27 : vector<16x64xf32>
    %29 = math.tanh %28 : vector<16x64xf32>
    %30 = arith.mulf %25, %29 : vector<16x64xf32>
    %c1_i32 = arith.constant 1 : i32
    %c16_i32 = arith.constant 16 : i32
    %31 = arith.muli %c1_i32, %c16_i32 : i32
    %32 = tpu.assume_multiple %31, 16 : i32
    %33 = arith.index_cast %32 : i32 to index
    %c0_19 = arith.constant 0 : index
    %34 = vector.load %arg12[%33, %c0_19] : memref<256x512xf32, #tpu.memory_space<vmem>>, vector<16x256xf32>
    %35 = arith.truncf %30 : vector<16x64xf32> to vector<16x64xbf16>
    %cst_20 = arith.constant dense<0.000000e+00> : vector<16x256xf32>
    %36 = tpu.matmul %35, %16, %cst_20 {dimension_numbers = #tpu.dot_dimension_numbers<[1], [0], [0], [1], [0, 0, 1, 1], [], []>} : vector<16x64xbf16>, vector<64x256xbf16>, vector<16x256xf32> -> vector<16x256xf32>
    %37 = arith.addf %34, %36 : vector<16x256xf32>
    %38 = vector.extract_strided_slice %37 {offsets = [0, 0], sizes = [16, 192], strides = [1, 1]} : vector<16x256xf32> to vector<16x192xf32>
    %39 = arith.negf %38 : vector<16x192xf32>
    %40 = math.exp %39 : vector<16x192xf32>
    %cst_21 = arith.constant 1.000000e+00 : f32
    %41 = vector.broadcast %cst_21 : f32 to vector<16x192xf32>
    %42 = arith.addf %41, %40 : vector<16x192xf32>
    %43 = arith.divf %41, %42 : vector<16x192xf32>
    %44 = vector.extract_strided_slice %43 {offsets = [0, 0], sizes = [16, 64], strides = [1, 1]} : vector<16x192xf32> to vector<16x64xf32>
    %45 = vector.extract_strided_slice %43 {offsets = [0, 64], sizes = [16, 64], strides = [1, 1]} : vector<16x192xf32> to vector<16x64xf32>
    %46 = vector.extract_strided_slice %43 {offsets = [0, 128], sizes = [16, 64], strides = [1, 1]} : vector<16x192xf32> to vector<16x64xf32>
    %47 = vector.extract_strided_slice %37 {offsets = [0, 192], sizes = [16, 64], strides = [1, 1]} : vector<16x256xf32> to vector<16x64xf32>
    %48 = math.tanh %47 : vector<16x64xf32>
    %49 = arith.mulf %45, %28 : vector<16x64xf32>
    %50 = arith.mulf %44, %48 : vector<16x64xf32>
    %51 = arith.addf %49, %50 : vector<16x64xf32>
    %52 = math.tanh %51 : vector<16x64xf32>
    %53 = arith.mulf %46, %52 : vector<16x64xf32>
    %c2_i32 = arith.constant 2 : i32
    %c16_i32_22 = arith.constant 16 : i32
    %54 = arith.muli %c2_i32, %c16_i32_22 : i32
    %55 = tpu.assume_multiple %54, 16 : i32
    %56 = arith.index_cast %55 : i32 to index
    %c0_23 = arith.constant 0 : index
    %57 = vector.load %arg12[%56, %c0_23] : memref<256x512xf32, #tpu.memory_space<vmem>>, vector<16x256xf32>
    %58 = arith.truncf %53 : vector<16x64xf32> to vector<16x64xbf16>
    %cst_24 = arith.constant dense<0.000000e+00> : vector<16x256xf32>
    %59 = tpu.matmul %58, %16, %cst_24 {dimension_numbers = #tpu.dot_dimension_numbers<[1], [0], [0], [1], [0, 0, 1, 1], [], []>} : vector<16x64xbf16>, vector<64x256xbf16>, vector<16x256xf32> -> vector<16x256xf32>
    %60 = arith.addf %57, %59 : vector<16x256xf32>
    %61 = vector.extract_strided_slice %60 {offsets = [0, 0], sizes = [16, 192], strides = [1, 1]} : vector<16x256xf32> to vector<16x192xf32>
    %62 = arith.negf %61 : vector<16x192xf32>
    %63 = math.exp %62 : vector<16x192xf32>
    %cst_25 = arith.constant 1.000000e+00 : f32
    %64 = vector.broadcast %cst_25 : f32 to vector<16x192xf32>
    %65 = arith.addf %64, %63 : vector<16x192xf32>
    %66 = arith.divf %64, %65 : vector<16x192xf32>
    %67 = vector.extract_strided_slice %66 {offsets = [0, 0], sizes = [16, 64], strides = [1, 1]} : vector<16x192xf32> to vector<16x64xf32>
    %68 = vector.extract_strided_slice %66 {offsets = [0, 64], sizes = [16, 64], strides = [1, 1]} : vector<16x192xf32> to vector<16x64xf32>
    %69 = vector.extract_strided_slice %66 {offsets = [0, 128], sizes = [16, 64], strides = [1, 1]} : vector<16x192xf32> to vector<16x64xf32>
    %70 = vector.extract_strided_slice %60 {offsets = [0, 192], sizes = [16, 64], strides = [1, 1]} : vector<16x256xf32> to vector<16x64xf32>
    %71 = math.tanh %70 : vector<16x64xf32>
    %72 = arith.mulf %68, %51 : vector<16x64xf32>
    %73 = arith.mulf %67, %71 : vector<16x64xf32>
    %74 = arith.addf %72, %73 : vector<16x64xf32>
    %75 = math.tanh %74 : vector<16x64xf32>
    %76 = arith.mulf %69, %75 : vector<16x64xf32>
    %c3_i32 = arith.constant 3 : i32
    %c16_i32_26 = arith.constant 16 : i32
    %77 = arith.muli %c3_i32, %c16_i32_26 : i32
    %78 = tpu.assume_multiple %77, 16 : i32
    %79 = arith.index_cast %78 : i32 to index
    %c0_27 = arith.constant 0 : index
    %80 = vector.load %arg12[%79, %c0_27] : memref<256x512xf32, #tpu.memory_space<vmem>>, vector<16x256xf32>
    %81 = arith.truncf %76 : vector<16x64xf32> to vector<16x64xbf16>
    %cst_28 = arith.constant dense<0.000000e+00> : vector<16x256xf32>
    %82 = tpu.matmul %81, %16, %cst_28 {dimension_numbers = #tpu.dot_dimension_numbers<[1], [0], [0], [1], [0, 0, 1, 1], [], []>} : vector<16x64xbf16>, vector<64x256xbf16>, vector<16x256xf32> -> vector<16x256xf32>
    %83 = arith.addf %80, %82 : vector<16x256xf32>
    %84 = vector.extract_strided_slice %83 {offsets = [0, 0], sizes = [16, 192], strides = [1, 1]} : vector<16x256xf32> to vector<16x192xf32>
    %85 = arith.negf %84 : vector<16x192xf32>
    %86 = math.exp %85 : vector<16x192xf32>
    %cst_29 = arith.constant 1.000000e+00 : f32
    %87 = vector.broadcast %cst_29 : f32 to vector<16x192xf32>
    %88 = arith.addf %87, %86 : vector<16x192xf32>
    %89 = arith.divf %87, %88 : vector<16x192xf32>
    %90 = vector.extract_strided_slice %89 {offsets = [0, 0], sizes = [16, 64], strides = [1, 1]} : vector<16x192xf32> to vector<16x64xf32>
    %91 = vector.extract_strided_slice %89 {offsets = [0, 64], sizes = [16, 64], strides = [1, 1]} : vector<16x192xf32> to vector<16x64xf32>
    %92 = vector.extract_strided_slice %89 {offsets = [0, 128], sizes = [16, 64], strides = [1, 1]} : vector<16x192xf32> to vector<16x64xf32>
    %93 = vector.extract_strided_slice %83 {offsets = [0, 192], sizes = [16, 64], strides = [1, 1]} : vector<16x256xf32> to vector<16x64xf32>
    %94 = math.tanh %93 : vector<16x64xf32>
    %95 = arith.mulf %91, %74 : vector<16x64xf32>
    %96 = arith.mulf %90, %94 : vector<16x64xf32>
    %97 = arith.addf %95, %96 : vector<16x64xf32>
    %98 = math.tanh %97 : vector<16x64xf32>
    %99 = arith.mulf %92, %98 : vector<16x64xf32>
    %c4_i32 = arith.constant 4 : i32
    %c16_i32_30 = arith.constant 16 : i32
    %100 = arith.muli %c4_i32, %c16_i32_30 : i32
    %101 = tpu.assume_multiple %100, 16 : i32
    %102 = arith.index_cast %101 : i32 to index
    %c0_31 = arith.constant 0 : index
    %103 = vector.load %arg12[%102, %c0_31] : memref<256x512xf32, #tpu.memory_space<vmem>>, vector<16x256xf32>
    %104 = arith.truncf %99 : vector<16x64xf32> to vector<16x64xbf16>
    %cst_32 = arith.constant dense<0.000000e+00> : vector<16x256xf32>
    %105 = tpu.matmul %104, %16, %cst_32 {dimension_numbers = #tpu.dot_dimension_numbers<[1], [0], [0], [1], [0, 0, 1, 1], [], []>} : vector<16x64xbf16>, vector<64x256xbf16>, vector<16x256xf32> -> vector<16x256xf32>
    %106 = arith.addf %103, %105 : vector<16x256xf32>
    %107 = vector.extract_strided_slice %106 {offsets = [0, 0], sizes = [16, 192], strides = [1, 1]} : vector<16x256xf32> to vector<16x192xf32>
    %108 = arith.negf %107 : vector<16x192xf32>
    %109 = math.exp %108 : vector<16x192xf32>
    %cst_33 = arith.constant 1.000000e+00 : f32
    %110 = vector.broadcast %cst_33 : f32 to vector<16x192xf32>
    %111 = arith.addf %110, %109 : vector<16x192xf32>
    %112 = arith.divf %110, %111 : vector<16x192xf32>
    %113 = vector.extract_strided_slice %112 {offsets = [0, 0], sizes = [16, 64], strides = [1, 1]} : vector<16x192xf32> to vector<16x64xf32>
    %114 = vector.extract_strided_slice %112 {offsets = [0, 64], sizes = [16, 64], strides = [1, 1]} : vector<16x192xf32> to vector<16x64xf32>
    %115 = vector.extract_strided_slice %112 {offsets = [0, 128], sizes = [16, 64], strides = [1, 1]} : vector<16x192xf32> to vector<16x64xf32>
    %116 = vector.extract_strided_slice %106 {offsets = [0, 192], sizes = [16, 64], strides = [1, 1]} : vector<16x256xf32> to vector<16x64xf32>
    %117 = math.tanh %116 : vector<16x64xf32>
    %118 = arith.mulf %114, %97 : vector<16x64xf32>
    %119 = arith.mulf %113, %117 : vector<16x64xf32>
    %120 = arith.addf %118, %119 : vector<16x64xf32>
    %121 = math.tanh %120 : vector<16x64xf32>
    %122 = arith.mulf %115, %121 : vector<16x64xf32>
    %c5_i32 = arith.constant 5 : i32
    %c16_i32_34 = arith.constant 16 : i32
    %123 = arith.muli %c5_i32, %c16_i32_34 : i32
    %124 = tpu.assume_multiple %123, 16 : i32
    %125 = arith.index_cast %124 : i32 to index
    %c0_35 = arith.constant 0 : index
    %126 = vector.load %arg12[%125, %c0_35] : memref<256x512xf32, #tpu.memory_space<vmem>>, vector<16x256xf32>
    %127 = arith.truncf %122 : vector<16x64xf32> to vector<16x64xbf16>
    %cst_36 = arith.constant dense<0.000000e+00> : vector<16x256xf32>
    %128 = tpu.matmul %127, %16, %cst_36 {dimension_numbers = #tpu.dot_dimension_numbers<[1], [0], [0], [1], [0, 0, 1, 1], [], []>} : vector<16x64xbf16>, vector<64x256xbf16>, vector<16x256xf32> -> vector<16x256xf32>
    %129 = arith.addf %126, %128 : vector<16x256xf32>
    %130 = vector.extract_strided_slice %129 {offsets = [0, 0], sizes = [16, 192], strides = [1, 1]} : vector<16x256xf32> to vector<16x192xf32>
    %131 = arith.negf %130 : vector<16x192xf32>
    %132 = math.exp %131 : vector<16x192xf32>
    %cst_37 = arith.constant 1.000000e+00 : f32
    %133 = vector.broadcast %cst_37 : f32 to vector<16x192xf32>
    %134 = arith.addf %133, %132 : vector<16x192xf32>
    %135 = arith.divf %133, %134 : vector<16x192xf32>
    %136 = vector.extract_strided_slice %135 {offsets = [0, 0], sizes = [16, 64], strides = [1, 1]} : vector<16x192xf32> to vector<16x64xf32>
    %137 = vector.extract_strided_slice %135 {offsets = [0, 64], sizes = [16, 64], strides = [1, 1]} : vector<16x192xf32> to vector<16x64xf32>
    %138 = vector.extract_strided_slice %135 {offsets = [0, 128], sizes = [16, 64], strides = [1, 1]} : vector<16x192xf32> to vector<16x64xf32>
    %139 = vector.extract_strided_slice %129 {offsets = [0, 192], sizes = [16, 64], strides = [1, 1]} : vector<16x256xf32> to vector<16x64xf32>
    %140 = math.tanh %139 : vector<16x64xf32>
    %141 = arith.mulf %137, %120 : vector<16x64xf32>
    %142 = arith.mulf %136, %140 : vector<16x64xf32>
    %143 = arith.addf %141, %142 : vector<16x64xf32>
    %144 = math.tanh %143 : vector<16x64xf32>
    %145 = arith.mulf %138, %144 : vector<16x64xf32>
    %c6_i32 = arith.constant 6 : i32
    %c16_i32_38 = arith.constant 16 : i32
    %146 = arith.muli %c6_i32, %c16_i32_38 : i32
    %147 = tpu.assume_multiple %146, 16 : i32
    %148 = arith.index_cast %147 : i32 to index
    %c0_39 = arith.constant 0 : index
    %149 = vector.load %arg12[%148, %c0_39] : memref<256x512xf32, #tpu.memory_space<vmem>>, vector<16x256xf32>
    %150 = arith.truncf %145 : vector<16x64xf32> to vector<16x64xbf16>
    %cst_40 = arith.constant dense<0.000000e+00> : vector<16x256xf32>
    %151 = tpu.matmul %150, %16, %cst_40 {dimension_numbers = #tpu.dot_dimension_numbers<[1], [0], [0], [1], [0, 0, 1, 1], [], []>} : vector<16x64xbf16>, vector<64x256xbf16>, vector<16x256xf32> -> vector<16x256xf32>
    %152 = arith.addf %149, %151 : vector<16x256xf32>
    %153 = vector.extract_strided_slice %152 {offsets = [0, 0], sizes = [16, 192], strides = [1, 1]} : vector<16x256xf32> to vector<16x192xf32>
    %154 = arith.negf %153 : vector<16x192xf32>
    %155 = math.exp %154 : vector<16x192xf32>
    %cst_41 = arith.constant 1.000000e+00 : f32
    %156 = vector.broadcast %cst_41 : f32 to vector<16x192xf32>
    %157 = arith.addf %156, %155 : vector<16x192xf32>
    %158 = arith.divf %156, %157 : vector<16x192xf32>
    %159 = vector.extract_strided_slice %158 {offsets = [0, 0], sizes = [16, 64], strides = [1, 1]} : vector<16x192xf32> to vector<16x64xf32>
    %160 = vector.extract_strided_slice %158 {offsets = [0, 64], sizes = [16, 64], strides = [1, 1]} : vector<16x192xf32> to vector<16x64xf32>
    %161 = vector.extract_strided_slice %158 {offsets = [0, 128], sizes = [16, 64], strides = [1, 1]} : vector<16x192xf32> to vector<16x64xf32>
    %162 = vector.extract_strided_slice %152 {offsets = [0, 192], sizes = [16, 64], strides = [1, 1]} : vector<16x256xf32> to vector<16x64xf32>
    %163 = math.tanh %162 : vector<16x64xf32>
    %164 = arith.mulf %160, %143 : vector<16x64xf32>
    %165 = arith.mulf %159, %163 : vector<16x64xf32>
    %166 = arith.addf %164, %165 : vector<16x64xf32>
    %167 = math.tanh %166 : vector<16x64xf32>
    %168 = arith.mulf %161, %167 : vector<16x64xf32>
    %c7_i32 = arith.constant 7 : i32
    %c16_i32_42 = arith.constant 16 : i32
    %169 = arith.muli %c7_i32, %c16_i32_42 : i32
    %170 = tpu.assume_multiple %169, 16 : i32
    %171 = arith.index_cast %170 : i32 to index
    %c0_43 = arith.constant 0 : index
    %172 = vector.load %arg12[%171, %c0_43] : memref<256x512xf32, #tpu.memory_space<vmem>>, vector<16x256xf32>
    %173 = arith.truncf %168 : vector<16x64xf32> to vector<16x64xbf16>
    %cst_44 = arith.constant dense<0.000000e+00> : vector<16x256xf32>
    %174 = tpu.matmul %173, %16, %cst_44 {dimension_numbers = #tpu.dot_dimension_numbers<[1], [0], [0], [1], [0, 0, 1, 1], [], []>} : vector<16x64xbf16>, vector<64x256xbf16>, vector<16x256xf32> -> vector<16x256xf32>
    %175 = arith.addf %172, %174 : vector<16x256xf32>
    %176 = vector.extract_strided_slice %175 {offsets = [0, 0], sizes = [16, 192], strides = [1, 1]} : vector<16x256xf32> to vector<16x192xf32>
    %177 = arith.negf %176 : vector<16x192xf32>
    %178 = math.exp %177 : vector<16x192xf32>
    %cst_45 = arith.constant 1.000000e+00 : f32
    %179 = vector.broadcast %cst_45 : f32 to vector<16x192xf32>
    %180 = arith.addf %179, %178 : vector<16x192xf32>
    %181 = arith.divf %179, %180 : vector<16x192xf32>
    %182 = vector.extract_strided_slice %181 {offsets = [0, 0], sizes = [16, 64], strides = [1, 1]} : vector<16x192xf32> to vector<16x64xf32>
    %183 = vector.extract_strided_slice %181 {offsets = [0, 64], sizes = [16, 64], strides = [1, 1]} : vector<16x192xf32> to vector<16x64xf32>
    %184 = vector.extract_strided_slice %181 {offsets = [0, 128], sizes = [16, 64], strides = [1, 1]} : vector<16x192xf32> to vector<16x64xf32>
    %185 = vector.extract_strided_slice %175 {offsets = [0, 192], sizes = [16, 64], strides = [1, 1]} : vector<16x256xf32> to vector<16x64xf32>
    %186 = math.tanh %185 : vector<16x64xf32>
    %187 = arith.mulf %183, %166 : vector<16x64xf32>
    %188 = arith.mulf %182, %186 : vector<16x64xf32>
    %189 = arith.addf %187, %188 : vector<16x64xf32>
    %190 = math.tanh %189 : vector<16x64xf32>
    %191 = arith.mulf %184, %190 : vector<16x64xf32>
    %c8_i32 = arith.constant 8 : i32
    %c16_i32_46 = arith.constant 16 : i32
    %192 = arith.muli %c8_i32, %c16_i32_46 : i32
    %193 = tpu.assume_multiple %192, 16 : i32
    %194 = arith.index_cast %193 : i32 to index
    %c0_47 = arith.constant 0 : index
    %195 = vector.load %arg12[%194, %c0_47] : memref<256x512xf32, #tpu.memory_space<vmem>>, vector<16x256xf32>
    %196 = arith.truncf %191 : vector<16x64xf32> to vector<16x64xbf16>
    %cst_48 = arith.constant dense<0.000000e+00> : vector<16x256xf32>
    %197 = tpu.matmul %196, %16, %cst_48 {dimension_numbers = #tpu.dot_dimension_numbers<[1], [0], [0], [1], [0, 0, 1, 1], [], []>} : vector<16x64xbf16>, vector<64x256xbf16>, vector<16x256xf32> -> vector<16x256xf32>
    %198 = arith.addf %195, %197 : vector<16x256xf32>
    %199 = vector.extract_strided_slice %198 {offsets = [0, 0], sizes = [16, 192], strides = [1, 1]} : vector<16x256xf32> to vector<16x192xf32>
    %200 = arith.negf %199 : vector<16x192xf32>
    %201 = math.exp %200 : vector<16x192xf32>
    %cst_49 = arith.constant 1.000000e+00 : f32
    %202 = vector.broadcast %cst_49 : f32 to vector<16x192xf32>
    %203 = arith.addf %202, %201 : vector<16x192xf32>
    %204 = arith.divf %202, %203 : vector<16x192xf32>
    %205 = vector.extract_strided_slice %204 {offsets = [0, 0], sizes = [16, 64], strides = [1, 1]} : vector<16x192xf32> to vector<16x64xf32>
    %206 = vector.extract_strided_slice %204 {offsets = [0, 64], sizes = [16, 64], strides = [1, 1]} : vector<16x192xf32> to vector<16x64xf32>
    %207 = vector.extract_strided_slice %204 {offsets = [0, 128], sizes = [16, 64], strides = [1, 1]} : vector<16x192xf32> to vector<16x64xf32>
    %208 = vector.extract_strided_slice %198 {offsets = [0, 192], sizes = [16, 64], strides = [1, 1]} : vector<16x256xf32> to vector<16x64xf32>
    %209 = math.tanh %208 : vector<16x64xf32>
    %210 = arith.mulf %206, %189 : vector<16x64xf32>
    %211 = arith.mulf %205, %209 : vector<16x64xf32>
    %212 = arith.addf %210, %211 : vector<16x64xf32>
    %213 = math.tanh %212 : vector<16x64xf32>
    %214 = arith.mulf %207, %213 : vector<16x64xf32>
    %c9_i32 = arith.constant 9 : i32
    %c16_i32_50 = arith.constant 16 : i32
    %215 = arith.muli %c9_i32, %c16_i32_50 : i32
    %216 = tpu.assume_multiple %215, 16 : i32
    %217 = arith.index_cast %216 : i32 to index
    %c0_51 = arith.constant 0 : index
    %218 = vector.load %arg12[%217, %c0_51] : memref<256x512xf32, #tpu.memory_space<vmem>>, vector<16x256xf32>
    %219 = arith.truncf %214 : vector<16x64xf32> to vector<16x64xbf16>
    %cst_52 = arith.constant dense<0.000000e+00> : vector<16x256xf32>
    %220 = tpu.matmul %219, %16, %cst_52 {dimension_numbers = #tpu.dot_dimension_numbers<[1], [0], [0], [1], [0, 0, 1, 1], [], []>} : vector<16x64xbf16>, vector<64x256xbf16>, vector<16x256xf32> -> vector<16x256xf32>
    %221 = arith.addf %218, %220 : vector<16x256xf32>
    %222 = vector.extract_strided_slice %221 {offsets = [0, 0], sizes = [16, 192], strides = [1, 1]} : vector<16x256xf32> to vector<16x192xf32>
    %223 = arith.negf %222 : vector<16x192xf32>
    %224 = math.exp %223 : vector<16x192xf32>
    %cst_53 = arith.constant 1.000000e+00 : f32
    %225 = vector.broadcast %cst_53 : f32 to vector<16x192xf32>
    %226 = arith.addf %225, %224 : vector<16x192xf32>
    %227 = arith.divf %225, %226 : vector<16x192xf32>
    %228 = vector.extract_strided_slice %227 {offsets = [0, 0], sizes = [16, 64], strides = [1, 1]} : vector<16x192xf32> to vector<16x64xf32>
    %229 = vector.extract_strided_slice %227 {offsets = [0, 64], sizes = [16, 64], strides = [1, 1]} : vector<16x192xf32> to vector<16x64xf32>
    %230 = vector.extract_strided_slice %227 {offsets = [0, 128], sizes = [16, 64], strides = [1, 1]} : vector<16x192xf32> to vector<16x64xf32>
    %231 = vector.extract_strided_slice %221 {offsets = [0, 192], sizes = [16, 64], strides = [1, 1]} : vector<16x256xf32> to vector<16x64xf32>
    %232 = math.tanh %231 : vector<16x64xf32>
    %233 = arith.mulf %229, %212 : vector<16x64xf32>
    %234 = arith.mulf %228, %232 : vector<16x64xf32>
    %235 = arith.addf %233, %234 : vector<16x64xf32>
    %236 = math.tanh %235 : vector<16x64xf32>
    %237 = arith.mulf %230, %236 : vector<16x64xf32>
    %c10_i32 = arith.constant 10 : i32
    %c16_i32_54 = arith.constant 16 : i32
    %238 = arith.muli %c10_i32, %c16_i32_54 : i32
    %239 = tpu.assume_multiple %238, 16 : i32
    %240 = arith.index_cast %239 : i32 to index
    %c0_55 = arith.constant 0 : index
    %241 = vector.load %arg12[%240, %c0_55] : memref<256x512xf32, #tpu.memory_space<vmem>>, vector<16x256xf32>
    %242 = arith.truncf %237 : vector<16x64xf32> to vector<16x64xbf16>
    %cst_56 = arith.constant dense<0.000000e+00> : vector<16x256xf32>
    %243 = tpu.matmul %242, %16, %cst_56 {dimension_numbers = #tpu.dot_dimension_numbers<[1], [0], [0], [1], [0, 0, 1, 1], [], []>} : vector<16x64xbf16>, vector<64x256xbf16>, vector<16x256xf32> -> vector<16x256xf32>
    %244 = arith.addf %241, %243 : vector<16x256xf32>
    %245 = vector.extract_strided_slice %244 {offsets = [0, 0], sizes = [16, 192], strides = [1, 1]} : vector<16x256xf32> to vector<16x192xf32>
    %246 = arith.negf %245 : vector<16x192xf32>
    %247 = math.exp %246 : vector<16x192xf32>
    %cst_57 = arith.constant 1.000000e+00 : f32
    %248 = vector.broadcast %cst_57 : f32 to vector<16x192xf32>
    %249 = arith.addf %248, %247 : vector<16x192xf32>
    %250 = arith.divf %248, %249 : vector<16x192xf32>
    %251 = vector.extract_strided_slice %250 {offsets = [0, 0], sizes = [16, 64], strides = [1, 1]} : vector<16x192xf32> to vector<16x64xf32>
    %252 = vector.extract_strided_slice %250 {offsets = [0, 64], sizes = [16, 64], strides = [1, 1]} : vector<16x192xf32> to vector<16x64xf32>
    %253 = vector.extract_strided_slice %250 {offsets = [0, 128], sizes = [16, 64], strides = [1, 1]} : vector<16x192xf32> to vector<16x64xf32>
    %254 = vector.extract_strided_slice %244 {offsets = [0, 192], sizes = [16, 64], strides = [1, 1]} : vector<16x256xf32> to vector<16x64xf32>
    %255 = math.tanh %254 : vector<16x64xf32>
    %256 = arith.mulf %252, %235 : vector<16x64xf32>
    %257 = arith.mulf %251, %255 : vector<16x64xf32>
    %258 = arith.addf %256, %257 : vector<16x64xf32>
    %259 = math.tanh %258 : vector<16x64xf32>
    %260 = arith.mulf %253, %259 : vector<16x64xf32>
    %c11_i32 = arith.constant 11 : i32
    %c16_i32_58 = arith.constant 16 : i32
    %261 = arith.muli %c11_i32, %c16_i32_58 : i32
    %262 = tpu.assume_multiple %261, 16 : i32
    %263 = arith.index_cast %262 : i32 to index
    %c0_59 = arith.constant 0 : index
    %264 = vector.load %arg12[%263, %c0_59] : memref<256x512xf32, #tpu.memory_space<vmem>>, vector<16x256xf32>
    %265 = arith.truncf %260 : vector<16x64xf32> to vector<16x64xbf16>
    %cst_60 = arith.constant dense<0.000000e+00> : vector<16x256xf32>
    %266 = tpu.matmul %265, %16, %cst_60 {dimension_numbers = #tpu.dot_dimension_numbers<[1], [0], [0], [1], [0, 0, 1, 1], [], []>} : vector<16x64xbf16>, vector<64x256xbf16>, vector<16x256xf32> -> vector<16x256xf32>
    %267 = arith.addf %264, %266 : vector<16x256xf32>
    %268 = vector.extract_strided_slice %267 {offsets = [0, 0], sizes = [16, 192], strides = [1, 1]} : vector<16x256xf32> to vector<16x192xf32>
    %269 = arith.negf %268 : vector<16x192xf32>
    %270 = math.exp %269 : vector<16x192xf32>
    %cst_61 = arith.constant 1.000000e+00 : f32
    %271 = vector.broadcast %cst_61 : f32 to vector<16x192xf32>
    %272 = arith.addf %271, %270 : vector<16x192xf32>
    %273 = arith.divf %271, %272 : vector<16x192xf32>
    %274 = vector.extract_strided_slice %273 {offsets = [0, 0], sizes = [16, 64], strides = [1, 1]} : vector<16x192xf32> to vector<16x64xf32>
    %275 = vector.extract_strided_slice %273 {offsets = [0, 64], sizes = [16, 64], strides = [1, 1]} : vector<16x192xf32> to vector<16x64xf32>
    %276 = vector.extract_strided_slice %273 {offsets = [0, 128], sizes = [16, 64], strides = [1, 1]} : vector<16x192xf32> to vector<16x64xf32>
    %277 = vector.extract_strided_slice %267 {offsets = [0, 192], sizes = [16, 64], strides = [1, 1]} : vector<16x256xf32> to vector<16x64xf32>
    %278 = math.tanh %277 : vector<16x64xf32>
    %279 = arith.mulf %275, %258 : vector<16x64xf32>
    %280 = arith.mulf %274, %278 : vector<16x64xf32>
    %281 = arith.addf %279, %280 : vector<16x64xf32>
    %282 = math.tanh %281 : vector<16x64xf32>
    %283 = arith.mulf %276, %282 : vector<16x64xf32>
    %c12_i32 = arith.constant 12 : i32
    %c16_i32_62 = arith.constant 16 : i32
    %284 = arith.muli %c12_i32, %c16_i32_62 : i32
    %285 = tpu.assume_multiple %284, 16 : i32
    %286 = arith.index_cast %285 : i32 to index
    %c0_63 = arith.constant 0 : index
    %287 = vector.load %arg12[%286, %c0_63] : memref<256x512xf32, #tpu.memory_space<vmem>>, vector<16x256xf32>
    %288 = arith.truncf %283 : vector<16x64xf32> to vector<16x64xbf16>
    %cst_64 = arith.constant dense<0.000000e+00> : vector<16x256xf32>
    %289 = tpu.matmul %288, %16, %cst_64 {dimension_numbers = #tpu.dot_dimension_numbers<[1], [0], [0], [1], [0, 0, 1, 1], [], []>} : vector<16x64xbf16>, vector<64x256xbf16>, vector<16x256xf32> -> vector<16x256xf32>
    %290 = arith.addf %287, %289 : vector<16x256xf32>
    %291 = vector.extract_strided_slice %290 {offsets = [0, 0], sizes = [16, 192], strides = [1, 1]} : vector<16x256xf32> to vector<16x192xf32>
    %292 = arith.negf %291 : vector<16x192xf32>
    %293 = math.exp %292 : vector<16x192xf32>
    %cst_65 = arith.constant 1.000000e+00 : f32
    %294 = vector.broadcast %cst_65 : f32 to vector<16x192xf32>
    %295 = arith.addf %294, %293 : vector<16x192xf32>
    %296 = arith.divf %294, %295 : vector<16x192xf32>
    %297 = vector.extract_strided_slice %296 {offsets = [0, 0], sizes = [16, 64], strides = [1, 1]} : vector<16x192xf32> to vector<16x64xf32>
    %298 = vector.extract_strided_slice %296 {offsets = [0, 64], sizes = [16, 64], strides = [1, 1]} : vector<16x192xf32> to vector<16x64xf32>
    %299 = vector.extract_strided_slice %296 {offsets = [0, 128], sizes = [16, 64], strides = [1, 1]} : vector<16x192xf32> to vector<16x64xf32>
    %300 = vector.extract_strided_slice %290 {offsets = [0, 192], sizes = [16, 64], strides = [1, 1]} : vector<16x256xf32> to vector<16x64xf32>
    %301 = math.tanh %300 : vector<16x64xf32>
    %302 = arith.mulf %298, %281 : vector<16x64xf32>
    %303 = arith.mulf %297, %301 : vector<16x64xf32>
    %304 = arith.addf %302, %303 : vector<16x64xf32>
    %305 = math.tanh %304 : vector<16x64xf32>
    %306 = arith.mulf %299, %305 : vector<16x64xf32>
    %c13_i32 = arith.constant 13 : i32
    %c16_i32_66 = arith.constant 16 : i32
    %307 = arith.muli %c13_i32, %c16_i32_66 : i32
    %308 = tpu.assume_multiple %307, 16 : i32
    %309 = arith.index_cast %308 : i32 to index
    %c0_67 = arith.constant 0 : index
    %310 = vector.load %arg12[%309, %c0_67] : memref<256x512xf32, #tpu.memory_space<vmem>>, vector<16x256xf32>
    %311 = arith.truncf %306 : vector<16x64xf32> to vector<16x64xbf16>
    %cst_68 = arith.constant dense<0.000000e+00> : vector<16x256xf32>
    %312 = tpu.matmul %311, %16, %cst_68 {dimension_numbers = #tpu.dot_dimension_numbers<[1], [0], [0], [1], [0, 0, 1, 1], [], []>} : vector<16x64xbf16>, vector<64x256xbf16>, vector<16x256xf32> -> vector<16x256xf32>
    %313 = arith.addf %310, %312 : vector<16x256xf32>
    %314 = vector.extract_strided_slice %313 {offsets = [0, 0], sizes = [16, 192], strides = [1, 1]} : vector<16x256xf32> to vector<16x192xf32>
    %315 = arith.negf %314 : vector<16x192xf32>
    %316 = math.exp %315 : vector<16x192xf32>
    %cst_69 = arith.constant 1.000000e+00 : f32
    %317 = vector.broadcast %cst_69 : f32 to vector<16x192xf32>
    %318 = arith.addf %317, %316 : vector<16x192xf32>
    %319 = arith.divf %317, %318 : vector<16x192xf32>
    %320 = vector.extract_strided_slice %319 {offsets = [0, 0], sizes = [16, 64], strides = [1, 1]} : vector<16x192xf32> to vector<16x64xf32>
    %321 = vector.extract_strided_slice %319 {offsets = [0, 64], sizes = [16, 64], strides = [1, 1]} : vector<16x192xf32> to vector<16x64xf32>
    %322 = vector.extract_strided_slice %319 {offsets = [0, 128], sizes = [16, 64], strides = [1, 1]} : vector<16x192xf32> to vector<16x64xf32>
    %323 = vector.extract_strided_slice %313 {offsets = [0, 192], sizes = [16, 64], strides = [1, 1]} : vector<16x256xf32> to vector<16x64xf32>
    %324 = math.tanh %323 : vector<16x64xf32>
    %325 = arith.mulf %321, %304 : vector<16x64xf32>
    %326 = arith.mulf %320, %324 : vector<16x64xf32>
    %327 = arith.addf %325, %326 : vector<16x64xf32>
    %328 = math.tanh %327 : vector<16x64xf32>
    %329 = arith.mulf %322, %328 : vector<16x64xf32>
    %c14_i32 = arith.constant 14 : i32
    %c16_i32_70 = arith.constant 16 : i32
    %330 = arith.muli %c14_i32, %c16_i32_70 : i32
    %331 = tpu.assume_multiple %330, 16 : i32
    %332 = arith.index_cast %331 : i32 to index
    %c0_71 = arith.constant 0 : index
    %333 = vector.load %arg12[%332, %c0_71] : memref<256x512xf32, #tpu.memory_space<vmem>>, vector<16x256xf32>
    %334 = arith.truncf %329 : vector<16x64xf32> to vector<16x64xbf16>
    %cst_72 = arith.constant dense<0.000000e+00> : vector<16x256xf32>
    %335 = tpu.matmul %334, %16, %cst_72 {dimension_numbers = #tpu.dot_dimension_numbers<[1], [0], [0], [1], [0, 0, 1, 1], [], []>} : vector<16x64xbf16>, vector<64x256xbf16>, vector<16x256xf32> -> vector<16x256xf32>
    %336 = arith.addf %333, %335 : vector<16x256xf32>
    %337 = vector.extract_strided_slice %336 {offsets = [0, 0], sizes = [16, 192], strides = [1, 1]} : vector<16x256xf32> to vector<16x192xf32>
    %338 = arith.negf %337 : vector<16x192xf32>
    %339 = math.exp %338 : vector<16x192xf32>
    %cst_73 = arith.constant 1.000000e+00 : f32
    %340 = vector.broadcast %cst_73 : f32 to vector<16x192xf32>
    %341 = arith.addf %340, %339 : vector<16x192xf32>
    %342 = arith.divf %340, %341 : vector<16x192xf32>
    %343 = vector.extract_strided_slice %342 {offsets = [0, 0], sizes = [16, 64], strides = [1, 1]} : vector<16x192xf32> to vector<16x64xf32>
    %344 = vector.extract_strided_slice %342 {offsets = [0, 64], sizes = [16, 64], strides = [1, 1]} : vector<16x192xf32> to vector<16x64xf32>
    %345 = vector.extract_strided_slice %342 {offsets = [0, 128], sizes = [16, 64], strides = [1, 1]} : vector<16x192xf32> to vector<16x64xf32>
    %346 = vector.extract_strided_slice %336 {offsets = [0, 192], sizes = [16, 64], strides = [1, 1]} : vector<16x256xf32> to vector<16x64xf32>
    %347 = math.tanh %346 : vector<16x64xf32>
    %348 = arith.mulf %344, %327 : vector<16x64xf32>
    %349 = arith.mulf %343, %347 : vector<16x64xf32>
    %350 = arith.addf %348, %349 : vector<16x64xf32>
    %351 = math.tanh %350 : vector<16x64xf32>
    %352 = arith.mulf %345, %351 : vector<16x64xf32>
    %c15_i32 = arith.constant 15 : i32
    %c16_i32_74 = arith.constant 16 : i32
    %353 = arith.muli %c15_i32, %c16_i32_74 : i32
    %354 = tpu.assume_multiple %353, 16 : i32
    %355 = arith.index_cast %354 : i32 to index
    %c0_75 = arith.constant 0 : index
    %356 = vector.load %arg12[%355, %c0_75] : memref<256x512xf32, #tpu.memory_space<vmem>>, vector<16x256xf32>
    %357 = arith.truncf %352 : vector<16x64xf32> to vector<16x64xbf16>
    %cst_76 = arith.constant dense<0.000000e+00> : vector<16x256xf32>
    %358 = tpu.matmul %357, %16, %cst_76 {dimension_numbers = #tpu.dot_dimension_numbers<[1], [0], [0], [1], [0, 0, 1, 1], [], []>} : vector<16x64xbf16>, vector<64x256xbf16>, vector<16x256xf32> -> vector<16x256xf32>
    %359 = arith.addf %356, %358 : vector<16x256xf32>
    %360 = vector.extract_strided_slice %359 {offsets = [0, 0], sizes = [16, 192], strides = [1, 1]} : vector<16x256xf32> to vector<16x192xf32>
    %361 = arith.negf %360 : vector<16x192xf32>
    %362 = math.exp %361 : vector<16x192xf32>
    %cst_77 = arith.constant 1.000000e+00 : f32
    %363 = vector.broadcast %cst_77 : f32 to vector<16x192xf32>
    %364 = arith.addf %363, %362 : vector<16x192xf32>
    %365 = arith.divf %363, %364 : vector<16x192xf32>
    %366 = vector.extract_strided_slice %365 {offsets = [0, 0], sizes = [16, 64], strides = [1, 1]} : vector<16x192xf32> to vector<16x64xf32>
    %367 = vector.extract_strided_slice %365 {offsets = [0, 64], sizes = [16, 64], strides = [1, 1]} : vector<16x192xf32> to vector<16x64xf32>
    %368 = vector.extract_strided_slice %365 {offsets = [0, 128], sizes = [16, 64], strides = [1, 1]} : vector<16x192xf32> to vector<16x64xf32>
    %369 = vector.extract_strided_slice %359 {offsets = [0, 192], sizes = [16, 64], strides = [1, 1]} : vector<16x256xf32> to vector<16x64xf32>
    %370 = math.tanh %369 : vector<16x64xf32>
    %371 = arith.mulf %367, %350 : vector<16x64xf32>
    %372 = arith.mulf %366, %370 : vector<16x64xf32>
    %373 = arith.addf %371, %372 : vector<16x64xf32>
    %374 = math.tanh %373 : vector<16x64xf32>
    %375 = arith.mulf %368, %374 : vector<16x64xf32>
    %c15_i32_78 = arith.constant 15 : i32
    %c240 = arith.constant 240 : index
    %c256 = arith.constant 256 : index
    %376 = vector.load %arg12[%c240, %c256] : memref<256x512xf32, #tpu.memory_space<vmem>>, vector<16x256xf32>
    %377 = vector.extract_strided_slice %376 {offsets = [0, 0], sizes = [16, 192], strides = [1, 1]} : vector<16x256xf32> to vector<16x192xf32>
    %378 = arith.negf %377 : vector<16x192xf32>
    %379 = math.exp %378 : vector<16x192xf32>
    %cst_79 = arith.constant 1.000000e+00 : f32
    %380 = vector.broadcast %cst_79 : f32 to vector<16x192xf32>
    %381 = arith.addf %380, %379 : vector<16x192xf32>
    %382 = arith.divf %380, %381 : vector<16x192xf32>
    %383 = vector.extract_strided_slice %382 {offsets = [0, 0], sizes = [16, 64], strides = [1, 1]} : vector<16x192xf32> to vector<16x64xf32>
    %384 = vector.extract_strided_slice %382 {offsets = [0, 128], sizes = [16, 64], strides = [1, 1]} : vector<16x192xf32> to vector<16x64xf32>
    %385 = vector.extract_strided_slice %376 {offsets = [0, 192], sizes = [16, 64], strides = [1, 1]} : vector<16x256xf32> to vector<16x64xf32>
    %386 = math.tanh %385 : vector<16x64xf32>
    %387 = arith.mulf %383, %386 : vector<16x64xf32>
    %388 = math.tanh %387 : vector<16x64xf32>
    %389 = arith.mulf %384, %388 : vector<16x64xf32>
    %390 = tpu.concatenate %375, %389 in 1 : vector<16x64xf32>, vector<16x64xf32> -> vector<16x128xf32>
    %391 = arith.truncf %390 : vector<16x128xf32> to vector<16x128xbf16>
    %c0_80 = arith.constant 0 : index
    %c0_81 = arith.constant 0 : index
    %392 = vector.load %arg7[%c0_80, %c0_81] : memref<128x128xbf16, #tpu.memory_space<vmem>>, vector<128x128xbf16>
    %cst_82 = arith.constant dense<0.000000e+00> : vector<16x128xf32>
    %393 = tpu.matmul %391, %392, %cst_82 {dimension_numbers = #tpu.dot_dimension_numbers<[1], [0], [0], [1], [0, 0, 1, 1], [], []>} : vector<16x128xbf16>, vector<128x128xbf16>, vector<16x128xf32> -> vector<16x128xf32>
    %c0_83 = arith.constant 0 : index
    %c0_84 = arith.constant 0 : index
    %394 = vector.load %arg8[%c0_83, %c0_84] : memref<1x128xf32, #tpu.memory_space<vmem>>, vector<1x128xf32>
    %395 = vector.broadcast %394 : vector<1x128xf32> to vector<16x128xf32>
    %396 = arith.addf %393, %395 : vector<16x128xf32>
    %cst_85 = arith.constant 0.000000e+00 : f32
    %397 = vector.broadcast %cst_85 : f32 to vector<16x128xf32>
    %398 = arith.maximumf %396, %397 : vector<16x128xf32>
    %399 = arith.truncf %398 : vector<16x128xf32> to vector<16x128xbf16>
    %c0_86 = arith.constant 0 : index
    %c0_87 = arith.constant 0 : index
    %400 = vector.load %arg9[%c0_86, %c0_87] : memref<128x2xbf16, #tpu.memory_space<vmem>>, vector<128x2xbf16>
    %cst_88 = arith.constant dense<0.000000e+00> : vector<16x2xf32>
    %401 = tpu.matmul %399, %400, %cst_88 {dimension_numbers = #tpu.dot_dimension_numbers<[1], [0], [0], [1], [0, 0, 1, 1], [], []>} : vector<16x128xbf16>, vector<128x2xbf16>, vector<16x2xf32> -> vector<16x2xf32>
    %c0_89 = arith.constant 0 : index
    %c0_90 = arith.constant 0 : index
    %402 = vector.load %arg10[%c0_89, %c0_90] : memref<1x2xf32, #tpu.memory_space<vmem>>, vector<1x2xf32>
    %403 = vector.broadcast %402 : vector<1x2xf32> to vector<16x2xf32>
    %404 = arith.addf %401, %403 : vector<16x2xf32>
    %c0_91 = arith.constant 0 : index
    %c0_92 = arith.constant 0 : index
    %c0_93 = arith.constant 0 : index
    %405 = vector.load %arg11[%c0_91, %c0_92, %c0_93] : memref<1x16x2xf32, #tpu.memory_space<vmem>>, vector<1x16x2xf32>
    %406 = vector.shape_cast %405 : vector<1x16x2xf32> to vector<16x2xf32>
    %407 = vector.shape_cast %404 : vector<16x2xf32> to vector<1x16x2xf32>
    tpu.vector_store %arg11[%c0_91, %c0_92, %c0_93], %407 {strides = array<i32>} : memref<1x16x2xf32, #tpu.memory_space<vmem>>, vector<1x16x2xf32>,
    return
  }
  func.func @transform_0(%arg0: i32) -> (i32, i32, i32) {
    %c0_i32 = arith.constant 0 : i32
    %c0_i32_0 = arith.constant 0 : i32
    %c0_i32_1 = arith.constant 0 : i32
    return %arg0, %c0_i32, %c0_i32_0 : i32, i32, i32
  }
  func.func @transform_1(%arg0: i32) -> (i32, i32) {
    %c0_i32 = arith.constant 0 : i32
    %c0_i32_0 = arith.constant 0 : i32
    %c0_i32_1 = arith.constant 0 : i32
    return %c0_i32, %c0_i32_0 : i32, i32
  }
  func.func @transform_2(%arg0: i32) -> (i32, i32) {
    %c0_i32 = arith.constant 0 : i32
    %c0_i32_0 = arith.constant 0 : i32
    %c0_i32_1 = arith.constant 0 : i32
    return %c0_i32, %c0_i32_0 : i32, i32
  }
  func.func @transform_3(%arg0: i32) -> (i32, i32) {
    %c0_i32 = arith.constant 0 : i32
    %c0_i32_0 = arith.constant 0 : i32
    %c0_i32_1 = arith.constant 0 : i32
    return %c0_i32, %c0_i32_0 : i32, i32
  }
  func.func @transform_4(%arg0: i32) -> (i32, i32) {
    %c0_i32 = arith.constant 0 : i32
    %c0_i32_0 = arith.constant 0 : i32
    %c0_i32_1 = arith.constant 0 : i32
    return %c0_i32, %c0_i32_0 : i32, i32
  }
  func.func @transform_5(%arg0: i32) -> (i32, i32) {
    %c0_i32 = arith.constant 0 : i32
    %c0_i32_0 = arith.constant 0 : i32
    %c0_i32_1 = arith.constant 0 : i32
    return %c0_i32, %c0_i32_0 : i32, i32
  }
  func.func @transform_6(%arg0: i32) -> (i32, i32) {
    %c0_i32 = arith.constant 0 : i32
    %c0_i32_0 = arith.constant 0 : i32
    %c0_i32_1 = arith.constant 0 : i32
    return %c0_i32, %c0_i32_0 : i32, i32
  }
  func.func @transform_7(%arg0: i32) -> (i32, i32) {
    %c0_i32 = arith.constant 0 : i32
    %c0_i32_0 = arith.constant 0 : i32
    %c0_i32_1 = arith.constant 0 : i32
    return %c0_i32, %c0_i32_0 : i32, i32
  }
  func.func @transform_8(%arg0: i32) -> (i32, i32) {
    %c0_i32 = arith.constant 0 : i32
    %c0_i32_0 = arith.constant 0 : i32
    %c0_i32_1 = arith.constant 0 : i32
    return %c0_i32, %c0_i32_0 : i32, i32
  }
  func.func @transform_9(%arg0: i32) -> (i32, i32) {
    %c0_i32 = arith.constant 0 : i32
    %c0_i32_0 = arith.constant 0 : i32
    %c0_i32_1 = arith.constant 0 : i32
    return %c0_i32, %c0_i32_0 : i32, i32
  }
  func.func @transform_10(%arg0: i32) -> (i32, i32, i32) {
    %c0_i32 = arith.constant 0 : i32
    %c0_i32_0 = arith.constant 0 : i32
    %c0_i32_1 = arith.constant 0 : i32
    return %arg0, %c0_i32, %c0_i32_0 : i32, i32, i32
  }
}

</mosaic_0001>

<bundles_post_ra>
// kernel: tpu_custom_call.1
= control target key start
LH: loop header
LB: loop body
LE: loop exit
PB: predicated region body
PF: predicated region fallthrough
CT: control target
= control target key end

     0   :  { %vm167_vm0 = vcmask 195584   ;;  %vm216_vm1 = vcmask 1043456   ;;  %v4149_v23 = vmov 0   ;;  %vm499_vm2 = vcmask 261120   ;;  %s4150_s15 = smov 64   ;;  %s5196_s1 = inlined_call_operand.vmem [shape: bf16[24,32], index: 1, kind: input, shape index: {}]   ;;  %s5197_s0 = inlined_call_operand.vmem [shape: bf16[1,256,24], index: 0, kind: input, shape index: {}]   ;;  %s5198_s3 = inlined_call_operand.vmem [shape: bf16[32,512], index: 3, kind: input, shape index: {}]   ;;  %s5199_s2 = inlined_call_operand.vmem [shape: f32[1,32], index: 2, kind: input, shape index: {}]   ;;  %s5200_s4 = inlined_call_operand.vmem [shape: bf16[64,256], index: 4, kind: input, shape index: {}]   ;;  %s5201_s5 = inlined_call_operand.vmem [shape: f32[1,512], index: 5, kind: input, shape index: {}]   ;;  %s5202_s6 = inlined_call_operand.vmem [shape: bf16[128,128], index: 6, kind: input, shape index: {}]   ;;  %s5203_s8 = inlined_call_operand.vmem [shape: bf16[128,2], index: 8, kind: input, shape index: {}]   ;;  %s5204_s7 = inlined_call_operand.vmem [shape: f32[1,128], index: 7, kind: input, shape index: {}]   ;;  %s5205_s9 = inlined_call_operand.vmem [shape: f32[1,2], index: 9, kind: input, shape index: {}]   ;;  %s5206_s10 = inlined_call_operand.vmem [shape: f32[1,16,2], index: 10, kind: output, shape index: {}]  }
   0x1   :  { %v3667_v0 = vld [vmem:[%s5196_s1] sm:$0xff]   ;;  %v3668_v1 = vld [vmem:[%s5196_s1 + $0x8] ss:$0 sps:$4 sm:$0xff]   ;;  %v3671_v5 = vld [vmem:[%s5197_s0 + $0x10] sm:$0xff]   ;;  %660 = vmatprep.mubr.bf16.mxu1 %v4149_v23  ;;  %vm1162_vm3 = vcmask 523264   ;;  %vm4152_vm4 = vmmov 0  }
   0x2   :  { %v3669_v2 = vld [vmem:[%s5197_s0] sm:$0xff]   ;;  %3457 = vmatprep.subr.bf16.mxu0 %v3667_v0  ;;  %v218_v3 = vsel %vm216_vm1, %v3668_v1, 0  ;;  %v3670_v4 = vld [vmem:[%s5197_s0 + $0x8] sm:$0xff]   ;;  %v3672_v8 = vld [vmem:[%s5197_s0 + $0x18] sm:$0xff]   ;;  %vm3215_vm5 = vcmask 15360  }
   0x3   :  { %3458 = vmatpush3.bf16.msra.mxu0 %v3667_v0  ;;  %3461 = vmatprep.mubr.msk.bf16.mxu0 %vm167_vm0, %v3669_v2  ;;  %v3679_v6 = vld [vmem:[%s5198_s3] ss:$16 sps:$4 sm:$0xff]   ;;  %v3681_v7 = vld [vmem:[%s5198_s3 + $0x4] ss:$16 sps:$4 sm:$0xff]   ;;  %v3674_v12 = vld [vmem:[%s5197_s0 + $0x28] sm:$0xff]  }
   0x4   :  { %3657 = vmatprep.subr.msk.bf16.mxu0 %vm216_vm1, %v3668_v1  ;;  %3533 = vmatprep.subr.bf16.mxu1 %v3681_v7  ;;  %v3673_v9 = vld [vmem:[%s5197_s0 + $0x20] sm:$0xff]   ;;  %v3675_v13 = vld [vmem:[%s5197_s0 + $0x30] sm:$0xff]   ;;  %v3676_v14 = vld [vmem:[%s5197_s0 + $0x38] sm:$0xff]  }
   0x5   :  { %3535 = vmatpush1.bf16.msra.mxu1 %v3679_v6  ;;  %v3686_v10 = vld [vmem:[%s5198_s3 + $0x20] ss:$16 sps:$4 sm:$0xff]   ;;  %v3688_v11 = vld [vmem:[%s5198_s3 + $0x24] ss:$16 sps:$4 sm:$0xff]   ;;  %v3678_v16 = vld [vmem:[%s5197_s0 + $0x48] sm:$0xff]  }
   0x6   :  { %3534 = vmatprep.subr.bf16.mxu1 %v3688_v11  ;;  %v3677_v15 = vld [vmem:[%s5197_s0 + $0x40] sm:$0xff]   ;;  %v3682_v17 = vld [vmem:[%s5197_s0 + $0x50] sm:$0xff]   ;;  %v3683_v18 = vld [vmem:[%s5197_s0 + $0x58] sm:$0xff]  }
   0x7   :  { %3460 = vmatpush3.bf16.msra.mxu0 %v218_v3  ;;  %v3684_v19 = vld [vmem:[%s5197_s0 + $0x60] sm:$0xff]   ;;  %v3685_v20 = vld [vmem:[%s5197_s0 + $0x68] sm:$0xff]   ;;  %v3689_v21 = vld [vmem:[%s5197_s0 + $0x70] sm:$0xff]  }
   0x8   :  { %548 = vmatprep.subr.bf16.mxu0 %v3681_v7  ;;  %v3690_v22 = vld [vmem:[%s5197_s0 + $0x78] sm:$0xff]   ;;  %v4298_v25 = vld [vmem:[%s5199_s2] ss:$0 sm:$0xff] }
   0x9   :  { %3536 = vmatpush1.bf16.msra.mxu1 %v3686_v10  ;;  %v3693_v24 = vld [vmem:[%s5198_s3 + $0xc] ss:$16 sps:$4 sm:$0xff]   ;;  %v3691_v39 = vld [vmem:[%s5198_s3 + $0x8] ss:$16 sps:$4 sm:$0xff]  }
   0xa   :  { %3462 = vmatmul.mubr.msk.bf16.vlgmr.msra.gmra.mrb[0].mxu0 %vm167_vm0, %v3670_v4  ;;  %v3696_v42 = vld [vmem:[%s5198_s3 + $0x2c] ss:$16 sps:$4 sm:$0xff]   ;;  %v3694_v50 = vld [vmem:[%s5198_s3 + $0x28] ss:$16 sps:$4 sm:$0xff]  }
   0xb   :  { %3465 = vmatprep.mubr.msk.bf16.mxu0 %vm167_vm0, %v3671_v5  ;;  %549 = vmatpush1.bf16.msra.mxu0 %v3679_v6 }
   0xc   :  { %550 = vmatprep.subr.bf16.mxu0 %v3688_v11 }
   0xf   :  { %551 = vmatpush1.bf16.msra.mxu0 %v3686_v10 }
  0x10   :  { %741 = vmatprep.subr.bf16.mxu0 %v3693_v24 }
  0x12   :  { %3466 = vmatmul.mubr.msk.bf16.gmra.mrb[4].mxu0 %vm167_vm0, %v3672_v8 }
  0x13   :  { %3469 = vmatprep.mubr.msk.bf16.mxu0 %vm167_vm0, %v3673_v9 }
  0x1a   :  { %3470 = vmatmul.mubr.msk.bf16.gmra.mrb[8].mxu0 %vm167_vm0, %v3674_v12 }
  0x1b   :  { %3473 = vmatprep.mubr.msk.bf16.mxu0 %vm167_vm0, %v3675_v13 }
  0x22   :  { %3474 = vmatmul.mubr.msk.bf16.gmra.mrb[12].mxu0 %vm167_vm0, %v3676_v14 }
  0x23   :  { %3477 = vmatprep.mubr.msk.bf16.mxu0 %vm167_vm0, %v3677_v15 }
  0x2a   :  { %3478 = vmatmul.mubr.msk.bf16.gmra.mrb[16].mxu0 %vm167_vm0, %v3678_v16 }
  0x2b   :  { %3481 = vmatprep.mubr.msk.bf16.mxu0 %vm167_vm0, %v3682_v17 }
  0x32   :  { %3482 = vmatmul.mubr.msk.bf16.gmra.mrb[20].mxu0 %vm167_vm0, %v3683_v18 }
  0x33   :  { %3485 = vmatprep.mubr.msk.bf16.mxu0 %vm167_vm0, %v3684_v19 }
  0x3a   :  { %3486 = vmatmul.mubr.msk.bf16.gmra.mrb[24].mxu0 %vm167_vm0, %v3685_v20 }
  0x3b   :  { %3489 = vmatprep.mubr.msk.bf16.mxu0 %vm167_vm0, %v3689_v21 }
  0x42   :  { %3490 = vmatmul.mubr.msk.bf16.gmra.mrb[28].mxu0 %vm167_vm0, %v3690_v22 }
  0x43   :  { %580 = vmatprep.mubr.bf16.mxu0 %v4149_v23 }
  0xdd   :  { %v3463_v26 = vpop.f32.mrb[0].mxu0 }
  0xde   :  { %v263_v27 = vadd.f32 %v3463_v26, %v4298_v25  ;;  %v254_v28 = vpop.f32.mrb[1].mxu0 }
  0xdf   :  { %v255_v29 = vadd.f32 %v4298_v25, %v254_v28  ;;  %v3464_v30 = vpop.f32.mrb[2].mxu0 }
  0xe0   :  { %v266_v31 = vadd.f32 %v3464_v30, %v4298_v25  ;;  %v257_v32 = vpop.f32.mrb[3].mxu0  ;;  %v383_v34 = vmax.f32 %v263_v27, 0.0 }
  0xe1   :  { %v258_v33 = vadd.f32 %v4298_v25, %v257_v32  ;;  %v381_v36 = vmax.f32 %v255_v29, 0.0 }
  0xe2   :  { %v384_v35 = vmax.f32 %v266_v31, 0.0 }
  0xe3   :  { %v382_v37 = vmax.f32 %v258_v33, 0.0 }
  0xe4   :  { %v4304_v38 = vpack.c.bf16 %v384_v35, %v383_v34 }
  0xe5   :  { %v4309_v40 = vpack.c.bf16 %v382_v37, %v381_v36  ;;  %v3467_v41 = vpop.f32.mrb[4].mxu0 }
  0xe6   :  { %v279_v43 = vadd.f32 %v3467_v41, %v4298_v25  ;;  %v270_v44 = vpop.f32.mrb[5].mxu0 }
  0xe7   :  { %3280 = vmatmul.mubr.msk.bf16.vlgmr.msra.gmra.mrb[32].mxu0 %vm499_vm2, %v4309_v40  ;;  %v271_v45 = vadd.f32 %v4298_v25, %v270_v44  ;;  %v3468_v46 = vpop.f32.mrb[6].mxu0 }
  0xe8   :  { %v387_v47 = vmax.f32 %v279_v43, 0.0  ;;  %590 = vmatprep.mubr.bf16.mxu0 %v4149_v23  ;;  %v282_v48 = vadd.f32 %v3468_v46, %v4298_v25  ;;  %v273_v49 = vpop.f32.mrb[7].mxu0  ;;  %742 = vmatpush1.bf16.msra.mxu0 %v3691_v39 }
  0xe9   :  { %v385_v51 = vmax.f32 %v271_v45, 0.0  ;;  %v274_v52 = vadd.f32 %v4298_v25, %v273_v49  ;;  %743 = vmatprep.subr.bf16.mxu0 %v3696_v42 }
  0xea   :  { %v388_v53 = vmax.f32 %v282_v48, 0.0 }
  0xeb   :  { %v386_v54 = vmax.f32 %v274_v52, 0.0 }
  0xec   :  { %v4324_v55 = vpack.c.bf16 %v388_v53, %v387_v47  ;;  %744 = vmatpush1.bf16.msra.mxu0 %v3694_v50 }
  0xed   :  { %v4326_v56 = vpack.c.bf16 %v386_v54, %v385_v51  ;;  %v3471_v57 = vpop.f32.mrb[8].mxu0 }
  0xee   :  { %v295_v58 = vadd.f32 %v3471_v57, %v4298_v25  ;;  %v286_v59 = vpop.f32.mrb[9].mxu0 }
  0xef   :  { %3281 = vmatmul.mubr.msk.bf16.gmra.mrb[36].mxu0 %vm499_vm2, %v4304_v38  ;;  %v287_v60 = vadd.f32 %v4298_v25, %v286_v59  ;;  %v3472_v61 = vpop.f32.mrb[10].mxu0 }
  0xf0   :  { %600 = vmatprep.mubr.bf16.mxu0 %v4149_v23  ;;  %v391_v62 = vmax.f32 %v295_v58, 0.0  ;;  %v298_v63 = vadd.f32 %v3472_v61, %v4298_v25  ;;  %v289_v0 = vpop.f32.mrb[11].mxu0 }
  0xf1   :  { %v389_v1 = vmax.f32 %v287_v60, 0.0  ;;  %v290_v2 = vadd.f32 %v4298_v25, %v289_v0 }
  0xf2   :  { %v392_v3 = vmax.f32 %v298_v63, 0.0 }
  0xf3   :  { %v390_v4 = vmax.f32 %v290_v2, 0.0 }
  0xf4   :  { %v4335_v5 = vpack.c.bf16 %v392_v3, %v391_v62 }
  0xf5   :  { %v4337_v6 = vpack.c.bf16 %v390_v4, %v389_v1  ;;  %v3475_v7 = vpop.f32.mrb[12].mxu0 }
  0xf6   :  { %v311_v8 = vadd.f32 %v3475_v7, %v4298_v25  ;;  %v302_v9 = vpop.f32.mrb[13].mxu0 }
  0xf7   :  { %3282 = vmatmul.mubr.msk.bf16.gmra.mrb[40].mxu0 %vm499_vm2, %v4326_v56  ;;  %v303_v10 = vadd.f32 %v4298_v25, %v302_v9  ;;  %v3476_v11 = vpop.f32.mrb[14].mxu0 }
  0xf8   :  { %610 = vmatprep.mubr.bf16.mxu0 %v4149_v23  ;;  %v395_v12 = vmax.f32 %v311_v8, 0.0  ;;  %v314_v13 = vadd.f32 %v3476_v11, %v4298_v25  ;;  %v305_v14 = vpop.f32.mrb[15].mxu0 }
  0xf9   :  { %v393_v15 = vmax.f32 %v303_v10, 0.0  ;;  %v306_v16 = vadd.f32 %v4298_v25, %v305_v14 }
  0xfa   :  { %v396_v17 = vmax.f32 %v314_v13, 0.0 }
  0xfb   :  { %v394_v18 = vmax.f32 %v306_v16, 0.0 }
  0xfc   :  { %v4346_v19 = vpack.c.bf16 %v396_v17, %v395_v12 }
  0xfd   :  { %v4348_v20 = vpack.c.bf16 %v394_v18, %v393_v15  ;;  %v3479_v21 = vpop.f32.mrb[16].mxu0 }
  0xfe   :  { %v327_v22 = vadd.f32 %v3479_v21, %v4298_v25  ;;  %v318_v24 = vpop.f32.mrb[17].mxu0 }
  0xff   :  { %3283 = vmatmul.mubr.msk.bf16.gmra.mrb[44].mxu0 %vm499_vm2, %v4324_v55  ;;  %v319_v26 = vadd.f32 %v4298_v25, %v318_v24  ;;  %v3480_v27 = vpop.f32.mrb[18].mxu0  ;;  %v4498_v24 = vld [vmem:[%s5201_s5] sm:$0xf] }
 0x100   :  { %620 = vmatprep.mubr.bf16.mxu0 %v4149_v23  ;;  %v399_v28 = vmax.f32 %v327_v22, 0.0  ;;  %v330_v29 = vadd.f32 %v3480_v27, %v4298_v25  ;;  %v321_v30 = vpop.f32.mrb[19].mxu0 }
 0x101   :  { %v397_v31 = vmax.f32 %v319_v26, 0.0  ;;  %v322_v32 = vadd.f32 %v4298_v25, %v321_v30 }
 0x102   :  { %v400_v33 = vmax.f32 %v330_v29, 0.0 }
 0x103   :  { %v398_v34 = vmax.f32 %v322_v32, 0.0 }
 0x104   :  { %v4357_v35 = vpack.c.bf16 %v400_v33, %v399_v28 }
 0x105   :  { %v4359_v36 = vpack.c.bf16 %v398_v34, %v397_v31  ;;  %v3483_v37 = vpop.f32.mrb[20].mxu0 }
 0x106   :  { %v343_v39 = vadd.f32 %v3483_v37, %v4298_v25  ;;  %v334_v41 = vpop.f32.mrb[21].mxu0 }
 0x107   :  { %3284 = vmatmul.mubr.msk.bf16.gmra.mrb[48].mxu0 %vm499_vm2, %v4337_v6  ;;  %3288 = vmatmul.mubr.msk.bf16.vlgmr.msra.gmra.mrb[0].mxu1 %vm499_vm2, %v4359_v36  ;;  %v335_v42 = vadd.f32 %v4298_v25, %v334_v41  ;;  %v3484_v43 = vpop.f32.mrb[22].mxu0 }
 0x108   :  { %630 = vmatprep.mubr.bf16.mxu0 %v4149_v23  ;;  %v403_v44 = vmax.f32 %v343_v39, 0.0  ;;  %v346_v45 = vadd.f32 %v3484_v43, %v4298_v25  ;;  %v337_v46 = vpop.f32.mrb[23].mxu0  ;;  %670 = vmatprep.mubr.bf16.mxu1 %v4149_v23 }
 0x109   :  { %v401_v47 = vmax.f32 %v335_v42, 0.0  ;;  %v338_v48 = vadd.f32 %v4298_v25, %v337_v46  ;;  %v4541_v46 = vld [vmem:[%s5200_s4 + $0x30] ss:$8 sps:$4 sm:$0xff]  }
 0x10a   :  { %v404_v49 = vmax.f32 %v346_v45, 0.0  ;;  %v4536_v45 = vld [vmem:[%s5200_s4 + $0x34] ss:$8 sps:$4 sm:$0xff]  }
 0x10b   :  { %v402_v50 = vmax.f32 %v338_v48, 0.0 }
 0x10c   :  { %v4371_v51 = vpack.c.bf16 %v404_v49, %v403_v44 }
 0x10d   :  { %v4373_v52 = vpack.c.bf16 %v402_v50, %v401_v47  ;;  %v3487_v53 = vpop.f32.mrb[24].mxu0 }
 0x10e   :  { %v359_v54 = vadd.f32 %v3487_v53, %v4298_v25  ;;  %v350_v57 = vpop.f32.mrb[25].mxu0 }
 0x10f   :  { %3285 = vmatmul.mubr.msk.bf16.gmra.mrb[52].mxu0 %vm499_vm2, %v4335_v5  ;;  %3289 = vmatmul.mubr.msk.bf16.gmra.mrb[4].mxu1 %vm499_vm2, %v4357_v35  ;;  %v351_v58 = vadd.f32 %v4298_v25, %v350_v57  ;;  %v3488_v59 = vpop.f32.mrb[26].mxu0 }
 0x110   :  { %640 = vmatprep.mubr.bf16.mxu0 %v4149_v23  ;;  %680 = vmatprep.mubr.bf16.mxu1 %v4149_v23  ;;  %v407_v60 = vmax.f32 %v359_v54, 0.0  ;;  %v362_v61 = vadd.f32 %v3488_v59, %v4298_v25  ;;  %v353_v62 = vpop.f32.mrb[27].mxu0 }
 0x111   :  { %v405_v63 = vmax.f32 %v351_v58, 0.0  ;;  %v354_v0 = vadd.f32 %v4298_v25, %v353_v62 }
 0x112   :  { %v408_v1 = vmax.f32 %v362_v61, 0.0 }
 0x113   :  { %v406_v2 = vmax.f32 %v354_v0, 0.0 }
 0x114   :  { %v4385_v3 = vpack.c.bf16 %v408_v1, %v407_v60 }
 0x115   :  { %v425_v4 = vpack.c.bf16 %v406_v2, %v405_v63  ;;  %v3491_v7 = vpop.f32.mrb[28].mxu0 }
 0x116   :  { %v375_v8 = vadd.f32 %v3491_v7, %v4298_v25  ;;  %v366_v9 = vpop.f32.mrb[29].mxu0 }
 0x117   :  { %3286 = vmatmul.mubr.msk.bf16.gmra.mrb[56].mxu0 %vm499_vm2, %v4348_v20  ;;  %3290 = vmatmul.mubr.msk.bf16.gmra.mrb[8].mxu1 %vm499_vm2, %v4373_v52  ;;  %v367_v10 = vadd.f32 %v4298_v25, %v366_v9  ;;  %v3492_v11 = vpop.f32.mrb[30].mxu0 }
 0x118   :  { %650 = vmatprep.mubr.bf16.mxu0 %v4149_v23  ;;  %690 = vmatprep.mubr.bf16.mxu1 %v4149_v23  ;;  %v411_v12 = vmax.f32 %v375_v8, 0.0  ;;  %v378_v13 = vadd.f32 %v3492_v11, %v4298_v25  ;;  %v369_v14 = vpop.f32.mrb[31].mxu0 }
 0x119   :  { %v409_v15 = vmax.f32 %v367_v10, 0.0  ;;  %v370_v16 = vadd.f32 %v4298_v25, %v369_v14  ;;  %v4451_v25 = vld [vmem:[%s5200_s4 + $0x4] ss:$8 sps:$4 sm:$0xff]  }
 0x11a   :  { %v412_v17 = vmax.f32 %v378_v13, 0.0  ;;  %1166 = vmatprep.subr.bf16.mxu1 %v4451_v25 }
 0x11b   :  { %v410_v18 = vmax.f32 %v370_v16, 0.0 }
 0x11c   :  { %v428_v21 = vpack.c.bf16 %v412_v17, %v411_v12 }
 0x11d   :  { %v427_v22 = vpack.c.bf16 %v410_v18, %v409_v15 }
 0x11f   :  { %3287 = vmatmul.mubr.msk.bf16.gmra.mrb[60].mxu0 %vm499_vm2, %v4346_v19  ;;  %3291 = vmatmul.mubr.msk.bf16.gmra.mrb[12].mxu1 %vm499_vm2, %v4371_v51 }
 0x120   :  { %773 = vmatprep.mubr.bf16.mxu0 %v4149_v23  ;;  %700 = vmatprep.mubr.bf16.mxu1 %v4149_v23 }
 0x127   :  { %3296 = vmatmul.mubr.msk.bf16.vlgmr.msra.gmra.mrb[64].mxu0 %vm499_vm2, %v4309_v40  ;;  %3292 = vmatmul.mubr.msk.bf16.gmra.mrb[16].mxu1 %vm499_vm2, %v425_v4  ;;  %v4464_v40 = vld [vmem:[%s5200_s4 + $0x14] ss:$8 sps:$4 sm:$0xff]  }
 0x128   :  { %783 = vmatprep.mubr.bf16.mxu0 %v4149_v23  ;;  %710 = vmatprep.mubr.bf16.mxu1 %v4149_v23 }
 0x12f   :  { %3297 = vmatmul.mubr.msk.bf16.gmra.mrb[68].mxu0 %vm499_vm2, %v4304_v38  ;;  %3293 = vmatmul.mubr.msk.bf16.gmra.mrb[20].mxu1 %vm499_vm2, %v4385_v3  ;;  %v4457_v38 = vld [vmem:[%s5200_s4] ss:$8 sps:$4 sm:$0xff]  }
 0x130   :  { %793 = vmatprep.mubr.bf16.mxu0 %v4149_v23  ;;  %720 = vmatprep.mubr.bf16.mxu1 %v4149_v23 }
 0x131   :  { %1167 = vmatpush1.bf16.msra.mxu1 %v4457_v38 }
 0x132   :  { %1168 = vmatprep.subr.bf16.mxu1 %v4464_v40 }
 0x137   :  { %3298 = vmatmul.mubr.msk.bf16.gmra.mrb[72].mxu0 %vm499_vm2, %v4326_v56  ;;  %3294 = vmatmul.mubr.msk.bf16.gmra.mrb[24].mxu1 %vm499_vm2, %v427_v22  ;;  %v4476_v56 = vld [vmem:[%s5200_s4 + $0x24] ss:$8 sps:$4 sm:$0xff]  }
 0x138   :  { %803 = vmatprep.mubr.bf16.mxu0 %v4149_v23  ;;  %730 = vmatprep.mubr.bf16.mxu1 %v4149_v23 }
 0x13f   :  { %3299 = vmatmul.mubr.msk.bf16.gmra.mrb[76].mxu0 %vm499_vm2, %v4324_v55  ;;  %3295 = vmatmul.mubr.msk.bf16.gmra.mrb[28].mxu1 %vm499_vm2, %v428_v21  ;;  %v4470_v55 = vld [vmem:[%s5200_s4 + $0x10] ss:$8 sps:$4 sm:$0xff]  }
 0x140   :  { %813 = vmatprep.mubr.bf16.mxu0 %v4149_v23  ;;  %1198 = vmatprep.mubr.bf16.mxu1 %v4149_v23 }
 0x141   :  { %1169 = vmatpush1.bf16.msra.mxu1 %v4470_v55 }
 0x142   :  { %1170 = vmatprep.subr.bf16.mxu1 %v4476_v56 }
 0x147   :  { %3300 = vmatmul.mubr.msk.bf16.gmra.mrb[80].mxu0 %vm499_vm2, %v4337_v6  ;;  %v439_v6 = vlaneseq }
 0x148   :  { %823 = vmatprep.mubr.bf16.mxu0 %v4149_v23 }
 0x14f   :  { %3301 = vmatmul.mubr.msk.bf16.gmra.mrb[84].mxu0 %vm499_vm2, %v4335_v5  ;;  %v4482_v5 = vld [vmem:[%s5200_s4 + $0x20] ss:$8 sps:$4 sm:$0xff]  }
 0x150   :  { %833 = vmatprep.mubr.bf16.mxu0 %v4149_v23  ;;  %1171 = vmatpush1.bf16.msra.mxu1 %v4482_v5 }
 0x151   :  { %1172 = vmatprep.subr.bf16.mxu1 %v4536_v45 }
 0x154   :  { %1173 = vmatpush1.bf16.msra.mxu1 %v4541_v46 }
 0x155   :  { %1292 = vmatprep.subr.bf16.mxu1 %v4451_v25 }
 0x157   :  { %3302 = vmatmul.mubr.msk.bf16.gmra.mrb[88].mxu0 %vm499_vm2, %v4348_v20 }
 0x158   :  { %843 = vmatprep.mubr.bf16.mxu0 %v4149_v23 }
 0x15f   :  { %3303 = vmatmul.mubr.msk.bf16.gmra.mrb[92].mxu0 %vm499_vm2, %v4346_v19  ;;  %v4492_v19 = vshrl.u32 %v439_v6, 7 }
 0x160   :  { %853 = vmatprep.mubr.bf16.mxu0 %v4149_v23 }
 0x161   :  { %v445_v20 = vsub.s32 1, %v4492_v19 }
 0x163   :  { %v4501_v26 = vrot.slane %v4498_v24, %v445_v20 }
 0x167   :  { %3304 = vmatmul.mubr.msk.bf16.gmra.mrb[96].mxu0 %vm499_vm2, %v4359_v36 }
 0x168   :  { %863 = vmatprep.mubr.bf16.mxu0 %v4149_v23 }
 0x16f   :  { %3305 = vmatmul.mubr.msk.bf16.gmra.mrb[100].mxu0 %vm499_vm2, %v4357_v35 }
 0x170   :  { %873 = vmatprep.mubr.bf16.mxu0 %v4149_v23 }
 0x177   :  { %3306 = vmatmul.mubr.msk.bf16.gmra.mrb[104].mxu0 %vm499_vm2, %v4373_v52 }
 0x178   :  { %883 = vmatprep.mubr.bf16.mxu0 %v4149_v23 }
 0x17f   :  { %3307 = vmatmul.mubr.msk.bf16.gmra.mrb[108].mxu0 %vm499_vm2, %v4371_v51 }
 0x180   :  { %893 = vmatprep.mubr.bf16.mxu0 %v4149_v23 }
 0x187   :  { %3308 = vmatmul.mubr.msk.bf16.gmra.mrb[112].mxu0 %vm499_vm2, %v425_v4 }
 0x188   :  { %903 = vmatprep.mubr.bf16.mxu0 %v4149_v23 }
 0x18f   :  { %3309 = vmatmul.mubr.msk.bf16.gmra.mrb[116].mxu0 %vm499_vm2, %v4385_v3 }
 0x190   :  { %913 = vmatprep.mubr.bf16.mxu0 %v4149_v23 }
 0x197   :  { %3310 = vmatmul.mubr.msk.bf16.gmra.mrb[120].mxu0 %vm499_vm2, %v427_v22 }
 0x198   :  { %923 = vmatprep.mubr.bf16.mxu0 %v4149_v23 }
 0x19f   :  { %3311 = vmatmul.mubr.msk.bf16.gmra.mrb[124].mxu0 %vm499_vm2, %v428_v21  ;;  %v441_v21 = vsub.s32 0, %v4492_v19 }
 0x1a1   :  { %v4588_v20 = vrot.slane %v4498_v24, %v441_v21 }
 0x1ba   :  { %v4503_v27 = vpop.f32.mrb[32].mxu0 }
 0x1bb   :  { %v584_v28 = vpop.f32.mrb[33].mxu0 }
 0x1bc   :  { %v4506_v29 = vadd.f32 %v584_v28, %v4501_v26  ;;  %v4508_v30 = vpop.f32.mrb[34].mxu0 }
 0x1bd   :  { %v588_v31 = vpop.f32.mrb[35].mxu0 }
 0x1be   :  { %3725 = vtanh.f32 %v4506_v29  ;;  %v4512_v32 = vadd.f32 %v588_v31, %v4501_v26 }
 0x1c0   :  { %3727 = vtanh.f32 %v4512_v32  ;;  %v3315_v21 = vmul.f32 -1.442695, %v4512_v32 }
 0x1c2   :  { %v4514_v33 = vpop.f32.mrb[36].mxu0 }
 0x1c3   :  { %v4517_v34 = vpop.f32.mrb[37].mxu0 }
 0x1c4   :  { %v4519_v35 = vpop.f32.mrb[38].mxu0 }
 0x1c5   :  { %v4521_v36 = vpop.f32.mrb[39].mxu0 }
 0x1c8   :  { %v3726_v37 = vpop.eup %3725 }
 0x1c9   :  { %1102 = vrot.lane.b32.xlu0 %v3726_v37, %s4150_s15  ;;  %v583_v37 = vadd.f32 %v4503_v27, %v4588_v20 }
 0x1ca   :  { %v4524_v39 = vpop.f32.mrb[40].mxu0  ;;  %v3728_v43 = vpop.eup %3727 }
 0x1cb   :  { %v4526_v41 = vpop.f32.mrb[41].mxu0 }
 0x1cc   :  { %v4528_v42 = vpop.f32.mrb[42].mxu0 }
 0x1cd   :  { %v4530_v44 = vpop.f32.mrb[43].mxu0  ;;  %1104 = vrot.lane.b32.xlu0 %v3728_v43, %s4150_s15 }
 0x1d2   :  { %v4545_v47 = vpop.f32.mrb[44].mxu0 }
 0x1d3   :  { %v4548_v48 = vpop.f32.mrb[45].mxu0 }
 0x1d4   :  { %v4550_v49 = vpop.f32.mrb[46].mxu0 }
 0x1d5   :  { %v4552_v50 = vpop.f32.mrb[47].mxu0 }
 0x1da   :  { %v4554_v51 = vpop.f32.mrb[48].mxu0 }
 0x1db   :  { %v4556_v52 = vpop.f32.mrb[49].mxu0 }
 0x1dc   :  { %v4558_v53 = vpop.f32.mrb[50].mxu0 }
 0x1dd   :  { %v4560_v54 = vpop.f32.mrb[51].mxu0 }
 0x1e2   :  { %v4562_v57 = vpop.f32.mrb[52].mxu0 }
 0x1e3   :  { %v4564_v58 = vpop.f32.mrb[53].mxu0 }
 0x1e4   :  { %v4566_v59 = vpop.f32.mrb[54].mxu0 }
 0x1e5   :  { %v4568_v60 = vpop.f32.mrb[55].mxu0 }
 0x1ea   :  { %v4570_v61 = vpop.f32.mrb[56].mxu0 }
 0x1eb   :  { %v4572_v62 = vpop.f32.mrb[57].mxu0 }
 0x1ec   :  { %v4574_v63 = vpop.f32.mrb[58].mxu0 }
 0x1ed   :  { %v4576_v0 = vpop.f32.mrb[59].mxu0 }
 0x1f2   :  { %v4578_v1 = vpop.f32.mrb[60].mxu0 }
 0x1f3   :  { %v4580_v2 = vpop.f32.mrb[61].mxu0 }
 0x1f4   :  { %v4582_v3 = vpop.f32.mrb[62].mxu0 }
 0x1f5   :  { %v4584_v4 = vpop.f32.mrb[63].mxu0 }
 0x1fa   :  { %v775_v7 = vpop.f32.mrb[64].mxu0 }
 0x1fb   :  { %v777_v8 = vpop.f32.mrb[65].mxu0 }
 0x1fc   :  { %v779_v9 = vpop.f32.mrb[66].mxu0  ;;  %v3312_v8 = vmul.f32 -1.442695, %v583_v37 }
 0x1fd   :  { %v781_v10 = vpop.f32.mrb[67].mxu0 }
 0x1fe   :  { %v587_v10 = vadd.f32 %v4508_v30, %v4588_v20  ;;  %3729 = vpow2.f32 %v3312_v8 }
 0x202   :  { %v785_v11 = vpop.f32.mrb[68].mxu0 }
 0x203   :  { %v787_v12 = vpop.f32.mrb[69].mxu0 }
 0x204   :  { %v789_v13 = vpop.f32.mrb[70].mxu0  ;;  %v3314_v12 = vmul.f32 -1.442695, %v587_v10 }
 0x205   :  { %v791_v14 = vpop.f32.mrb[71].mxu0 }
 0x206   :  { %3731 = vpow2.f32 %v3314_v12 }
 0x20a   :  { %v795_v15 = vpop.f32.mrb[72].mxu0 }
 0x20b   :  { %v797_v16 = vpop.f32.mrb[73].mxu0 }
 0x20c   :  { %v799_v17 = vpop.f32.mrb[74].mxu0  ;;  %v3313_v16 = vmul.f32 -1.442695, %v4506_v29 }
 0x20d   :  { %v801_v18 = vpop.f32.mrb[75].mxu0  ;;  %v3730_v17 = vpop.eup %3729 }
 0x20e   :  { %3733 = vpow2.f32 %v3313_v16 }
 0x20f   :  { %3735 = vpow2.f32 %v3315_v21 }
 0x210   :  { %v3732_v30 = vpop.eup %3731 }
 0x212   :  { %v805_v22 = vpop.f32.mrb[76].mxu0 }
 0x213   :  { %v807_v6 = vpop.f32.mrb[77].mxu0 }
 0x214   :  { %v809_v28 = vpop.f32.mrb[78].mxu0  ;;  %v1086_v6 = vadd.f32 1.0, %v3730_v17 }
 0x215   :  { %v811_v31 = vpop.f32.mrb[79].mxu0 }
 0x216   :  { %3737 = vrcp.f32 %v1086_v6  ;;  %v1088_v31 = vadd.f32 1.0, %v3732_v30 }
 0x218   :  { %3739 = vrcp.f32 %v1088_v31 }
 0x21a   :  { %v815_v43 = vpop.f32.mrb[80].mxu0 }
 0x21b   :  { %v817_v7 = vpop.f32.mrb[81].mxu0 }
 0x21c   :  { %v819_v9 = vpop.f32.mrb[82].mxu0 }
 0x21d   :  { %v821_v11 = vpop.f32.mrb[83].mxu0  ;;  %v3734_v9 = vpop.eup %3733 }
 0x21e   :  { %v1087_v29 = vadd.f32 1.0, %v3734_v9  ;;  %v3736_v10 = vpop.eup %3735 }
 0x21f   :  { %v1089_v16 = vadd.f32 1.0, %v3736_v10 }
 0x220   :  { %v3738_v12 = vpop.eup %3737  ;;  %3741 = vrcp.f32 %v1087_v29 }
 0x222   :  { %v825_v13 = vpop.f32.mrb[84].mxu0  ;;  %v3740_v17 = vpop.eup %3739 }
 0x223   :  { %v827_v14 = vpop.f32.mrb[85].mxu0 }
 0x224   :  { %v829_v15 = vpop.f32.mrb[86].mxu0 }
 0x225   :  { %v831_v24 = vpop.f32.mrb[87].mxu0 }
 0x22a   :  { %v835_v18 = vpop.f32.mrb[88].mxu0  ;;  %v3742_v30 = vpop.eup %3741 }
 0x22b   :  { %v837_v27 = vpop.f32.mrb[89].mxu0 }
 0x22c   :  { %v839_v22 = vpop.f32.mrb[90].mxu0 }
 0x22d   :  { %v841_v28 = vpop.f32.mrb[91].mxu0 }
 0x232   :  { %v845_v37 = vpop.f32.mrb[92].mxu0 }
 0x233   :  { %v847_v43 = vpop.f32.mrb[93].mxu0 }
 0x234   :  { %v849_v7 = vpop.f32.mrb[94].mxu0 }
 0x235   :  { %v851_v8 = vpop.f32.mrb[95].mxu0 }
 0x23a   :  { %v855_v11 = vpop.f32.mrb[96].mxu0 }
 0x23b   :  { %v1103_v13 = vpop.permute.xlu0 %1102  ;;  %v857_v14 = vpop.f32.mrb[97].mxu0 }
 0x23c   :  { %v1108_v32 = vmul.f32 %v3738_v12, %v1103_v13  ;;  %v859_v15 = vpop.f32.mrb[98].mxu0 }
 0x23d   :  { %v861_v24 = vpop.f32.mrb[99].mxu0 }
 0x23e   :  { %3743 = vtanh.f32 %v1108_v32  ;;  %1241 = vrot.lane.b32.xlu0 %v1108_v32, %s4150_s15 }
 0x23f   :  { %v1105_v18 = vpop.permute.xlu0 %1104  ;;  %3745 = vrcp.f32 %v1089_v16 }
 0x240   :  { %v4597_v27 = vmul.f32 %v3740_v17, %v1105_v18 }
 0x242   :  { %v865_v21 = vpop.f32.mrb[100].mxu0  ;;  %3747 = vtanh.f32 %v4597_v27 }
 0x243   :  { %v867_v22 = vpop.f32.mrb[101].mxu0 }
 0x244   :  { %v869_v6 = vpop.f32.mrb[102].mxu0 }
 0x245   :  { %v871_v28 = vpop.f32.mrb[103].mxu0 }
 0x248   :  { %v3744_v31 = vpop.eup %3743 }
 0x249   :  { %v1112_v37 = vmul.f32 %v3744_v31, %v3742_v30  ;;  %v3746_v8 = vpop.eup %3745 }
 0x24a   :  { %v875_v43 = vpop.f32.mrb[104].mxu0 }
 0x24b   :  { %v877_v7 = vpop.f32.mrb[105].mxu0 }
 0x24c   :  { %v879_v9 = vpop.f32.mrb[106].mxu0  ;;  %v3748_v29 = vpop.eup %3747 }
 0x24d   :  { %v881_v10 = vpop.f32.mrb[107].mxu0  ;;  %v1113_v11 = vmul.f32 %v3748_v29, %v3746_v8 }
 0x24e   :  { %v593_v10 = vadd.f32 %v4514_v33, %v4588_v20 }
 0x24f   :  { %v1121_v12 = vpack.c.bf16 %v1113_v11, %v1112_v37  ;;  %v595_v11 = vadd.f32 %v4517_v34, %v4501_v26 }
 0x251   :  { %3324 = vmatmul.mubr.msk.bf16.vlgmr.msra.gmra.mrb[32].mxu1 %vm1162_vm3, %v1121_v12 }
 0x252   :  { %v885_v13 = vpop.f32.mrb[108].mxu0  ;;  %1293 = vmatpush1.bf16.msra.mxu1 %v4457_v38  ;;  %1324 = vmatprep.mubr.bf16.mxu1 %v4149_v23 }
 0x253   :  { %v887_v14 = vpop.f32.mrb[109].mxu0  ;;  %1294 = vmatprep.subr.bf16.mxu1 %v4464_v40  ;;  %v597_v13 = vadd.f32 %v4519_v35, %v4588_v20 }
 0x254   :  { %v889_v32 = vpop.f32.mrb[110].mxu0 }
 0x255   :  { %v891_v15 = vpop.f32.mrb[111].mxu0 }
 0x256   :  { %1295 = vmatpush1.bf16.msra.mxu1 %v4470_v55  ;;  %v599_v15 = vadd.f32 %v4521_v36, %v4501_v26 }
 0x257   :  { %1296 = vmatprep.subr.bf16.mxu1 %v4476_v56 }
 0x25a   :  { %v895_v24 = vpop.f32.mrb[112].mxu0  ;;  %1297 = vmatpush1.bf16.msra.mxu1 %v4482_v5 }
 0x25b   :  { %v897_v16 = vpop.f32.mrb[113].mxu0  ;;  %1298 = vmatprep.subr.bf16.mxu1 %v4536_v45 }
 0x25c   :  { %v899_v17 = vpop.f32.mrb[114].mxu0 }
 0x25d   :  { %v901_v18 = vpop.f32.mrb[115].mxu0 }
 0x25e   :  { %1299 = vmatpush1.bf16.msra.mxu1 %v4541_v46 }
 0x25f   :  { %1410 = vmatprep.subr.bf16.mxu1 %v4451_v25 }
 0x262   :  { %v905_v21 = vpop.f32.mrb[116].mxu0 }
 0x263   :  { %v907_v22 = vpop.f32.mrb[117].mxu0 }
 0x264   :  { %v909_v6 = vpop.f32.mrb[118].mxu0 }
 0x265   :  { %v911_v28 = vpop.f32.mrb[119].mxu0 }
 0x26a   :  { %v915_v30 = vpop.f32.mrb[120].mxu0 }
 0x26b   :  { %v917_v31 = vpop.f32.mrb[121].mxu0 }
 0x26c   :  { %v919_v37 = vpop.f32.mrb[122].mxu0 }
 0x26d   :  { %v921_v43 = vpop.f32.mrb[123].mxu0 }
 0x272   :  { %v4610_v7 = vpop.f32.mrb[124].mxu0 }
 0x273   :  { %v4612_v8 = vpop.f32.mrb[125].mxu0 }
 0x274   :  { %v4614_v9 = vpop.f32.mrb[126].mxu0 }
 0x275   :  { %v4616_v29 = vpop.f32.mrb[127].mxu0 }
 0x324   :  { %v1200_v12 = vpop.f32.mrb[32].mxu1 }
 0x325   :  { %v1209_v14 = vadd.f32 %v1200_v12, %v593_v10  ;;  %v1202_v32 = vpop.f32.mrb[33].mxu1 }
 0x326   :  { %v1210_v24 = vadd.f32 %v1202_v32, %v595_v11  ;;  %v1204_v16 = vpop.f32.mrb[34].mxu1 }
 0x327   :  { %v1211_v17 = vadd.f32 %v1204_v16, %v597_v13  ;;  %v1206_v18 = vpop.f32.mrb[35].mxu1  ;;  %v3325_v35 = vmul.f32 -1.442695, %v1209_v14 }
 0x328   :  { %3749 = vtanh.f32 %v1210_v24  ;;  %v1212_v21 = vadd.f32 %v1206_v18, %v599_v15 }
 0x329   :  { %v3327_v22 = vmul.f32 -1.442695, %v1211_v17 }
 0x32a   :  { %3751 = vtanh.f32 %v1212_v21 }
 0x32b   :  { %3753 = vpow2.f32 %v3325_v35  ;;  %v3326_v35 = vmul.f32 -1.442695, %v1210_v24  ;;  %v603_v24 = vadd.f32 %v4524_v39, %v4588_v20 }
 0x32c   :  { %3755 = vpow2.f32 %v3327_v22  ;;  %v3328_v22 = vmul.f32 -1.442695, %v1212_v21  ;;  %v605_v21 = vadd.f32 %v4526_v41, %v4501_v26 }
 0x332   :  { %v3750_v33 = vpop.eup %3749 }
 0x333   :  { %1251 = vrot.lane.b32.xlu1 %v3750_v33, %s4150_s15 }
 0x334   :  { %v3752_v34 = vpop.eup %3751 }
 0x335   :  { %v3754_v36 = vpop.eup %3753 }
 0x336   :  { %v1225_v6 = vadd.f32 1.0, %v3754_v36  ;;  %v3756_v28 = vpop.eup %3755 }
 0x337   :  { %1253 = vrot.lane.b32.xlu1 %v3752_v34, %s4150_s15  ;;  %v1227_v30 = vadd.f32 1.0, %v3756_v28 }
 0x338   :  { %3757 = vrcp.f32 %v1225_v6 }
 0x339   :  { %3759 = vrcp.f32 %v1227_v30 }
 0x33b   :  { %1243 = vrot.lane.b32.xlu1 %v4597_v27, %s4150_s15  ;;  %v1242_v27 = vpop.permute.xlu0 %1241 }
 0x342   :  { %v3758_v31 = vpop.eup %3757 }
 0x343   :  { %v3760_v10 = vpop.eup %3759  ;;  %v1247_v13 = vmul.f32 %v3758_v31, %v1242_v27 }
 0x3a5   :  { %v1252_v37 = vpop.permute.xlu1 %1251 }
 0x3a6   :  { %v1257_v43 = vmul.f32 %v3758_v31, %v1252_v37 }
 0x3a8   :  { %1261 = vrot.lane.b32.xlu0 %v1257_v43, %s4150_s15 }
 0x3a9   :  { %v1254_v11 = vpop.permute.xlu1 %1253 }
 0x3aa   :  { %v1258_v12 = vmul.f32 %v3760_v10, %v1254_v11 }
 0x3ac   :  { %1263 = vrot.lane.b32.xlu1 %v1258_v12, %s4150_s15 }
 0x3ad   :  { %v1244_v32 = vpop.permute.xlu1 %1243 }
 0x3ae   :  { %v1248_v16 = vmul.f32 %v3760_v10, %v1244_v32 }
 0x41a   :  { %v1262_v14 = vpop.permute.xlu0 %1261 }
 0x41b   :  { %v4632_v15 = vadd.f32 %v1262_v14, %v1247_v13  ;;  %v607_v14 = vadd.f32 %v4528_v42, %v4588_v20 }
 0x41d   :  { %3761 = vtanh.f32 %v4632_v15 }
 0x41e   :  { %v1264_v17 = vpop.permute.xlu1 %1263 }
 0x41f   :  { %v4635_v18 = vadd.f32 %v1264_v17, %v1248_v16  ;;  %v609_v17 = vadd.f32 %v4530_v44, %v4501_v26 }
 0x421   :  { %3763 = vtanh.f32 %v4635_v18 }
 0x422   :  { %3765 = vpow2.f32 %v3326_v35 }
 0x423   :  { %3767 = vpow2.f32 %v3328_v22 }
 0x427   :  { %v3762_v33 = vpop.eup %3761 }
 0x428   :  { %1273 = vrot.lane.b32.xlu0 %v3762_v33, %s4150_s15 }
 0x42b   :  { %v3764_v34 = vpop.eup %3763 }
 0x42c   :  { %1275 = vrot.lane.b32.xlu1 %v3764_v34, %s4150_s15  ;;  %v3766_v36 = vpop.eup %3765 }
 0x42d   :  { %v3768_v6 = vpop.eup %3767  ;;  %v1226_v28 = vadd.f32 1.0, %v3766_v36 }
 0x42e   :  { %v1228_v30 = vadd.f32 1.0, %v3768_v6 }
 0x42f   :  { %3769 = vrcp.f32 %v1226_v28 }
 0x430   :  { %3771 = vrcp.f32 %v1228_v30 }
 0x439   :  { %v3770_v37 = vpop.eup %3769 }
 0x43a   :  { %v3772_v43 = vpop.eup %3771 }
 0x49a   :  { %v1274_v31 = vpop.permute.xlu0 %1273 }
 0x49b   :  { %v1279_v11 = vmul.f32 %v3770_v37, %v1274_v31 }
 0x49e   :  { %v1276_v10 = vpop.permute.xlu1 %1275 }
 0x49f   :  { %v1280_v12 = vmul.f32 %v3772_v43, %v1276_v10 }
 0x4a1   :  { %v1288_v27 = vpack.c.bf16 %v1280_v12, %v1279_v11 }
 0x4a3   :  { %3329 = vmatmul.mubr.msk.bf16.vlgmr.msra.gmra.mrb[36].mxu1 %vm1162_vm3, %v1288_v27 }
 0x4a4   :  { %1411 = vmatpush1.bf16.msra.mxu1 %v4457_v38  ;;  %1442 = vmatprep.mubr.bf16.mxu1 %v4149_v23 }
 0x4a5   :  { %1412 = vmatprep.subr.bf16.mxu1 %v4464_v40 }
 0x4a8   :  { %1413 = vmatpush1.bf16.msra.mxu1 %v4470_v55 }
 0x4a9   :  { %1414 = vmatprep.subr.bf16.mxu1 %v4476_v56 }
 0x4ac   :  { %1415 = vmatpush1.bf16.msra.mxu1 %v4482_v5 }
 0x4ad   :  { %1416 = vmatprep.subr.bf16.mxu1 %v4536_v45 }
 0x4b0   :  { %1417 = vmatpush1.bf16.msra.mxu1 %v4541_v46 }
 0x4b1   :  { %1528 = vmatprep.subr.bf16.mxu1 %v4451_v25 }
 0x576   :  { %v1326_v13 = vpop.f32.mrb[36].mxu1 }
 0x577   :  { %v1335_v32 = vadd.f32 %v1326_v13, %v603_v24  ;;  %v1328_v16 = vpop.f32.mrb[37].mxu1 }
 0x578   :  { %v1336_v33 = vadd.f32 %v1328_v16, %v605_v21  ;;  %v1330_v34 = vpop.f32.mrb[38].mxu1 }
 0x579   :  { %v1337_v35 = vadd.f32 %v1330_v34, %v607_v14  ;;  %v1332_v22 = vpop.f32.mrb[39].mxu1  ;;  %v3330_v6 = vmul.f32 -1.442695, %v1335_v32 }
 0x57a   :  { %3773 = vtanh.f32 %v1336_v33  ;;  %v1338_v36 = vadd.f32 %v1332_v22, %v609_v17 }
 0x57b   :  { %v3332_v42 = vmul.f32 -1.442695, %v1337_v35  ;;  %v3331_v35 = vmul.f32 -1.442695, %v1336_v33  ;;  %v613_v33 = vadd.f32 %v4545_v47, %v4588_v20 }
 0x57c   :  { %3775 = vtanh.f32 %v1338_v36 }
 0x57d   :  { %3777 = vpow2.f32 %v3330_v6 }
 0x57e   :  { %3779 = vpow2.f32 %v3332_v42 }
 0x584   :  { %v3774_v39 = vpop.eup %3773 }
 0x585   :  { %1369 = vrot.lane.b32.xlu0 %v3774_v39, %s4150_s15 }
 0x586   :  { %v3776_v41 = vpop.eup %3775 }
 0x587   :  { %1371 = vrot.lane.b32.xlu1 %v3776_v41, %s4150_s15  ;;  %v3778_v28 = vpop.eup %3777 }
 0x588   :  { %v1351_v30 = vadd.f32 1.0, %v3778_v28  ;;  %v3780_v44 = vpop.eup %3779 }
 0x589   :  { %v1353_v31 = vadd.f32 1.0, %v3780_v44 }
 0x58a   :  { %3781 = vrcp.f32 %v1351_v30 }
 0x58b   :  { %3783 = vrcp.f32 %v1353_v31 }
 0x594   :  { %v3782_v37 = vpop.eup %3781 }
 0x595   :  { %v3784_v11 = vpop.eup %3783  ;;  %v1365_v24 = vmul.f32 %v3782_v37, %v4632_v15  ;;  %v3333_v15 = vmul.f32 -1.442695, %v1338_v36  ;;  %v615_v36 = vadd.f32 %v4548_v48, %v4501_v26 }
 0x596   :  { %v1366_v14 = vmul.f32 %v3784_v11, %v4635_v18 }
 0x5f7   :  { %v1370_v43 = vpop.permute.xlu0 %1369 }
 0x5f8   :  { %v1375_v10 = vmul.f32 %v3782_v37, %v1370_v43 }
 0x5f9   :  { %v1372_v12 = vpop.permute.xlu1 %1371 }
 0x5fa   :  { %1379 = vrot.lane.b32.xlu0 %v1375_v10, %s4150_s15  ;;  %v1376_v27 = vmul.f32 %v3784_v11, %v1372_v12  ;;  %v617_v10 = vadd.f32 %v4550_v49, %v4588_v20 }
 0x5fc   :  { %1381 = vrot.lane.b32.xlu1 %v1376_v27, %s4150_s15  ;;  %v619_v27 = vadd.f32 %v4552_v50, %v4501_v26 }
 0x66c   :  { %v1380_v21 = vpop.permute.xlu0 %1379 }
 0x66d   :  { %v4663_v13 = vadd.f32 %v1380_v21, %v1365_v24 }
 0x66e   :  { %v1382_v32 = vpop.permute.xlu1 %1381 }
 0x66f   :  { %3785 = vtanh.f32 %v4663_v13  ;;  %v4667_v16 = vadd.f32 %v1382_v32, %v1366_v14 }
 0x671   :  { %3787 = vtanh.f32 %v4667_v16 }
 0x672   :  { %3789 = vpow2.f32 %v3331_v35 }
 0x673   :  { %3791 = vpow2.f32 %v3333_v15 }
 0x679   :  { %v3786_v17 = vpop.eup %3785 }
 0x67a   :  { %1391 = vrot.lane.b32.xlu0 %v3786_v17, %s4150_s15 }
 0x67b   :  { %v3788_v34 = vpop.eup %3787 }
 0x67c   :  { %1393 = vrot.lane.b32.xlu1 %v3788_v34, %s4150_s15  ;;  %v3790_v22 = vpop.eup %3789 }
 0x67d   :  { %v3792_v39 = vpop.eup %3791  ;;  %v1352_v41 = vadd.f32 1.0, %v3790_v22 }
 0x67e   :  { %v1354_v6 = vadd.f32 1.0, %v3792_v39 }
 0x67f   :  { %3793 = vrcp.f32 %v1352_v41 }
 0x680   :  { %3795 = vrcp.f32 %v1354_v6 }
 0x689   :  { %v3794_v42 = vpop.eup %3793 }
 0x68a   :  { %v3796_v28 = vpop.eup %3795 }
 0x6ec   :  { %v1392_v18 = vpop.permute.xlu0 %1391 }
 0x6ed   :  { %v1397_v44 = vmul.f32 %v3794_v42, %v1392_v18 }
 0x6ee   :  { %v1394_v30 = vpop.permute.xlu1 %1393 }
 0x6ef   :  { %v1398_v31 = vmul.f32 %v3796_v28, %v1394_v30 }
 0x6f1   :  { %v1406_v37 = vpack.c.bf16 %v1398_v31, %v1397_v44 }
 0x6f3   :  { %3334 = vmatmul.mubr.msk.bf16.vlgmr.msra.gmra.mrb[40].mxu1 %vm1162_vm3, %v1406_v37 }
 0x6f4   :  { %1529 = vmatpush1.bf16.msra.mxu1 %v4457_v38  ;;  %1560 = vmatprep.mubr.bf16.mxu1 %v4149_v23 }
 0x6f5   :  { %1530 = vmatprep.subr.bf16.mxu1 %v4464_v40 }
 0x6f8   :  { %1531 = vmatpush1.bf16.msra.mxu1 %v4470_v55 }
 0x6f9   :  { %1532 = vmatprep.subr.bf16.mxu1 %v4476_v56 }
 0x6fc   :  { %1533 = vmatpush1.bf16.msra.mxu1 %v4482_v5 }
 0x6fd   :  { %1534 = vmatprep.subr.bf16.mxu1 %v4536_v45 }
 0x700   :  { %1535 = vmatpush1.bf16.msra.mxu1 %v4541_v46 }
 0x701   :  { %1646 = vmatprep.subr.bf16.mxu1 %v4451_v25 }
 0x7c6   :  { %v1444_v43 = vpop.f32.mrb[40].mxu1 }
 0x7c7   :  { %v1453_v11 = vadd.f32 %v1444_v43, %v613_v33  ;;  %v1446_v12 = vpop.f32.mrb[41].mxu1 }
 0x7c8   :  { %v1454_v24 = vadd.f32 %v1446_v12, %v615_v36  ;;  %v1448_v21 = vpop.f32.mrb[42].mxu1 }
 0x7c9   :  { %v1455_v14 = vadd.f32 %v1448_v21, %v617_v10  ;;  %v1450_v32 = vpop.f32.mrb[43].mxu1  ;;  %v3335_v34 = vmul.f32 -1.442695, %v1453_v11 }
 0x7ca   :  { %3797 = vtanh.f32 %v1454_v24  ;;  %v1456_v17 = vadd.f32 %v1450_v32, %v619_v27  ;;  %v3336_v11 = vmul.f32 -1.442695, %v1454_v24  ;;  %v623_v24 = vadd.f32 %v4554_v51, %v4588_v20 }
 0x7cb   :  { %v3337_v49 = vmul.f32 -1.442695, %v1455_v14 }
 0x7cc   :  { %3799 = vtanh.f32 %v1456_v17 }
 0x7cd   :  { %3801 = vpow2.f32 %v3335_v34 }
 0x7ce   :  { %3803 = vpow2.f32 %v3337_v49 }
 0x7d4   :  { %v3798_v47 = vpop.eup %3797 }
 0x7d5   :  { %1487 = vrot.lane.b32.xlu0 %v3798_v47, %s4150_s15 }
 0x7d6   :  { %v3800_v48 = vpop.eup %3799 }
 0x7d7   :  { %1489 = vrot.lane.b32.xlu1 %v3800_v48, %s4150_s15  ;;  %v3802_v35 = vpop.eup %3801 }
 0x7d8   :  { %v1469_v15 = vadd.f32 1.0, %v3802_v35  ;;  %v3804_v50 = vpop.eup %3803 }
 0x7d9   :  { %v1471_v22 = vadd.f32 1.0, %v3804_v50  ;;  %v627_v50 = vadd.f32 %v4558_v53, %v4588_v20 }
 0x7da   :  { %3805 = vrcp.f32 %v1469_v15 }
 0x7db   :  { %3807 = vrcp.f32 %v1471_v22 }
 0x7e4   :  { %v3806_v39 = vpop.eup %3805 }
 0x7e5   :  { %v3808_v18 = vpop.eup %3807  ;;  %v1483_v30 = vmul.f32 %v3806_v39, %v4663_v13  ;;  %v3338_v13 = vmul.f32 -1.442695, %v1456_v17  ;;  %v625_v17 = vadd.f32 %v4556_v52, %v4501_v26 }
 0x7e6   :  { %v1484_v37 = vmul.f32 %v3808_v18, %v4667_v16 }
 0x847   :  { %v1488_v41 = vpop.permute.xlu0 %1487 }
 0x848   :  { %v1493_v6 = vmul.f32 %v3806_v39, %v1488_v41  ;;  %v629_v41 = vadd.f32 %v4560_v54, %v4501_v26 }
 0x849   :  { %v1490_v42 = vpop.permute.xlu1 %1489 }
 0x84a   :  { %1497 = vrot.lane.b32.xlu0 %v1493_v6, %s4150_s15  ;;  %v1494_v28 = vmul.f32 %v3808_v18, %v1490_v42 }
 0x84c   :  { %1499 = vrot.lane.b32.xlu1 %v1494_v28, %s4150_s15 }
 0x8bc   :  { %v1498_v44 = vpop.permute.xlu0 %1497 }
 0x8bd   :  { %v4695_v31 = vadd.f32 %v1498_v44, %v1483_v30 }
 0x8be   :  { %v1500_v33 = vpop.permute.xlu1 %1499 }
 0x8bf   :  { %3809 = vtanh.f32 %v4695_v31  ;;  %v4699_v36 = vadd.f32 %v1500_v33, %v1484_v37 }
 0x8c1   :  { %3811 = vtanh.f32 %v4699_v36 }
 0x8c2   :  { %3813 = vpow2.f32 %v3336_v11 }
 0x8c3   :  { %3815 = vpow2.f32 %v3338_v13 }
 0x8c9   :  { %v3810_v43 = vpop.eup %3809 }
 0x8ca   :  { %1509 = vrot.lane.b32.xlu0 %v3810_v43, %s4150_s15 }
 0x8cb   :  { %v3812_v10 = vpop.eup %3811 }
 0x8cc   :  { %1511 = vrot.lane.b32.xlu1 %v3812_v10, %s4150_s15  ;;  %v3814_v12 = vpop.eup %3813 }
 0x8cd   :  { %v3816_v27 = vpop.eup %3815  ;;  %v1470_v21 = vadd.f32 1.0, %v3814_v12 }
 0x8ce   :  { %v1472_v14 = vadd.f32 1.0, %v3816_v27 }
 0x8cf   :  { %3817 = vrcp.f32 %v1470_v21 }
 0x8d0   :  { %3819 = vrcp.f32 %v1472_v14 }
 0x8d9   :  { %v3818_v32 = vpop.eup %3817 }
 0x8da   :  { %v3820_v47 = vpop.eup %3819 }
 0x93c   :  { %v1510_v16 = vpop.permute.xlu0 %1509 }
 0x93d   :  { %v1515_v34 = vmul.f32 %v3818_v32, %v1510_v16 }
 0x93e   :  { %v1512_v48 = vpop.permute.xlu1 %1511 }
 0x93f   :  { %v1516_v49 = vmul.f32 %v3820_v47, %v1512_v48 }
 0x941   :  { %v1524_v35 = vpack.c.bf16 %v1516_v49, %v1515_v34 }
 0x943   :  { %3339 = vmatmul.mubr.msk.bf16.vlgmr.msra.gmra.mrb[44].mxu1 %vm1162_vm3, %v1524_v35 }
 0x944   :  { %1647 = vmatpush1.bf16.msra.mxu1 %v4457_v38  ;;  %1678 = vmatprep.mubr.bf16.mxu1 %v4149_v23 }
 0x945   :  { %1648 = vmatprep.subr.bf16.mxu1 %v4464_v40 }
 0x948   :  { %1649 = vmatpush1.bf16.msra.mxu1 %v4470_v55 }
 0x949   :  { %1650 = vmatprep.subr.bf16.mxu1 %v4476_v56 }
 0x94c   :  { %1651 = vmatpush1.bf16.msra.mxu1 %v4482_v5 }
 0x94d   :  { %1652 = vmatprep.subr.bf16.mxu1 %v4536_v45 }
 0x950   :  { %1653 = vmatpush1.bf16.msra.mxu1 %v4541_v46 }
 0x951   :  { %1764 = vmatprep.subr.bf16.mxu1 %v4451_v25 }
 0xa16   :  { %v1562_v15 = vpop.f32.mrb[44].mxu1 }
 0xa17   :  { %v1571_v22 = vadd.f32 %v1562_v15, %v623_v24  ;;  %v1564_v39 = vpop.f32.mrb[45].mxu1 }
 0xa18   :  { %v1572_v6 = vadd.f32 %v1564_v39, %v625_v17  ;;  %v1566_v18 = vpop.f32.mrb[46].mxu1 }
 0xa19   :  { %v1573_v42 = vadd.f32 %v1566_v18, %v627_v50  ;;  %v1568_v28 = vpop.f32.mrb[47].mxu1  ;;  %v3340_v44 = vmul.f32 -1.442695, %v1571_v22 }
 0xa1a   :  { %3821 = vtanh.f32 %v1572_v6  ;;  %v1574_v30 = vadd.f32 %v1568_v28, %v629_v41  ;;  %v3341_v24 = vmul.f32 -1.442695, %v1572_v6  ;;  %v633_v6 = vadd.f32 %v4562_v57, %v4588_v20 }
 0xa1b   :  { %v3342_v53 = vmul.f32 -1.442695, %v1573_v42 }
 0xa1c   :  { %3823 = vtanh.f32 %v1574_v30 }
 0xa1d   :  { %3825 = vpow2.f32 %v3340_v44 }
 0xa1e   :  { %3827 = vpow2.f32 %v3342_v53 }
 0xa24   :  { %v3822_v51 = vpop.eup %3821 }
 0xa25   :  { %1605 = vrot.lane.b32.xlu0 %v3822_v51, %s4150_s15 }
 0xa26   :  { %v3824_v52 = vpop.eup %3823 }
 0xa27   :  { %1607 = vrot.lane.b32.xlu1 %v3824_v52, %s4150_s15  ;;  %v3826_v37 = vpop.eup %3825 }
 0xa28   :  { %v1587_v33 = vadd.f32 1.0, %v3826_v37  ;;  %v3828_v54 = vpop.eup %3827 }
 0xa29   :  { %v1589_v43 = vadd.f32 1.0, %v3828_v54 }
 0xa2a   :  { %3829 = vrcp.f32 %v1587_v33 }
 0xa2b   :  { %3831 = vrcp.f32 %v1589_v43 }
 0xa34   :  { %v3830_v10 = vpop.eup %3829 }
 0xa35   :  { %v3832_v12 = vpop.eup %3831  ;;  %v1601_v14 = vmul.f32 %v3830_v10, %v4695_v31  ;;  %v3343_v31 = vmul.f32 -1.442695, %v1574_v30 }
 0xa36   :  { %v1602_v47 = vmul.f32 %v3832_v12, %v4699_v36 }
 0xa97   :  { %v1606_v11 = vpop.permute.xlu0 %1605 }
 0xa98   :  { %v1611_v13 = vmul.f32 %v3830_v10, %v1606_v11 }
 0xa99   :  { %v1608_v27 = vpop.permute.xlu1 %1607 }
 0xa9a   :  { %1615 = vrot.lane.b32.xlu0 %v1611_v13, %s4150_s15  ;;  %v1612_v21 = vmul.f32 %v3832_v12, %v1608_v27 }
 0xa9c   :  { %1617 = vrot.lane.b32.xlu1 %v1612_v21, %s4150_s15 }
 0xb0c   :  { %v1616_v16 = vpop.permute.xlu0 %1615 }
 0xb0d   :  { %v4727_v32 = vadd.f32 %v1616_v16, %v1601_v14 }
 0xb0e   :  { %v1618_v48 = vpop.permute.xlu1 %1617 }
 0xb0f   :  { %3833 = vtanh.f32 %v4727_v32  ;;  %v4731_v34 = vadd.f32 %v1618_v48, %v1602_v47 }
 0xb11   :  { %3835 = vtanh.f32 %v4731_v34 }
 0xb12   :  { %3837 = vpow2.f32 %v3341_v24 }
 0xb13   :  { %3839 = vpow2.f32 %v3343_v31 }
 0xb19   :  { %v3834_v49 = vpop.eup %3833 }
 0xb1a   :  { %1627 = vrot.lane.b32.xlu0 %v3834_v49, %s4150_s15 }
 0xb1b   :  { %v3836_v35 = vpop.eup %3835 }
 0xb1c   :  { %1629 = vrot.lane.b32.xlu1 %v3836_v35, %s4150_s15  ;;  %v3838_v17 = vpop.eup %3837 }
 0xb1d   :  { %v3840_v15 = vpop.eup %3839  ;;  %v1588_v50 = vadd.f32 1.0, %v3838_v17 }
 0xb1e   :  { %v1590_v22 = vadd.f32 1.0, %v3840_v15 }
 0xb1f   :  { %3841 = vrcp.f32 %v1588_v50 }
 0xb20   :  { %3843 = vrcp.f32 %v1590_v22 }
 0xb29   :  { %v3842_v39 = vpop.eup %3841 }
 0xb2a   :  { %v3844_v41 = vpop.eup %3843 }
 0xb8c   :  { %v1628_v36 = vpop.permute.xlu0 %1627 }
 0xb8d   :  { %v1633_v42 = vmul.f32 %v3842_v39, %v1628_v36 }
 0xb8e   :  { %v1630_v18 = vpop.permute.xlu1 %1629 }
 0xb8f   :  { %v1634_v28 = vmul.f32 %v3844_v41, %v1630_v18 }
 0xb91   :  { %v1642_v51 = vpack.c.bf16 %v1634_v28, %v1633_v42 }
 0xb93   :  { %3344 = vmatmul.mubr.msk.bf16.vlgmr.msra.gmra.mrb[48].mxu1 %vm1162_vm3, %v1642_v51  ;;  %v4772_v51 = vld [vmem:[%s5200_s4] ss:$8 sps:$4 sm:$0xff]  }
 0xb94   :  { %1765 = vmatpush1.bf16.msra.mxu1 %v4457_v38  ;;  %1796 = vmatprep.mubr.bf16.mxu1 %v4149_v23  ;;  %v635_v38 = vadd.f32 %v4564_v58, %v4501_v26 }
 0xb95   :  { %1766 = vmatprep.subr.bf16.mxu1 %v4464_v40  ;;  %v637_v40 = vadd.f32 %v4566_v59, %v4588_v20 }
 0xb98   :  { %1767 = vmatpush1.bf16.msra.mxu1 %v4470_v55 }
 0xb99   :  { %1768 = vmatprep.subr.bf16.mxu1 %v4476_v56 }
 0xb9c   :  { %1769 = vmatpush1.bf16.msra.mxu1 %v4482_v5  ;;  %v639_v5 = vadd.f32 %v4568_v60, %v4501_v26 }
 0xb9d   :  { %1770 = vmatprep.subr.bf16.mxu1 %v4536_v45 }
 0xba0   :  { %1771 = vmatpush1.bf16.msra.mxu1 %v4541_v46 }
 0xba1   :  { %1882 = vmatprep.subr.bf16.mxu1 %v4451_v25 }
 0xc66   :  { %v1680_v30 = vpop.f32.mrb[48].mxu1 }
 0xc67   :  { %v1689_v55 = vadd.f32 %v1680_v30, %v633_v6  ;;  %v1682_v56 = vpop.f32.mrb[49].mxu1  ;;  %v4779_v6 = vld [vmem:[%s5200_s4 + $0x14] ss:$8 sps:$4 sm:$0xff]   ;;  %v4791_v30 = vld [vmem:[%s5200_s4 + $0x24] ss:$8 sps:$4 sm:$0xff]  }
 0xc68   :  { %v1690_v45 = vadd.f32 %v1682_v56, %v635_v38  ;;  %v1684_v52 = vpop.f32.mrb[50].mxu1  ;;  %v4785_v38 = vld [vmem:[%s5200_s4 + $0x10] ss:$8 sps:$4 sm:$0xff]  }
 0xc69   :  { %v1691_v46 = vadd.f32 %v1684_v52, %v637_v40  ;;  %v1686_v44 = vpop.f32.mrb[51].mxu1  ;;  %v3345_v53 = vmul.f32 -1.442695, %v1689_v55  ;;  %v4797_v40 = vld [vmem:[%s5200_s4 + $0x20] ss:$8 sps:$4 sm:$0xff]   ;;  %v645_v52 = vadd.f32 %v4572_v62, %v4501_v26 }
 0xc6a   :  { %3845 = vtanh.f32 %v1690_v45  ;;  %v1692_v25 = vadd.f32 %v1686_v44, %v639_v5  ;;  %v3346_v31 = vmul.f32 -1.442695, %v1690_v45  ;;  %v4803_v55 = vld [vmem:[%s5200_s4 + $0x34] ss:$8 sps:$4 sm:$0xff]   ;;  %v4809_v56 = vld [vmem:[%s5200_s4 + $0x30] ss:$8 sps:$4 sm:$0xff]   ;;  %v643_v45 = vadd.f32 %v4570_v61, %v4588_v20 }
 0xc6b   :  { %v3347_v59 = vmul.f32 -1.442695, %v1691_v46  ;;  %v4815_v5 = vld [vmem:[%s5200_s4 + $0x4] ss:$8 sps:$4 sm:$0xff]   ;;  %v647_v44 = vadd.f32 %v4574_v63, %v4588_v20 }
 0xc6c   :  { %3847 = vtanh.f32 %v1692_v25 }
 0xc6d   :  { %3849 = vpow2.f32 %v3345_v53 }
 0xc6e   :  { %3851 = vpow2.f32 %v3347_v59 }
 0xc74   :  { %v3846_v57 = vpop.eup %3845 }
 0xc75   :  { %1723 = vrot.lane.b32.xlu0 %v3846_v57, %s4150_s15 }
 0xc76   :  { %v3848_v58 = vpop.eup %3847 }
 0xc77   :  { %1725 = vrot.lane.b32.xlu1 %v3848_v58, %s4150_s15  ;;  %v3850_v37 = vpop.eup %3849  ;;  %v649_v58 = vadd.f32 %v4576_v0, %v4501_v26 }
 0xc78   :  { %v1705_v33 = vadd.f32 1.0, %v3850_v37  ;;  %v3852_v60 = vpop.eup %3851 }
 0xc79   :  { %v1707_v54 = vadd.f32 1.0, %v3852_v60 }
 0xc7a   :  { %3853 = vrcp.f32 %v1705_v33 }
 0xc7b   :  { %3855 = vrcp.f32 %v1707_v54 }
 0xc84   :  { %v3854_v43 = vpop.eup %3853 }
 0xc85   :  { %v3856_v13 = vpop.eup %3855  ;;  %v1719_v21 = vmul.f32 %v3854_v43, %v4727_v32  ;;  %v3348_v32 = vmul.f32 -1.442695, %v1692_v25 }
 0xc86   :  { %v1720_v47 = vmul.f32 %v3856_v13, %v4731_v34 }
 0xce7   :  { %v1724_v10 = vpop.permute.xlu0 %1723 }
 0xce8   :  { %v1729_v11 = vmul.f32 %v3854_v43, %v1724_v10 }
 0xce9   :  { %v1726_v12 = vpop.permute.xlu1 %1725 }
 0xcea   :  { %1733 = vrot.lane.b32.xlu0 %v1729_v11, %s4150_s15  ;;  %v1730_v27 = vmul.f32 %v3856_v13, %v1726_v12 }
 0xcec   :  { %1735 = vrot.lane.b32.xlu1 %v1730_v27, %s4150_s15 }
 0xd5c   :  { %v1734_v14 = vpop.permute.xlu0 %1733 }
 0xd5d   :  { %v4759_v16 = vadd.f32 %v1734_v14, %v1719_v21 }
 0xd5e   :  { %v1736_v48 = vpop.permute.xlu1 %1735 }
 0xd5f   :  { %3857 = vtanh.f32 %v4759_v16  ;;  %v4763_v49 = vadd.f32 %v1736_v48, %v1720_v47 }
 0xd61   :  { %3859 = vtanh.f32 %v4763_v49 }
 0xd62   :  { %3861 = vpow2.f32 %v3346_v31 }
 0xd63   :  { %3863 = vpow2.f32 %v3348_v32 }
 0xd69   :  { %v3858_v35 = vpop.eup %3857 }
 0xd6a   :  { %1745 = vrot.lane.b32.xlu0 %v3858_v35, %s4150_s15 }
 0xd6b   :  { %v3860_v24 = vpop.eup %3859 }
 0xd6c   :  { %1747 = vrot.lane.b32.xlu1 %v3860_v24, %s4150_s15  ;;  %v3862_v17 = vpop.eup %3861 }
 0xd6d   :  { %v3864_v15 = vpop.eup %3863  ;;  %v1706_v50 = vadd.f32 1.0, %v3862_v17 }
 0xd6e   :  { %v1708_v22 = vadd.f32 1.0, %v3864_v15 }
 0xd6f   :  { %3865 = vrcp.f32 %v1706_v50 }
 0xd70   :  { %3867 = vrcp.f32 %v1708_v22 }
 0xd79   :  { %v3866_v36 = vpop.eup %3865 }
 0xd7a   :  { %v3868_v39 = vpop.eup %3867 }
 0xddc   :  { %v1746_v34 = vpop.permute.xlu0 %1745 }
 0xddd   :  { %v1751_v18 = vmul.f32 %v3866_v36, %v1746_v34 }
 0xdde   :  { %v1748_v41 = vpop.permute.xlu1 %1747 }
 0xddf   :  { %v1752_v42 = vmul.f32 %v3868_v39, %v1748_v41 }
 0xde1   :  { %v1760_v28 = vpack.c.bf16 %v1752_v42, %v1751_v18 }
 0xde3   :  { %3349 = vmatmul.mubr.msk.bf16.vlgmr.msra.gmra.mrb[52].mxu1 %vm1162_vm3, %v1760_v28 }
 0xde4   :  { %1883 = vmatpush1.bf16.msra.mxu1 %v4772_v51  ;;  %1914 = vmatprep.mubr.bf16.mxu1 %v4149_v23 }
 0xde5   :  { %1884 = vmatprep.subr.bf16.mxu1 %v4779_v6 }
 0xde8   :  { %1885 = vmatpush1.bf16.msra.mxu1 %v4785_v38 }
 0xde9   :  { %1886 = vmatprep.subr.bf16.mxu1 %v4791_v30 }
 0xdec   :  { %1887 = vmatpush1.bf16.msra.mxu1 %v4797_v40 }
 0xded   :  { %1888 = vmatprep.subr.bf16.mxu1 %v4803_v55 }
 0xdf0   :  { %1889 = vmatpush1.bf16.msra.mxu1 %v4809_v56 }
 0xdf1   :  { %2000 = vmatprep.subr.bf16.mxu1 %v4815_v5 }
 0xeb6   :  { %v1798_v46 = vpop.f32.mrb[52].mxu1 }
 0xeb7   :  { %v1807_v25 = vadd.f32 %v1798_v46, %v643_v45  ;;  %v1800_v57 = vpop.f32.mrb[53].mxu1 }
 0xeb8   :  { %v1808_v53 = vadd.f32 %v1800_v57, %v645_v52  ;;  %v1802_v59 = vpop.f32.mrb[54].mxu1 }
 0xeb9   :  { %v1809_v37 = vadd.f32 %v1802_v59, %v647_v44  ;;  %v1804_v33 = vpop.f32.mrb[55].mxu1  ;;  %v3350_v54 = vmul.f32 -1.442695, %v1807_v25  ;;  %v653_v44 = vadd.f32 %v4578_v1, %v4588_v20  ;;  %v655_v25 = vadd.f32 %v4580_v2, %v4501_v26 }
 0xeba   :  { %3869 = vtanh.f32 %v1808_v53  ;;  %v1810_v60 = vadd.f32 %v1804_v33, %v649_v58  ;;  %v3351_v22 = vmul.f32 -1.442695, %v1808_v53  ;;  %v657_v58 = vadd.f32 %v4582_v3, %v4588_v20 }
 0xebb   :  { %v3352_v63 = vmul.f32 -1.442695, %v1809_v37  ;;  %v659_v37 = vadd.f32 %v4584_v4, %v4501_v26 }
 0xebc   :  { %3871 = vtanh.f32 %v1810_v60 }
 0xebd   :  { %3873 = vpow2.f32 %v3350_v54 }
 0xebe   :  { %3875 = vpow2.f32 %v3352_v63 }
 0xec4   :  { %v3870_v61 = vpop.eup %3869 }
 0xec5   :  { %1841 = vrot.lane.b32.xlu0 %v3870_v61, %s4150_s15 }
 0xec6   :  { %v3872_v62 = vpop.eup %3871 }
 0xec7   :  { %1843 = vrot.lane.b32.xlu1 %v3872_v62, %s4150_s15  ;;  %v3874_v43 = vpop.eup %3873 }
 0xec8   :  { %v1823_v10 = vadd.f32 1.0, %v3874_v43  ;;  %v3876_v0 = vpop.eup %3875 }
 0xec9   :  { %v1825_v11 = vadd.f32 1.0, %v3876_v0 }
 0xeca   :  { %3877 = vrcp.f32 %v1823_v10 }
 0xecb   :  { %3879 = vrcp.f32 %v1825_v11 }
 0xed4   :  { %v3878_v13 = vpop.eup %3877 }
 0xed5   :  { %v3880_v21 = vpop.eup %3879  ;;  %v1837_v48 = vmul.f32 %v3878_v13, %v4759_v16  ;;  %v3353_v16 = vmul.f32 -1.442695, %v1810_v60 }
 0xed6   :  { %v1838_v31 = vmul.f32 %v3880_v21, %v4763_v49 }
 0xf37   :  { %v1842_v12 = vpop.permute.xlu0 %1841 }
 0xf38   :  { %v1847_v27 = vmul.f32 %v3878_v13, %v1842_v12 }
 0xf39   :  { %v1844_v14 = vpop.permute.xlu1 %1843 }
 0xf3a   :  { %1851 = vrot.lane.b32.xlu0 %v1847_v27, %s4150_s15  ;;  %v1848_v47 = vmul.f32 %v3880_v21, %v1844_v14 }
 0xf3c   :  { %1853 = vrot.lane.b32.xlu1 %v1848_v47, %s4150_s15 }
 0xfac   :  { %v1852_v35 = vpop.permute.xlu0 %1851 }
 0xfad   :  { %v4831_v24 = vadd.f32 %v1852_v35, %v1837_v48 }
 0xfae   :  { %v1854_v32 = vpop.permute.xlu1 %1853 }
 0xfaf   :  { %3881 = vtanh.f32 %v4831_v24  ;;  %v4835_v17 = vadd.f32 %v1854_v32, %v1838_v31 }
 0xfb1   :  { %3883 = vtanh.f32 %v4835_v17 }
 0xfb2   :  { %3885 = vpow2.f32 %v3351_v22 }
 0xfb3   :  { %3887 = vpow2.f32 %v3353_v16 }
 0xfb9   :  { %v3882_v15 = vpop.eup %3881 }
 0xfba   :  { %1863 = vrot.lane.b32.xlu0 %v3882_v15, %s4150_s15 }
 0xfbb   :  { %v3884_v50 = vpop.eup %3883 }
 0xfbc   :  { %1865 = vrot.lane.b32.xlu1 %v3884_v50, %s4150_s15  ;;  %v3886_v34 = vpop.eup %3885 }
 0xfbd   :  { %v3888_v36 = vpop.eup %3887  ;;  %v1824_v39 = vadd.f32 1.0, %v3886_v34 }
 0xfbe   :  { %v1826_v41 = vadd.f32 1.0, %v3888_v36 }
 0xfbf   :  { %3889 = vrcp.f32 %v1824_v39 }
 0xfc0   :  { %3891 = vrcp.f32 %v1826_v41 }
 0xfc9   :  { %v3890_v18 = vpop.eup %3889 }
 0xfca   :  { %v3892_v42 = vpop.eup %3891 }
0x102c   :  { %v1864_v49 = vpop.permute.xlu0 %1863 }
0x102d   :  { %v1869_v45 = vmul.f32 %v3890_v18, %v1864_v49 }
0x102e   :  { %v1866_v28 = vpop.permute.xlu1 %1865 }
0x102f   :  { %v1870_v52 = vmul.f32 %v3892_v42, %v1866_v28 }
0x1031   :  { %v1878_v46 = vpack.c.bf16 %v1870_v52, %v1869_v45 }
0x1033   :  { %3354 = vmatmul.mubr.msk.bf16.vlgmr.msra.gmra.mrb[56].mxu1 %vm1162_vm3, %v1878_v46 }
0x1034   :  { %2001 = vmatpush1.bf16.msra.mxu1 %v4772_v51  ;;  %2032 = vmatprep.mubr.bf16.mxu1 %v4149_v23 }
0x1035   :  { %2002 = vmatprep.subr.bf16.mxu1 %v4779_v6 }
0x1038   :  { %2003 = vmatpush1.bf16.msra.mxu1 %v4785_v38 }
0x1039   :  { %2004 = vmatprep.subr.bf16.mxu1 %v4791_v30 }
0x103c   :  { %2005 = vmatpush1.bf16.msra.mxu1 %v4797_v40 }
0x103d   :  { %2006 = vmatprep.subr.bf16.mxu1 %v4803_v55 }
0x1040   :  { %2007 = vmatpush1.bf16.msra.mxu1 %v4809_v56 }
0x1041   :  { %2118 = vmatprep.subr.bf16.mxu1 %v4815_v5 }
0x1106   :  { %v1916_v57 = vpop.f32.mrb[56].mxu1 }
0x1107   :  { %v1925_v53 = vadd.f32 %v1916_v57, %v653_v44  ;;  %v1918_v59 = vpop.f32.mrb[57].mxu1 }
0x1108   :  { %v1926_v33 = vadd.f32 %v1918_v59, %v655_v25  ;;  %v1920_v60 = vpop.f32.mrb[58].mxu1 }
0x1109   :  { %v1927_v61 = vadd.f32 %v1920_v60, %v657_v58  ;;  %v1922_v62 = vpop.f32.mrb[59].mxu1  ;;  %v3355_v63 = vmul.f32 -1.442695, %v1925_v53 }
0x110a   :  { %3893 = vtanh.f32 %v1926_v33  ;;  %v1928_v54 = vadd.f32 %v1922_v62, %v659_v37  ;;  %v3356_v16 = vmul.f32 -1.442695, %v1926_v33 }
0x110b   :  { %v3357_v3 = vmul.f32 -1.442695, %v1927_v61 }
0x110c   :  { %3895 = vtanh.f32 %v1928_v54 }
0x110d   :  { %3897 = vpow2.f32 %v3355_v63 }
0x110e   :  { %3899 = vpow2.f32 %v3357_v3 }
0x1114   :  { %v3894_v1 = vpop.eup %3893 }
0x1115   :  { %1959 = vrot.lane.b32.xlu0 %v3894_v1, %s4150_s15 }
0x1116   :  { %v3896_v2 = vpop.eup %3895 }
0x1117   :  { %1961 = vrot.lane.b32.xlu1 %v3896_v2, %s4150_s15  ;;  %v3898_v43 = vpop.eup %3897 }
0x1118   :  { %v1941_v10 = vadd.f32 1.0, %v3898_v43  ;;  %v3900_v4 = vpop.eup %3899 }
0x1119   :  { %v1943_v0 = vadd.f32 1.0, %v3900_v4 }
0x111a   :  { %3901 = vrcp.f32 %v1941_v10 }
0x111b   :  { %3903 = vrcp.f32 %v1943_v0 }
0x1124   :  { %v3902_v11 = vpop.eup %3901 }
0x1125   :  { %v3904_v27 = vpop.eup %3903  ;;  %v1955_v47 = vmul.f32 %v3902_v11, %v4831_v24  ;;  %v3358_v24 = vmul.f32 -1.442695, %v1928_v54 }
0x1126   :  { %v1956_v31 = vmul.f32 %v3904_v27, %v4835_v17 }
0x1187   :  { %v1960_v13 = vpop.permute.xlu0 %1959 }
0x1188   :  { %v1965_v12 = vmul.f32 %v3902_v11, %v1960_v13 }
0x1189   :  { %v1962_v21 = vpop.permute.xlu1 %1961 }
0x118a   :  { %1969 = vrot.lane.b32.xlu0 %v1965_v12, %s4150_s15  ;;  %v1966_v14 = vmul.f32 %v3904_v27, %v1962_v21 }
0x118c   :  { %1971 = vrot.lane.b32.xlu1 %v1966_v14, %s4150_s15 }
0x11fc   :  { %v1970_v48 = vpop.permute.xlu0 %1969 }
0x11fd   :  { %v4863_v35 = vadd.f32 %v1970_v48, %v1955_v47 }
0x11fe   :  { %v1972_v32 = vpop.permute.xlu1 %1971 }
0x11ff   :  { %3905 = vtanh.f32 %v4863_v35  ;;  %v4867_v15 = vadd.f32 %v1972_v32, %v1956_v31 }
0x1201   :  { %3907 = vtanh.f32 %v4867_v15 }
0x1202   :  { %3909 = vpow2.f32 %v3356_v16 }
0x1203   :  { %3911 = vpow2.f32 %v3358_v24 }
0x1209   :  { %v3906_v50 = vpop.eup %3905 }
0x120a   :  { %1981 = vrot.lane.b32.xlu0 %v3906_v50, %s4150_s15 }
0x120b   :  { %v3908_v22 = vpop.eup %3907 }
0x120c   :  { %1983 = vrot.lane.b32.xlu1 %v3908_v22, %s4150_s15  ;;  %v3910_v34 = vpop.eup %3909 }
0x120d   :  { %v3912_v36 = vpop.eup %3911  ;;  %v1942_v39 = vadd.f32 1.0, %v3910_v34 }
0x120e   :  { %v1944_v41 = vadd.f32 1.0, %v3912_v36 }
0x120f   :  { %3913 = vrcp.f32 %v1942_v39 }
0x1210   :  { %3915 = vrcp.f32 %v1944_v41 }
0x1219   :  { %v3914_v49 = vpop.eup %3913 }
0x121a   :  { %v3916_v18 = vpop.eup %3915 }
0x127c   :  { %v1982_v17 = vpop.permute.xlu0 %1981 }
0x127d   :  { %v1987_v28 = vmul.f32 %v3914_v49, %v1982_v17 }
0x127e   :  { %v1984_v42 = vpop.permute.xlu1 %1983 }
0x127f   :  { %v1988_v45 = vmul.f32 %v3916_v18, %v1984_v42 }
0x1281   :  { %v1996_v52 = vpack.c.bf16 %v1988_v45, %v1987_v28 }
0x1283   :  { %3359 = vmatmul.mubr.msk.bf16.vlgmr.msra.gmra.mrb[0].mxu1 %vm1162_vm3, %v1996_v52 }
0x1284   :  { %2119 = vmatpush1.bf16.msra.mxu1 %v4772_v51  ;;  %2150 = vmatprep.mubr.bf16.mxu1 %v4149_v23 }
0x1285   :  { %2120 = vmatprep.subr.bf16.mxu1 %v4779_v6 }
0x1288   :  { %2121 = vmatpush1.bf16.msra.mxu1 %v4785_v38 }
0x1289   :  { %2122 = vmatprep.subr.bf16.mxu1 %v4791_v30 }
0x128c   :  { %2123 = vmatpush1.bf16.msra.mxu1 %v4797_v40 }
0x128d   :  { %2124 = vmatprep.subr.bf16.mxu1 %v4803_v55 }
0x1290   :  { %2125 = vmatpush1.bf16.msra.mxu1 %v4809_v56 }
0x1291   :  { %2236 = vmatprep.subr.bf16.mxu1 %v4815_v5 }
0x1356   :  { %v2034_v46 = vpop.f32.mrb[0].mxu1 }
0x1357   :  { %v2036_v44 = vpop.f32.mrb[1].mxu1  ;;  %v3593_v33 = vadd.f32 %v2034_v46, %v4588_v20 }
0x1358   :  { %v3594_v25 = vadd.f32 %v2036_v44, %v4501_v26  ;;  %v2038_v57 = vpop.f32.mrb[2].mxu1 }
0x1359   :  { %v2040_v58 = vpop.f32.mrb[3].mxu1  ;;  %v3360_v60 = vmul.f32 -1.442695, %v3593_v33  ;;  %v3595_v61 = vadd.f32 %v2038_v57, %v4588_v20 }
0x135a   :  { %3917 = vtanh.f32 %v3594_v25  ;;  %v3596_v53 = vadd.f32 %v2040_v58, %v4501_v26  ;;  %v3361_v32 = vmul.f32 -1.442695, %v3594_v25 }
0x135b   :  { %v3362_v62 = vmul.f32 -1.442695, %v3595_v61 }
0x135c   :  { %3919 = vtanh.f32 %v3596_v53 }
0x135d   :  { %3921 = vpow2.f32 %v3360_v60 }
0x135e   :  { %3923 = vpow2.f32 %v3362_v62 }
0x1364   :  { %v3918_v59 = vpop.eup %3917 }
0x1365   :  { %2077 = vrot.lane.b32.xlu0 %v3918_v59, %s4150_s15 }
0x1366   :  { %v3920_v37 = vpop.eup %3919 }
0x1367   :  { %2079 = vrot.lane.b32.xlu1 %v3920_v37, %s4150_s15  ;;  %v3922_v54 = vpop.eup %3921 }
0x1368   :  { %v2059_v1 = vadd.f32 1.0, %v3922_v54  ;;  %v3924_v2 = vpop.eup %3923 }
0x1369   :  { %v2061_v63 = vadd.f32 1.0, %v3924_v2 }
0x136a   :  { %3925 = vrcp.f32 %v2059_v1 }
0x136b   :  { %3927 = vrcp.f32 %v2061_v63 }
0x1374   :  { %v3926_v3 = vpop.eup %3925 }
0x1375   :  { %v3928_v4 = vpop.eup %3927  ;;  %v2073_v13 = vmul.f32 %v3926_v3, %v4863_v35  ;;  %v3363_v35 = vmul.f32 -1.442695, %v3596_v53 }
0x1376   :  { %v2074_v21 = vmul.f32 %v3928_v4, %v4867_v15 }
0x13d7   :  { %v2078_v43 = vpop.permute.xlu0 %2077 }
0x13d8   :  { %v2083_v10 = vmul.f32 %v3926_v3, %v2078_v43 }
0x13d9   :  { %v2080_v0 = vpop.permute.xlu1 %2079 }
0x13da   :  { %2087 = vrot.lane.b32.xlu0 %v2083_v10, %s4150_s15  ;;  %v2084_v11 = vmul.f32 %v3928_v4, %v2080_v0 }
0x13dc   :  { %2089 = vrot.lane.b32.xlu1 %v2084_v11, %s4150_s15 }
0x144c   :  { %v2088_v12 = vpop.permute.xlu0 %2087 }
0x144d   :  { %v4891_v27 = vadd.f32 %v2088_v12, %v2073_v13 }
0x144e   :  { %v2090_v14 = vpop.permute.xlu1 %2089 }
0x144f   :  { %3929 = vtanh.f32 %v4891_v27  ;;  %v4895_v47 = vadd.f32 %v2090_v14, %v2074_v21 }
0x1451   :  { %3931 = vtanh.f32 %v4895_v47 }
0x1452   :  { %3933 = vpow2.f32 %v3361_v32 }
0x1453   :  { %3935 = vpow2.f32 %v3363_v35 }
0x1459   :  { %v3930_v48 = vpop.eup %3929 }
0x145a   :  { %2099 = vrot.lane.b32.xlu0 %v3930_v48, %s4150_s15 }
0x145b   :  { %v3932_v31 = vpop.eup %3931 }
0x145c   :  { %2101 = vrot.lane.b32.xlu1 %v3932_v31, %s4150_s15  ;;  %v3934_v50 = vpop.eup %3933 }
0x145d   :  { %v3936_v22 = vpop.eup %3935  ;;  %v2060_v16 = vadd.f32 1.0, %v3934_v50 }
0x145e   :  { %v2062_v24 = vadd.f32 1.0, %v3936_v22 }
0x145f   :  { %3937 = vrcp.f32 %v2060_v16 }
0x1460   :  { %3939 = vrcp.f32 %v2062_v24 }
0x1469   :  { %v3938_v34 = vpop.eup %3937 }
0x146a   :  { %v3940_v36 = vpop.eup %3939 }
0x14cc   :  { %v2100_v15 = vpop.permute.xlu0 %2099 }
0x14cd   :  { %v2105_v41 = vmul.f32 %v3938_v34, %v2100_v15 }
0x14ce   :  { %v2102_v39 = vpop.permute.xlu1 %2101 }
0x14cf   :  { %v2106_v17 = vmul.f32 %v3940_v36, %v2102_v39 }
0x14d1   :  { %v2114_v49 = vpack.c.bf16 %v2106_v17, %v2105_v41 }
0x14d3   :  { %3364 = vmatmul.mubr.msk.bf16.vlgmr.msra.gmra.mrb[4].mxu1 %vm1162_vm3, %v2114_v49 }
0x14d4   :  { %2237 = vmatpush1.bf16.msra.mxu1 %v4772_v51  ;;  %2268 = vmatprep.mubr.bf16.mxu1 %v4149_v23 }
0x14d5   :  { %2238 = vmatprep.subr.bf16.mxu1 %v4779_v6 }
0x14d8   :  { %2239 = vmatpush1.bf16.msra.mxu1 %v4785_v38 }
0x14d9   :  { %2240 = vmatprep.subr.bf16.mxu1 %v4791_v30 }
0x14dc   :  { %2241 = vmatpush1.bf16.msra.mxu1 %v4797_v40 }
0x14dd   :  { %2242 = vmatprep.subr.bf16.mxu1 %v4803_v55 }
0x14e0   :  { %2243 = vmatpush1.bf16.msra.mxu1 %v4809_v56 }
0x14e1   :  { %2354 = vmatprep.subr.bf16.mxu1 %v4815_v5 }
0x15a6   :  { %v2152_v18 = vpop.f32.mrb[4].mxu1 }
0x15a7   :  { %v2154_v42 = vpop.f32.mrb[5].mxu1  ;;  %v3597_v57 = vadd.f32 %v2152_v18, %v4588_v20 }
0x15a8   :  { %v3598_v28 = vadd.f32 %v2154_v42, %v4501_v26  ;;  %v2156_v45 = vpop.f32.mrb[6].mxu1 }
0x15a9   :  { %v2158_v52 = vpop.f32.mrb[7].mxu1  ;;  %v3365_v58 = vmul.f32 -1.442695, %v3597_v57  ;;  %v3599_v53 = vadd.f32 %v2156_v45, %v4588_v20 }
0x15aa   :  { %3941 = vtanh.f32 %v3598_v28  ;;  %v3600_v46 = vadd.f32 %v2158_v52, %v4501_v26  ;;  %v3366_v14 = vmul.f32 -1.442695, %v3598_v28 }
0x15ab   :  { %v3367_v59 = vmul.f32 -1.442695, %v3599_v53 }
0x15ac   :  { %3943 = vtanh.f32 %v3600_v46 }
0x15ad   :  { %3945 = vpow2.f32 %v3365_v58 }
0x15ae   :  { %3947 = vpow2.f32 %v3367_v59 }
0x15b4   :  { %v3942_v44 = vpop.eup %3941 }
0x15b5   :  { %2195 = vrot.lane.b32.xlu0 %v3942_v44, %s4150_s15 }
0x15b6   :  { %v3944_v25 = vpop.eup %3943 }
0x15b7   :  { %2197 = vrot.lane.b32.xlu1 %v3944_v25, %s4150_s15  ;;  %v3946_v37 = vpop.eup %3945 }
0x15b8   :  { %v2177_v33 = vadd.f32 1.0, %v3946_v37  ;;  %v3948_v60 = vpop.eup %3947 }
0x15b9   :  { %v2179_v61 = vadd.f32 1.0, %v3948_v60 }
0x15ba   :  { %3949 = vrcp.f32 %v2177_v33 }
0x15bb   :  { %3951 = vrcp.f32 %v2179_v61 }
0x15c4   :  { %v3950_v62 = vpop.eup %3949 }
0x15c5   :  { %v3952_v2 = vpop.eup %3951  ;;  %v2191_v43 = vmul.f32 %v3950_v62, %v4891_v27  ;;  %v3368_v27 = vmul.f32 -1.442695, %v3600_v46 }
0x15c6   :  { %v2192_v0 = vmul.f32 %v3952_v2, %v4895_v47 }
0x1627   :  { %v2196_v54 = vpop.permute.xlu0 %2195 }
0x1628   :  { %v2201_v1 = vmul.f32 %v3950_v62, %v2196_v54 }
0x1629   :  { %v2198_v63 = vpop.permute.xlu1 %2197 }
0x162a   :  { %2205 = vrot.lane.b32.xlu0 %v2201_v1, %s4150_s15  ;;  %v2202_v3 = vmul.f32 %v3952_v2, %v2198_v63 }
0x162c   :  { %2207 = vrot.lane.b32.xlu1 %v2202_v3, %s4150_s15 }
0x169c   :  { %v2206_v10 = vpop.permute.xlu0 %2205 }
0x169d   :  { %v4919_v4 = vadd.f32 %v2206_v10, %v2191_v43 }
0x169e   :  { %v2208_v11 = vpop.permute.xlu1 %2207 }
0x169f   :  { %3953 = vtanh.f32 %v4919_v4  ;;  %v4923_v13 = vadd.f32 %v2208_v11, %v2192_v0 }
0x16a1   :  { %3955 = vtanh.f32 %v4923_v13 }
0x16a2   :  { %3957 = vpow2.f32 %v3366_v14 }
0x16a3   :  { %3959 = vpow2.f32 %v3368_v27 }
0x16a9   :  { %v3954_v12 = vpop.eup %3953 }
0x16aa   :  { %2217 = vrot.lane.b32.xlu0 %v3954_v12, %s4150_s15 }
0x16ab   :  { %v3956_v21 = vpop.eup %3955 }
0x16ac   :  { %2219 = vrot.lane.b32.xlu1 %v3956_v21, %s4150_s15  ;;  %v3958_v48 = vpop.eup %3957 }
0x16ad   :  { %v3960_v31 = vpop.eup %3959  ;;  %v2178_v32 = vadd.f32 1.0, %v3958_v48 }
0x16ae   :  { %v2180_v35 = vadd.f32 1.0, %v3960_v31 }
0x16af   :  { %3961 = vrcp.f32 %v2178_v32 }
0x16b0   :  { %3963 = vrcp.f32 %v2180_v35 }
0x16b9   :  { %v3962_v50 = vpop.eup %3961 }
0x16ba   :  { %v3964_v22 = vpop.eup %3963 }
0x171c   :  { %v2218_v47 = vpop.permute.xlu0 %2217 }
0x171d   :  { %v2223_v24 = vmul.f32 %v3962_v50, %v2218_v47 }
0x171e   :  { %v2220_v16 = vpop.permute.xlu1 %2219 }
0x171f   :  { %v2224_v15 = vmul.f32 %v3964_v22, %v2220_v16 }
0x1721   :  { %v2232_v34 = vpack.c.bf16 %v2224_v15, %v2223_v24 }
0x1723   :  { %3369 = vmatmul.mubr.msk.bf16.vlgmr.msra.gmra.mrb[8].mxu1 %vm1162_vm3, %v2232_v34 }
0x1724   :  { %2355 = vmatpush1.bf16.msra.mxu1 %v4772_v51  ;;  %2386 = vmatprep.mubr.bf16.mxu1 %v4149_v23 }
0x1725   :  { %2356 = vmatprep.subr.bf16.mxu1 %v4779_v6 }
0x1728   :  { %2357 = vmatpush1.bf16.msra.mxu1 %v4785_v38 }
0x1729   :  { %2358 = vmatprep.subr.bf16.mxu1 %v4791_v30 }
0x172c   :  { %2359 = vmatpush1.bf16.msra.mxu1 %v4797_v40 }
0x172d   :  { %2360 = vmatprep.subr.bf16.mxu1 %v4803_v55 }
0x1730   :  { %2361 = vmatpush1.bf16.msra.mxu1 %v4809_v56 }
0x1731   :  { %2472 = vmatprep.subr.bf16.mxu1 %v4815_v5 }
0x17f6   :  { %v2270_v36 = vpop.f32.mrb[8].mxu1 }
0x17f7   :  { %v2272_v39 = vpop.f32.mrb[9].mxu1  ;;  %v3601_v45 = vadd.f32 %v2270_v36, %v4588_v20 }
0x17f8   :  { %v3602_v41 = vadd.f32 %v2272_v39, %v4501_v26  ;;  %v2274_v17 = vpop.f32.mrb[10].mxu1 }
0x17f9   :  { %v2276_v49 = vpop.f32.mrb[11].mxu1  ;;  %v3370_v52 = vmul.f32 -1.442695, %v3601_v45  ;;  %v3603_v46 = vadd.f32 %v2274_v17, %v4588_v20 }
0x17fa   :  { %3965 = vtanh.f32 %v3602_v41  ;;  %v3604_v18 = vadd.f32 %v2276_v49, %v4501_v26  ;;  %v3371_v11 = vmul.f32 -1.442695, %v3602_v41 }
0x17fb   :  { %v3372_v44 = vmul.f32 -1.442695, %v3603_v46 }
0x17fc   :  { %3967 = vtanh.f32 %v3604_v18 }
0x17fd   :  { %3969 = vpow2.f32 %v3370_v52 }
0x17fe   :  { %3971 = vpow2.f32 %v3372_v44 }
0x1804   :  { %v3966_v42 = vpop.eup %3965 }
0x1805   :  { %2313 = vrot.lane.b32.xlu0 %v3966_v42, %s4150_s15 }
0x1806   :  { %v3968_v28 = vpop.eup %3967 }
0x1807   :  { %2315 = vrot.lane.b32.xlu1 %v3968_v28, %s4150_s15  ;;  %v3970_v25 = vpop.eup %3969 }
0x1808   :  { %v2295_v57 = vadd.f32 1.0, %v3970_v25  ;;  %v3972_v58 = vpop.eup %3971 }
0x1809   :  { %v2297_v53 = vadd.f32 1.0, %v3972_v58 }
0x180a   :  { %3973 = vrcp.f32 %v2295_v57 }
0x180b   :  { %3975 = vrcp.f32 %v2297_v53 }
0x1814   :  { %v3974_v59 = vpop.eup %3973 }
0x1815   :  { %v3976_v60 = vpop.eup %3975  ;;  %v2309_v54 = vmul.f32 %v3974_v59, %v4919_v4  ;;  %v3373_v4 = vmul.f32 -1.442695, %v3604_v18 }
0x1816   :  { %v2310_v63 = vmul.f32 %v3976_v60, %v4923_v13 }
0x1877   :  { %v2314_v37 = vpop.permute.xlu0 %2313 }
0x1878   :  { %v2319_v33 = vmul.f32 %v3974_v59, %v2314_v37 }
0x1879   :  { %v2316_v61 = vpop.permute.xlu1 %2315 }
0x187a   :  { %2323 = vrot.lane.b32.xlu0 %v2319_v33, %s4150_s15  ;;  %v2320_v62 = vmul.f32 %v3976_v60, %v2316_v61 }
0x187c   :  { %2325 = vrot.lane.b32.xlu1 %v2320_v62, %s4150_s15 }
0x18ec   :  { %v2324_v1 = vpop.permute.xlu0 %2323 }
0x18ed   :  { %v4947_v2 = vadd.f32 %v2324_v1, %v2309_v54 }
0x18ee   :  { %v2326_v3 = vpop.permute.xlu1 %2325 }
0x18ef   :  { %3977 = vtanh.f32 %v4947_v2  ;;  %v4951_v43 = vadd.f32 %v2326_v3, %v2310_v63 }
0x18f1   :  { %3979 = vtanh.f32 %v4951_v43 }
0x18f2   :  { %3981 = vpow2.f32 %v3371_v11 }
0x18f3   :  { %3983 = vpow2.f32 %v3373_v4 }
0x18f9   :  { %v3978_v10 = vpop.eup %3977 }
0x18fa   :  { %2335 = vrot.lane.b32.xlu0 %v3978_v10, %s4150_s15 }
0x18fb   :  { %v3980_v0 = vpop.eup %3979 }
0x18fc   :  { %2337 = vrot.lane.b32.xlu1 %v3980_v0, %s4150_s15  ;;  %v3982_v12 = vpop.eup %3981 }
0x18fd   :  { %v3984_v21 = vpop.eup %3983  ;;  %v2296_v14 = vadd.f32 1.0, %v3982_v12 }
0x18fe   :  { %v2298_v27 = vadd.f32 1.0, %v3984_v21 }
0x18ff   :  { %3985 = vrcp.f32 %v2296_v14 }
0x1900   :  { %3987 = vrcp.f32 %v2298_v27 }
0x1909   :  { %v3986_v48 = vpop.eup %3985 }
0x190a   :  { %v3988_v31 = vpop.eup %3987 }
0x196c   :  { %v2336_v13 = vpop.permute.xlu0 %2335 }
0x196d   :  { %v2341_v35 = vmul.f32 %v3986_v48, %v2336_v13 }
0x196e   :  { %v2338_v32 = vpop.permute.xlu1 %2337 }
0x196f   :  { %v2342_v47 = vmul.f32 %v3988_v31, %v2338_v32 }
0x1971   :  { %v2350_v50 = vpack.c.bf16 %v2342_v47, %v2341_v35 }
0x1973   :  { %3374 = vmatmul.mubr.msk.bf16.vlgmr.msra.gmra.mrb[12].mxu1 %vm1162_vm3, %v2350_v50 }
0x1974   :  { %2473 = vmatpush1.bf16.msra.mxu1 %v4772_v51  ;;  %2504 = vmatprep.mubr.bf16.mxu1 %v4149_v23 }
0x1975   :  { %2474 = vmatprep.subr.bf16.mxu1 %v4779_v6 }
0x1978   :  { %2475 = vmatpush1.bf16.msra.mxu1 %v4785_v38 }
0x1979   :  { %2476 = vmatprep.subr.bf16.mxu1 %v4791_v30 }
0x197c   :  { %2477 = vmatpush1.bf16.msra.mxu1 %v4797_v40 }
0x197d   :  { %2478 = vmatprep.subr.bf16.mxu1 %v4803_v55 }
0x1980   :  { %2479 = vmatpush1.bf16.msra.mxu1 %v4809_v56 }
0x1981   :  { %2590 = vmatprep.subr.bf16.mxu1 %v4815_v5 }
0x1a46   :  { %v2388_v22 = vpop.f32.mrb[12].mxu1 }
0x1a47   :  { %v2390_v16 = vpop.f32.mrb[13].mxu1  ;;  %v3605_v17 = vadd.f32 %v2388_v22, %v4588_v20 }
0x1a48   :  { %v3606_v24 = vadd.f32 %v2390_v16, %v4501_v26  ;;  %v2392_v15 = vpop.f32.mrb[14].mxu1 }
0x1a49   :  { %v2394_v34 = vpop.f32.mrb[15].mxu1  ;;  %v3375_v49 = vmul.f32 -1.442695, %v3605_v17  ;;  %v3607_v18 = vadd.f32 %v2392_v15, %v4588_v20 }
0x1a4a   :  { %3989 = vtanh.f32 %v3606_v24  ;;  %v3608_v36 = vadd.f32 %v2394_v34, %v4501_v26  ;;  %v3376_v3 = vmul.f32 -1.442695, %v3606_v24 }
0x1a4b   :  { %v3377_v42 = vmul.f32 -1.442695, %v3607_v18 }
0x1a4c   :  { %3991 = vtanh.f32 %v3608_v36 }
0x1a4d   :  { %3993 = vpow2.f32 %v3375_v49 }
0x1a4e   :  { %3995 = vpow2.f32 %v3377_v42 }
0x1a54   :  { %v3990_v39 = vpop.eup %3989 }
0x1a55   :  { %2431 = vrot.lane.b32.xlu0 %v3990_v39, %s4150_s15 }
0x1a56   :  { %v3992_v41 = vpop.eup %3991 }
0x1a57   :  { %2433 = vrot.lane.b32.xlu1 %v3992_v41, %s4150_s15  ;;  %v3994_v28 = vpop.eup %3993 }
0x1a58   :  { %v2413_v45 = vadd.f32 1.0, %v3994_v28  ;;  %v3996_v52 = vpop.eup %3995 }
0x1a59   :  { %v2415_v46 = vadd.f32 1.0, %v3996_v52 }
0x1a5a   :  { %3997 = vrcp.f32 %v2413_v45 }
0x1a5b   :  { %3999 = vrcp.f32 %v2415_v46 }
0x1a64   :  { %v3998_v44 = vpop.eup %3997 }
0x1a65   :  { %v4000_v58 = vpop.eup %3999  ;;  %v2427_v37 = vmul.f32 %v3998_v44, %v4947_v2  ;;  %v3378_v2 = vmul.f32 -1.442695, %v3608_v36 }
0x1a66   :  { %v2428_v61 = vmul.f32 %v4000_v58, %v4951_v43 }
0x1ac7   :  { %v2432_v25 = vpop.permute.xlu0 %2431 }
0x1ac8   :  { %v2437_v57 = vmul.f32 %v3998_v44, %v2432_v25 }
0x1ac9   :  { %v2434_v53 = vpop.permute.xlu1 %2433 }
0x1aca   :  { %2441 = vrot.lane.b32.xlu0 %v2437_v57, %s4150_s15  ;;  %v2438_v59 = vmul.f32 %v4000_v58, %v2434_v53 }
0x1acc   :  { %2443 = vrot.lane.b32.xlu1 %v2438_v59, %s4150_s15 }
0x1b3c   :  { %v2442_v33 = vpop.permute.xlu0 %2441 }
0x1b3d   :  { %v4975_v60 = vadd.f32 %v2442_v33, %v2427_v37 }
0x1b3e   :  { %v2444_v62 = vpop.permute.xlu1 %2443 }
0x1b3f   :  { %4001 = vtanh.f32 %v4975_v60  ;;  %v4979_v54 = vadd.f32 %v2444_v62, %v2428_v61 }
0x1b41   :  { %4003 = vtanh.f32 %v4979_v54 }
0x1b42   :  { %4005 = vpow2.f32 %v3376_v3 }
0x1b43   :  { %4007 = vpow2.f32 %v3378_v2 }
0x1b49   :  { %v4002_v1 = vpop.eup %4001 }
0x1b4a   :  { %2453 = vrot.lane.b32.xlu0 %v4002_v1, %s4150_s15 }
0x1b4b   :  { %v4004_v63 = vpop.eup %4003 }
0x1b4c   :  { %2455 = vrot.lane.b32.xlu1 %v4004_v63, %s4150_s15  ;;  %v4006_v10 = vpop.eup %4005 }
0x1b4d   :  { %v4008_v0 = vpop.eup %4007  ;;  %v2414_v11 = vadd.f32 1.0, %v4006_v10 }
0x1b4e   :  { %v2416_v4 = vadd.f32 1.0, %v4008_v0 }
0x1b4f   :  { %4009 = vrcp.f32 %v2414_v11 }
0x1b50   :  { %4011 = vrcp.f32 %v2416_v4 }
0x1b59   :  { %v4010_v12 = vpop.eup %4009 }
0x1b5a   :  { %v4012_v21 = vpop.eup %4011 }
0x1bbc   :  { %v2454_v43 = vpop.permute.xlu0 %2453 }
0x1bbd   :  { %v2459_v27 = vmul.f32 %v4010_v12, %v2454_v43 }
0x1bbe   :  { %v2456_v14 = vpop.permute.xlu1 %2455 }
0x1bbf   :  { %v2460_v13 = vmul.f32 %v4012_v21, %v2456_v14 }
0x1bc1   :  { %v2468_v48 = vpack.c.bf16 %v2460_v13, %v2459_v27 }
0x1bc3   :  { %3379 = vmatmul.mubr.msk.bf16.vlgmr.msra.gmra.mrb[16].mxu1 %vm1162_vm3, %v2468_v48 }
0x1bc4   :  { %2591 = vmatpush1.bf16.msra.mxu1 %v4772_v51  ;;  %2622 = vmatprep.mubr.bf16.mxu1 %v4149_v23 }
0x1bc5   :  { %2592 = vmatprep.subr.bf16.mxu1 %v4779_v6 }
0x1bc8   :  { %2593 = vmatpush1.bf16.msra.mxu1 %v4785_v38 }
0x1bc9   :  { %2594 = vmatprep.subr.bf16.mxu1 %v4791_v30 }
0x1bcc   :  { %2595 = vmatpush1.bf16.msra.mxu1 %v4797_v40 }
0x1bcd   :  { %2596 = vmatprep.subr.bf16.mxu1 %v4803_v55 }
0x1bd0   :  { %2597 = vmatpush1.bf16.msra.mxu1 %v4809_v56 }
0x1bd1   :  { %2708 = vmatprep.subr.bf16.mxu1 %v4815_v5 }
0x1c96   :  { %v2506_v31 = vpop.f32.mrb[16].mxu1 }
0x1c97   :  { %v2508_v32 = vpop.f32.mrb[17].mxu1  ;;  %v3609_v15 = vadd.f32 %v2506_v31, %v4588_v20 }
0x1c98   :  { %v3610_v35 = vadd.f32 %v2508_v32, %v4501_v26  ;;  %v2510_v47 = vpop.f32.mrb[18].mxu1 }
0x1c99   :  { %v2512_v50 = vpop.f32.mrb[19].mxu1  ;;  %v3380_v34 = vmul.f32 -1.442695, %v3609_v15  ;;  %v3611_v36 = vadd.f32 %v2510_v47, %v4588_v20 }
0x1c9a   :  { %4013 = vtanh.f32 %v3610_v35  ;;  %v3612_v22 = vadd.f32 %v2512_v50, %v4501_v26  ;;  %v3381_v62 = vmul.f32 -1.442695, %v3610_v35 }
0x1c9b   :  { %v3382_v39 = vmul.f32 -1.442695, %v3611_v36 }
0x1c9c   :  { %4015 = vtanh.f32 %v3612_v22 }
0x1c9d   :  { %4017 = vpow2.f32 %v3380_v34 }
0x1c9e   :  { %4019 = vpow2.f32 %v3382_v39 }
0x1ca4   :  { %v4014_v16 = vpop.eup %4013 }
0x1ca5   :  { %2549 = vrot.lane.b32.xlu0 %v4014_v16, %s4150_s15 }
0x1ca6   :  { %v4016_v24 = vpop.eup %4015 }
0x1ca7   :  { %2551 = vrot.lane.b32.xlu1 %v4016_v24, %s4150_s15  ;;  %v4018_v41 = vpop.eup %4017 }
0x1ca8   :  { %v2531_v17 = vadd.f32 1.0, %v4018_v41  ;;  %v4020_v49 = vpop.eup %4019 }
0x1ca9   :  { %v2533_v18 = vadd.f32 1.0, %v4020_v49 }
0x1caa   :  { %4021 = vrcp.f32 %v2531_v17 }
0x1cab   :  { %4023 = vrcp.f32 %v2533_v18 }
0x1cb4   :  { %v4022_v42 = vpop.eup %4021 }
0x1cb5   :  { %v4024_v52 = vpop.eup %4023  ;;  %v2545_v25 = vmul.f32 %v4022_v42, %v4975_v60  ;;  %v3383_v60 = vmul.f32 -1.442695, %v3612_v22 }
0x1cb6   :  { %v2546_v53 = vmul.f32 %v4024_v52, %v4979_v54 }
0x1d17   :  { %v2550_v28 = vpop.permute.xlu0 %2549 }
0x1d18   :  { %v2555_v45 = vmul.f32 %v4022_v42, %v2550_v28 }
0x1d19   :  { %v2552_v46 = vpop.permute.xlu1 %2551 }
0x1d1a   :  { %2559 = vrot.lane.b32.xlu0 %v2555_v45, %s4150_s15  ;;  %v2556_v44 = vmul.f32 %v4024_v52, %v2552_v46 }
0x1d1c   :  { %2561 = vrot.lane.b32.xlu1 %v2556_v44, %s4150_s15 }
0x1d8c   :  { %v2560_v57 = vpop.permute.xlu0 %2559 }
0x1d8d   :  { %v5003_v58 = vadd.f32 %v2560_v57, %v2545_v25 }
0x1d8e   :  { %v2562_v59 = vpop.permute.xlu1 %2561 }
0x1d8f   :  { %4025 = vtanh.f32 %v5003_v58  ;;  %v5007_v37 = vadd.f32 %v2562_v59, %v2546_v53 }
0x1d91   :  { %4027 = vtanh.f32 %v5007_v37 }
0x1d92   :  { %4029 = vpow2.f32 %v3381_v62  ;;  %v4141_v62 = vld [vmem:[%s5200_s4] ss:$8 sps:$4 sm:$0xff]  }
0x1d93   :  { %4031 = vpow2.f32 %v3383_v60  ;;  %v4142_v60 = vld [vmem:[%s5200_s4 + $0x14] ss:$8 sps:$4 sm:$0xff]  }
0x1d99   :  { %v4026_v33 = vpop.eup %4025 }
0x1d9a   :  { %2571 = vrot.lane.b32.xlu0 %v4026_v33, %s4150_s15 }
0x1d9b   :  { %v4028_v61 = vpop.eup %4027 }
0x1d9c   :  { %2573 = vrot.lane.b32.xlu1 %v4028_v61, %s4150_s15  ;;  %v4030_v1 = vpop.eup %4029 }
0x1d9d   :  { %v4032_v63 = vpop.eup %4031  ;;  %v2532_v3 = vadd.f32 1.0, %v4030_v1  ;;  %v4143_v1 = vld [vmem:[%s5200_s4 + $0x10] ss:$8 sps:$4 sm:$0xff]  }
0x1d9e   :  { %v2534_v2 = vadd.f32 1.0, %v4032_v63  ;;  %v4144_v63 = vld [vmem:[%s5200_s4 + $0x24] ss:$8 sps:$4 sm:$0xff]  }
0x1d9f   :  { %4033 = vrcp.f32 %v2532_v3  ;;  %v4145_v3 = vld [vmem:[%s5200_s4 + $0x20] ss:$8 sps:$4 sm:$0xff]  }
0x1da0   :  { %4035 = vrcp.f32 %v2534_v2  ;;  %v4147_v2 = vld [vmem:[%s5200_s4 + $0x30] ss:$8 sps:$4 sm:$0xff]  }
0x1da9   :  { %v4034_v10 = vpop.eup %4033 }
0x1daa   :  { %v4036_v0 = vpop.eup %4035 }
0x1e0c   :  { %v2572_v54 = vpop.permute.xlu0 %2571 }
0x1e0d   :  { %v2577_v4 = vmul.f32 %v4034_v10, %v2572_v54 }
0x1e0e   :  { %v2574_v11 = vpop.permute.xlu1 %2573 }
0x1e0f   :  { %v2578_v43 = vmul.f32 %v4036_v0, %v2574_v11 }
0x1e11   :  { %v2586_v12 = vpack.c.bf16 %v2578_v43, %v2577_v4 }
0x1e13   :  { %3384 = vmatmul.mubr.msk.bf16.vlgmr.msra.gmra.mrb[20].mxu1 %vm1162_vm3, %v2586_v12 }
0x1e14   :  { %2709 = vmatpush1.bf16.msra.mxu1 %v4772_v51  ;;  %2740 = vmatprep.mubr.bf16.mxu1 %v4149_v23 }
0x1e15   :  { %2710 = vmatprep.subr.bf16.mxu1 %v4779_v6 }
0x1e18   :  { %2711 = vmatpush1.bf16.msra.mxu1 %v4785_v38 }
0x1e19   :  { %2712 = vmatprep.subr.bf16.mxu1 %v4791_v30 }
0x1e1c   :  { %2713 = vmatpush1.bf16.msra.mxu1 %v4797_v40 }
0x1e1d   :  { %2714 = vmatprep.subr.bf16.mxu1 %v4803_v55 }
0x1e20   :  { %2715 = vmatpush1.bf16.msra.mxu1 %v4809_v56 }
0x1e21   :  { %2826 = vmatprep.subr.bf16.mxu1 %v4815_v5 }
0x1ee6   :  { %v2624_v21 = vpop.f32.mrb[20].mxu1 }
0x1ee7   :  { %v2626_v14 = vpop.f32.mrb[21].mxu1  ;;  %v3613_v40 = vadd.f32 %v2624_v21, %v4588_v20 }
0x1ee8   :  { %v3614_v51 = vadd.f32 %v2626_v14, %v4501_v26  ;;  %v2628_v27 = vpop.f32.mrb[22].mxu1 }
0x1ee9   :  { %v2630_v13 = vpop.f32.mrb[23].mxu1  ;;  %v3385_v55 = vmul.f32 -1.442695, %v3613_v40  ;;  %v3615_v56 = vadd.f32 %v2628_v27, %v4588_v20 }
0x1eea   :  { %4037 = vtanh.f32 %v3614_v51  ;;  %v3616_v6 = vadd.f32 %v2630_v13, %v4501_v26  ;;  %v3386_v28 = vmul.f32 -1.442695, %v3614_v51 }
0x1eeb   :  { %v3387_v5 = vmul.f32 -1.442695, %v3615_v56 }
0x1eec   :  { %4039 = vtanh.f32 %v3616_v6  ;;  %v3388_v45 = vmul.f32 -1.442695, %v3616_v6 }
0x1eed   :  { %4041 = vpow2.f32 %v3385_v55 }
0x1eee   :  { %4043 = vpow2.f32 %v3387_v5 }
0x1ef4   :  { %v4038_v38 = vpop.eup %4037 }
0x1ef5   :  { %2667 = vrot.lane.b32.xlu0 %v4038_v38, %s4150_s15 }
0x1ef6   :  { %v4040_v30 = vpop.eup %4039 }
0x1ef7   :  { %2669 = vrot.lane.b32.xlu1 %v4040_v30, %s4150_s15  ;;  %v4042_v48 = vpop.eup %4041 }
0x1ef8   :  { %v2649_v31 = vadd.f32 1.0, %v4042_v48  ;;  %v4044_v32 = vpop.eup %4043 }
0x1ef9   :  { %v2651_v35 = vadd.f32 1.0, %v4044_v32 }
0x1efa   :  { %4045 = vrcp.f32 %v2649_v31 }
0x1efb   :  { %4047 = vrcp.f32 %v2651_v35 }
0x1f04   :  { %v4046_v47 = vpop.eup %4045 }
0x1f05   :  { %v4048_v16 = vpop.eup %4047  ;;  %v2663_v34 = vmul.f32 %v4046_v47, %v5003_v58 }
0x1f06   :  { %v2664_v41 = vmul.f32 %v4048_v16, %v5007_v37 }
0x1f67   :  { %v2668_v50 = vpop.permute.xlu0 %2667 }
0x1f68   :  { %v2673_v22 = vmul.f32 %v4046_v47, %v2668_v50 }
0x1f69   :  { %v2670_v24 = vpop.permute.xlu1 %2669 }
0x1f6a   :  { %2677 = vrot.lane.b32.xlu0 %v2673_v22, %s4150_s15  ;;  %v2674_v15 = vmul.f32 %v4048_v16, %v2670_v24 }
0x1f6c   :  { %2679 = vrot.lane.b32.xlu1 %v2674_v15, %s4150_s15 }
0x1fdc   :  { %v2678_v36 = vpop.permute.xlu0 %2677 }
0x1fdd   :  { %v5031_v39 = vadd.f32 %v2678_v36, %v2663_v34 }
0x1fde   :  { %v2680_v17 = vpop.permute.xlu1 %2679 }
0x1fdf   :  { %4049 = vtanh.f32 %v5031_v39  ;;  %v5035_v49 = vadd.f32 %v2680_v17, %v2664_v41 }
0x1fe1   :  { %4051 = vtanh.f32 %v5035_v49 }
0x1fe2   :  { %4053 = vpow2.f32 %v3386_v28 }
0x1fe3   :  { %4055 = vpow2.f32 %v3388_v45 }
0x1fe9   :  { %v4050_v18 = vpop.eup %4049 }
0x1fea   :  { %2689 = vrot.lane.b32.xlu0 %v4050_v18, %s4150_s15 }
0x1feb   :  { %v4052_v42 = vpop.eup %4051 }
0x1fec   :  { %2691 = vrot.lane.b32.xlu1 %v4052_v42, %s4150_s15  ;;  %v4054_v52 = vpop.eup %4053 }
0x1fed   :  { %v4056_v46 = vpop.eup %4055  ;;  %v2650_v44 = vadd.f32 1.0, %v4054_v52 }
0x1fee   :  { %v2652_v25 = vadd.f32 1.0, %v4056_v46 }
0x1fef   :  { %4057 = vrcp.f32 %v2650_v44 }
0x1ff0   :  { %4059 = vrcp.f32 %v2652_v25 }
0x1ff9   :  { %v4058_v58 = vpop.eup %4057 }
0x1ffa   :  { %v4060_v53 = vpop.eup %4059 }
0x205c   :  { %v2690_v57 = vpop.permute.xlu0 %2689 }
0x205d   :  { %v2695_v37 = vmul.f32 %v4058_v58, %v2690_v57 }
0x205e   :  { %v2692_v59 = vpop.permute.xlu1 %2691 }
0x205f   :  { %v2696_v33 = vmul.f32 %v4060_v53, %v2692_v59 }
0x2061   :  { %v2704_v61 = vpack.c.bf16 %v2696_v33, %v2695_v37 }
0x2063   :  { %3389 = vmatmul.mubr.msk.bf16.vlgmr.msra.gmra.mrb[24].mxu1 %vm1162_vm3, %v2704_v61 }
0x2064   :  { %2827 = vmatpush1.bf16.msra.mxu1 %v4141_v62  ;;  %2858 = vmatprep.mubr.bf16.mxu1 %v4149_v23  ;;  %v4146_v23 = vld [vmem:[%s5200_s4 + $0x34] ss:$8 sps:$4 sm:$0xff]  }
0x2065   :  { %2828 = vmatprep.subr.bf16.mxu1 %v4142_v60 }
0x2068   :  { %2829 = vmatpush1.bf16.msra.mxu1 %v4143_v1 }
0x2069   :  { %2830 = vmatprep.subr.bf16.mxu1 %v4144_v63 }
0x206c   :  { %2831 = vmatpush1.bf16.msra.mxu1 %v4145_v3 }
0x206d   :  { %2832 = vmatprep.subr.bf16.mxu1 %v4146_v23 }
0x2070   :  { %2833 = vmatpush1.bf16.msra.mxu1 %v4147_v2 }
0x2136   :  { %v2742_v54 = vpop.f32.mrb[24].mxu1 }
0x2137   :  { %v2744_v10 = vpop.f32.mrb[25].mxu1  ;;  %v3617_v14 = vadd.f32 %v2742_v54, %v4588_v20 }
0x2138   :  { %v3618_v0 = vadd.f32 %v2744_v10, %v4501_v26  ;;  %v2746_v11 = vpop.f32.mrb[26].mxu1  ;;  %v4148_v10 = vld [vmem:[%s5201_s5] sm:$0xf] }
0x2139   :  { %v2748_v4 = vpop.f32.mrb[27].mxu1  ;;  %v3390_v51 = vmul.f32 -1.442695, %v3617_v14  ;;  %v3619_v27 = vadd.f32 %v2746_v11, %v4588_v20  ;;  %v4151_v14 = vmov 0.0  }
0x213a   :  { %4061 = vtanh.f32 %v3618_v0  ;;  %v3620_v43 = vadd.f32 %v2748_v4, %v4501_v26  ;;  %v3391_v36 = vmul.f32 -1.442695, %v3618_v0  ;;  %3493 = vmatprep.subr.bf16.mxu0 %v4151_v14  ;;  %3509 = vmatprep.mubr.msk.bf16.mxu0 %vm4152_vm4, %v4151_v14 }
0x213b   :  { %v3392_v13 = vmul.f32 -1.442695, %v3619_v27 }
0x213c   :  { %4063 = vtanh.f32 %v3620_v43 }
0x213d   :  { %4065 = vpow2.f32 %v3390_v51  ;;  %v3709_v51 = vld [vmem:[%s5202_s6] sm:$0xff]  }
0x213e   :  { %4067 = vpow2.f32 %v3392_v13  ;;  %3494 = vmatpush3.bf16.msra.mxu0 %v3709_v51 }
0x213f   :  { %3495 = vmatprep.subr.bf16.mxu0 %v4151_v14 }
0x2144   :  { %v4062_v12 = vpop.eup %4061 }
0x2145   :  { %2785 = vrot.lane.b32.xlu0 %v4062_v12, %s4150_s15 }
0x2146   :  { %v4064_v21 = vpop.eup %4063 }
0x2147   :  { %2787 = vrot.lane.b32.xlu1 %v4064_v21, %s4150_s15  ;;  %v4066_v6 = vpop.eup %4065 }
0x2148   :  { %v2767_v38 = vadd.f32 1.0, %v4066_v6  ;;  %v4068_v30 = vpop.eup %4067 }
0x2149   :  { %v2769_v40 = vadd.f32 1.0, %v4068_v30  ;;  %v3711_v30 = vld [vmem:[%s5202_s6 + $0x10] sm:$0xff]  }
0x214a   :  { %4069 = vrcp.f32 %v2767_v38  ;;  %v3710_v38 = vld [vmem:[%s5202_s6 + $0x8] sm:$0xff]  }
0x214b   :  { %4071 = vrcp.f32 %v2769_v40  ;;  %3496 = vmatpush3.bf16.msra.mxu0 %v3710_v38  ;;  %v3712_v40 = vld [vmem:[%s5202_s6 + $0x18] sm:$0xff]   ;;  %v3718_v38 = vld [vmem:[%s5203_s8 + $0x8] sm:$0xff]  }
0x214c   :  { %3497 = vmatprep.subr.bf16.mxu0 %v4151_v14 }
0x214f   :  { %3498 = vmatpush3.bf16.msra.mxu0 %v3711_v30  ;;  %v3719_v30 = vld [vmem:[%s5203_s8 + $0x10] sm:$0xff]  }
0x2150   :  { %3499 = vmatprep.subr.bf16.mxu0 %v4151_v14 }
0x2153   :  { %3500 = vmatpush3.bf16.msra.mxu0 %v3712_v40  ;;  %v3720_v40 = vld [vmem:[%s5203_s8 + $0x18] sm:$0xff]  }
0x2154   :  { %v4070_v55 = vpop.eup %4069  ;;  %3501 = vmatprep.subr.bf16.mxu0 %v4151_v14 }
0x2155   :  { %v4072_v48 = vpop.eup %4071  ;;  %v2781_v35 = vmul.f32 %v4070_v55, %v5031_v39  ;;  %v3393_v39 = vmul.f32 -1.442695, %v3620_v43 }
0x2156   :  { %v2782_v22 = vmul.f32 %v4072_v48, %v5035_v49 }
0x21b7   :  { %v2786_v56 = vpop.permute.xlu0 %2785 }
0x21b8   :  { %v2791_v5 = vmul.f32 %v4070_v55, %v2786_v56  ;;  %v3713_v55 = vld [vmem:[%s5202_s6 + $0x20] sm:$0xff]   ;;  %v3714_v56 = vld [vmem:[%s5202_s6 + $0x28] sm:$0xff]  }
0x21b9   :  { %v2788_v31 = vpop.permute.xlu1 %2787  ;;  %3502 = vmatpush3.bf16.msra.mxu0 %v3713_v55  ;;  %v3721_v55 = vld [vmem:[%s5203_s8 + $0x20] sm:$0xff]  }
0x21ba   :  { %2795 = vrot.lane.b32.xlu0 %v2791_v5, %s4150_s15  ;;  %v2792_v32 = vmul.f32 %v4072_v48, %v2788_v31  ;;  %3503 = vmatprep.subr.bf16.mxu0 %v4151_v14  ;;  %v3715_v5 = vld [vmem:[%s5202_s6 + $0x30] sm:$0xff]   ;;  %v3716_v48 = vld [vmem:[%s5202_s6 + $0x38] sm:$0xff]   ;;  %v449_v31 = vsub.s32 2, %v4492_v19 }
0x21bc   :  { %2797 = vrot.lane.b32.xlu1 %v2792_v32, %s4150_s15  ;;  %v450_v32 = vrot.slane %v4148_v10, %v449_v31  ;;  %v3403_v31 = vld [vmem:[%s5204_s7] ss:$0 sm:$0xff] }
0x21bd   :  { %3504 = vmatpush3.bf16.msra.mxu0 %v3714_v56  ;;  %v3722_v56 = vld [vmem:[%s5203_s8 + $0x28] sm:$0xff]  }
0x21be   :  { %3505 = vmatprep.subr.bf16.mxu0 %v4151_v14 }
0x21c1   :  { %3506 = vmatpush3.bf16.msra.mxu0 %v3715_v5  ;;  %v3723_v5 = vld [vmem:[%s5203_s8 + $0x30] sm:$0xff]  }
0x21c2   :  { %3507 = vmatprep.subr.bf16.mxu0 %v4151_v14 }
0x21c5   :  { %3508 = vmatpush3.bf16.msra.mxu0 %v3716_v48  ;;  %v3724_v48 = vld [vmem:[%s5203_s8 + $0x38] sm:$0xff]  }
0x21c6   :  { %3513 = vmatprep.subr.bf16.mxu0 %v4151_v14 }
0x222c   :  { %v2796_v47 = vpop.permute.xlu0 %2795 }
0x222d   :  { %v5072_v50 = vadd.f32 %v2796_v47, %v2781_v35  ;;  %v926_v35 = vadd.f32 %v4610_v7, %v450_v32 }
0x222e   :  { %v2798_v16 = vpop.permute.xlu1 %2797 }
0x222f   :  { %4073 = vtanh.f32 %v5072_v50  ;;  %v5076_v24 = vadd.f32 %v2798_v16, %v2782_v22  ;;  %v3399_v47 = vmul.f32 -1.442695, %v926_v35  ;;  %v930_v22 = vadd.f32 %v4614_v9, %v450_v32 }
0x2231   :  { %4075 = vtanh.f32 %v5076_v24  ;;  %v3401_v16 = vmul.f32 -1.442695, %v930_v22 }
0x2232   :  { %4077 = vpow2.f32 %v3391_v36 }
0x2233   :  { %4079 = vpow2.f32 %v3393_v39 }
0x2239   :  { %v4074_v15 = vpop.eup %4073 }
0x223a   :  { %2807 = vrot.lane.b32.xlu0 %v4074_v15, %s4150_s15 }
0x223b   :  { %v4076_v34 = vpop.eup %4075 }
0x223c   :  { %2809 = vrot.lane.b32.xlu1 %v4076_v34, %s4150_s15  ;;  %v4078_v41 = vpop.eup %4077 }
0x223d   :  { %v4080_v17 = vpop.eup %4079  ;;  %v2768_v18 = vadd.f32 1.0, %v4078_v41 }
0x223e   :  { %v2770_v42 = vadd.f32 1.0, %v4080_v17 }
0x223f   :  { %4081 = vrcp.f32 %v2768_v18 }
0x2240   :  { %4083 = vrcp.f32 %v2770_v42 }
0x2249   :  { %v4082_v28 = vpop.eup %4081 }
0x224a   :  { %v4084_v45 = vpop.eup %4083 }
0x22ac   :  { %v2808_v49 = vpop.permute.xlu0 %2807 }
0x22ad   :  { %v2813_v46 = vmul.f32 %v4082_v28, %v2808_v49 }
0x22ae   :  { %v2810_v52 = vpop.permute.xlu1 %2809 }
0x22af   :  { %v2814_v44 = vmul.f32 %v4084_v45, %v2810_v52 }
0x22b1   :  { %v2822_v25 = vpack.c.bf16 %v2814_v44, %v2813_v46 }
0x22b3   :  { %3394 = vmatmul.mubr.msk.bf16.vlgmr.msra.gmra.mrb[28].mxu1 %vm1162_vm3, %v2822_v25 }
0x2386   :  { %v2860_v57 = vpop.f32.mrb[28].mxu1 }
0x2387   :  { %v2862_v58 = vpop.f32.mrb[29].mxu1  ;;  %v3621_v60 = vadd.f32 %v2860_v57, %v4588_v20 }
0x2388   :  { %v5083_v53 = vadd.f32 %v2862_v58, %v4501_v26  ;;  %v2864_v59 = vpop.f32.mrb[30].mxu1 }
0x2389   :  { %v2866_v37 = vpop.f32.mrb[31].mxu1  ;;  %v3395_v1 = vmul.f32 -1.442695, %v3621_v60  ;;  %v3623_v63 = vadd.f32 %v2864_v59, %v4588_v20 }
0x238a   :  { %4085 = vtanh.f32 %v5083_v53  ;;  %v5087_v33 = vadd.f32 %v2866_v37, %v4501_v26  ;;  %v453_v26 = vsub.s32 3, %v4492_v19 }
0x238b   :  { %v3397_v3 = vmul.f32 -1.442695, %v3623_v63 }
0x238c   :  { %4087 = vtanh.f32 %v5087_v33  ;;  %v454_v0 = vrot.slane %v4148_v10, %v453_v26  ;;  %v3396_v26 = vmul.f32 -1.442695, %v5083_v53 }
0x238d   :  { %4089 = vpow2.f32 %v3395_v1 }
0x238e   :  { %4091 = vpow2.f32 %v3397_v3  ;;  %v928_v4 = vadd.f32 %v4612_v8, %v454_v0  ;;  %v932_v20 = vadd.f32 %v4616_v29, %v454_v0 }
0x2390   :  { %v3400_v15 = vmul.f32 -1.442695, %v928_v4  ;;  %v3402_v36 = vmul.f32 -1.442695, %v932_v20 }
0x2394   :  { %v4086_v61 = vpop.eup %4085 }
0x2395   :  { %2903 = vrot.lane.b32.xlu0 %v4086_v61, %s4150_s15 }
0x2396   :  { %v4088_v62 = vpop.eup %4087 }
0x2397   :  { %2905 = vrot.lane.b32.xlu1 %v4088_v62, %s4150_s15  ;;  %v4090_v23 = vpop.eup %4089 }
0x2398   :  { %v2885_v2 = vadd.f32 1.0, %v4090_v23  ;;  %v4092_v54 = vpop.eup %4091 }
0x2399   :  { %v2887_v11 = vadd.f32 1.0, %v4092_v54 }
0x239a   :  { %4093 = vrcp.f32 %v2885_v2  ;;  %v3398_v2 = vmul.f32 -1.442695, %v5087_v33 }
0x239b   :  { %4095 = vrcp.f32 %v2887_v11 }
0x239c   :  { %4097 = vtanh.f32 %v928_v4 }
0x239d   :  { %4099 = vtanh.f32 %v932_v20 }
0x239e   :  { %4101 = vpow2.f32 %v3399_v47 }
0x239f   :  { %4103 = vpow2.f32 %v3401_v16 }
0x23a0   :  { %4105 = vpow2.f32 %v3400_v15 }
0x23a1   :  { %4107 = vpow2.f32 %v3402_v36 }
0x23a4   :  { %v4094_v43 = vpop.eup %4093 }
0x23a5   :  { %v4096_v27 = vpop.eup %4095  ;;  %v2899_v19 = vmul.f32 %v4094_v43, %v5072_v50 }
0x23a6   :  { %v4098_v8 = vpop.eup %4097  ;;  %v2900_v45 = vmul.f32 %v4096_v27, %v5076_v24 }
0x23a7   :  { %v4100_v29 = vpop.eup %4099 }
0x23a8   :  { %v4102_v34 = vpop.eup %4101 }
0x23a9   :  { %v2949_v39 = vadd.f32 1.0, %v4102_v34  ;;  %v4104_v41 = vpop.eup %4103 }
0x23aa   :  { %v2951_v17 = vadd.f32 1.0, %v4104_v41  ;;  %v4106_v18 = vpop.eup %4105 }
0x23ab   :  { %4109 = vrcp.f32 %v2949_v39  ;;  %v2950_v49 = vadd.f32 1.0, %v4106_v18  ;;  %v4108_v9 = vpop.eup %4107 }
0x23ac   :  { %4111 = vrcp.f32 %v2951_v17  ;;  %v2952_v57 = vadd.f32 1.0, %v4108_v9 }
0x23b5   :  { %v4110_v28 = vpop.eup %4109 }
0x23b6   :  { %v4112_v58 = vpop.eup %4111 }
0x2407   :  { %v2904_v12 = vpop.permute.xlu0 %2903 }
0x2408   :  { %v2909_v21 = vmul.f32 %v4094_v43, %v2904_v12 }
0x2409   :  { %v2906_v13 = vpop.permute.xlu1 %2905 }
0x240a   :  { %2913 = vrot.lane.b32.xlu0 %v2909_v21, %s4150_s15  ;;  %v2910_v6 = vmul.f32 %v4096_v27, %v2906_v13 }
0x240c   :  { %2915 = vrot.lane.b32.xlu1 %v2910_v6, %s4150_s15  ;;  %v3717_v6 = vld [vmem:[%s5203_s8] sm:$0xff]  }
0x240e   :  { %2965 = vrot.lane.b32.xlu0 %v4098_v8, %s4150_s15 }
0x2410   :  { %2967 = vrot.lane.b32.xlu1 %v4100_v29, %s4150_s15 }
0x247c   :  { %v2914_v7 = vpop.permute.xlu0 %2913 }
0x247d   :  { %v2919_v42 = vadd.f32 %v2914_v7, %v2899_v19 }
0x247e   :  { %v2916_v46 = vpop.permute.xlu1 %2915 }
0x247f   :  { %4113 = vtanh.f32 %v2919_v42  ;;  %v2920_v25 = vadd.f32 %v2916_v46, %v2900_v45 }
0x2480   :  { %v2966_v52 = vpop.permute.xlu0 %2965  ;;  %4115 = vrcp.f32 %v2950_v49 }
0x2481   :  { %v2971_v44 = vmul.f32 %v4110_v28, %v2966_v52 }
0x2482   :  { %v2968_v59 = vpop.permute.xlu1 %2967 }
0x2483   :  { %4117 = vtanh.f32 %v2971_v44  ;;  %v2972_v37 = vmul.f32 %v4112_v58, %v2968_v59 }
0x2484   :  { %4119 = vtanh.f32 %v2920_v25 }
0x2485   :  { %4121 = vrcp.f32 %v2952_v57 }
0x2486   :  { %4123 = vtanh.f32 %v2972_v37 }
0x2487   :  { %4125 = vpow2.f32 %v3396_v26 }
0x2488   :  { %4127 = vpow2.f32 %v3398_v2 }
0x2489   :  { %v4114_v50 = vpop.eup %4113 }
0x248a   :  { %2925 = vrot.lane.b32.xlu0 %v4114_v50, %s4150_s15  ;;  %v4116_v61 = vpop.eup %4115 }
0x248d   :  { %v4118_v62 = vpop.eup %4117 }
0x248e   :  { %v4120_v60 = vpop.eup %4119  ;;  %v2975_v24 = vmul.f32 %v4118_v62, %v4116_v61 }
0x248f   :  { %2927 = vrot.lane.b32.xlu1 %v4120_v60, %s4150_s15  ;;  %v4122_v1 = vpop.eup %4121 }
0x2490   :  { %v4124_v63 = vpop.eup %4123 }
0x2491   :  { %v2976_v3 = vmul.f32 %v4124_v63, %v4122_v1  ;;  %v4126_v54 = vpop.eup %4125 }
0x2492   :  { %v4128_v10 = vpop.eup %4127  ;;  %v2886_v0 = vadd.f32 1.0, %v4126_v54 }
0x2493   :  { %v3662_v23 = vpack.i.bf16 %v2976_v3, %v2975_v24  ;;  %v2888_v11 = vadd.f32 1.0, %v4128_v10 }
0x2494   :  { %4129 = vrcp.f32 %v2886_v0 }
0x2495   :  { %3663 = vrot.lane.b32.xlu0 %v3662_v23, %s4150_s15  ;;  %4131 = vrcp.f32 %v2888_v11 }
0x249e   :  { %v4130_v43 = vpop.eup %4129 }
0x249f   :  { %v4132_v12 = vpop.eup %4131 }
0x24fc   :  { %v2926_v4 = vpop.permute.xlu0 %2925 }
0x24fd   :  { %v2931_v51 = vmul.f32 %v4130_v43, %v2926_v4 }
0x2501   :  { %v2928_v20 = vpop.permute.xlu1 %2927 }
0x2502   :  { %v2932_v27 = vmul.f32 %v4132_v12, %v2928_v20 }
0x2507   :  { %v3664_v21 = vpop.permute.xlu0 %3663 }
0x2508   :  { %v3666_v13 = vunpack.i.h.bf16 %v3664_v21  ;;  %v3665_v8 = vunpack.i.l.bf16 %v3664_v21 }
0x250a   :  { %v2985_v53 = vsel %vm1162_vm3, %v2931_v51, %v3665_v8  ;;  %v2986_v33 = vsel %vm1162_vm3, %v2932_v27, %v3666_v13 }
0x250b   :  { %v2987_v29 = vpack.c.bf16 %v2986_v33, %v2985_v53 }
0x250d   :  { %3510 = vmatmul.mubr.bf16.vlgmr.msra.gmra.mrb[128].mxu0 %v2987_v29 }
0x250e   :  { %3514 = vmatpush3.bf16.msra.mxu0 %v3717_v6  ;;  %3529 = vmatprep.mubr.msk.bf16.mxu0 %vm4152_vm4, %v4151_v14 }
0x250f   :  { %3515 = vmatprep.subr.bf16.mxu0 %v4151_v14 }
0x2512   :  { %3516 = vmatpush3.bf16.msra.mxu0 %v3718_v38 }
0x2513   :  { %3517 = vmatprep.subr.bf16.mxu0 %v4151_v14 }
0x2516   :  { %3518 = vmatpush3.bf16.msra.mxu0 %v3719_v30 }
0x2517   :  { %3519 = vmatprep.subr.bf16.mxu0 %v4151_v14 }
0x251a   :  { %3520 = vmatpush3.bf16.msra.mxu0 %v3720_v40 }
0x251b   :  { %3521 = vmatprep.subr.bf16.mxu0 %v4151_v14 }
0x251e   :  { %3522 = vmatpush3.bf16.msra.mxu0 %v3721_v55 }
0x251f   :  { %3523 = vmatprep.subr.bf16.mxu0 %v4151_v14 }
0x2522   :  { %3524 = vmatpush3.bf16.msra.mxu0 %v3722_v56 }
0x2523   :  { %3525 = vmatprep.subr.bf16.mxu0 %v4151_v14 }
0x2526   :  { %3526 = vmatpush3.bf16.msra.mxu0 %v3723_v5 }
0x2527   :  { %3527 = vmatprep.subr.bf16.mxu0 %v4151_v14  ;;  %v3412_v14 = vld [vmem:[%s5205_s9] ss:$0 sm:$0xff] }
0x252a   :  { %3528 = vmatpush3.bf16.msra.mxu0 %v3724_v48 }
0x25e0   :  { %v3093_v32 = vpop.f32.mrb[128].mxu0 }
0x25e1   :  { %v3094_v35 = vadd.f32 %v3403_v31, %v3093_v32  ;;  %v3511_v47 = vpop.f32.mrb[129].mxu0 }
0x25e2   :  { %v3096_v22 = vpop.f32.mrb[130].mxu0 }
0x25e3   :  { %v3097_v16 = vadd.f32 %v3403_v31, %v3096_v22  ;;  %v3512_v15 = vpop.f32.mrb[131].mxu0  ;;  %v3100_v34 = vmax.f32 %v3094_v35, 0.0 }
0x25e5   :  { %v3101_v36 = vmax.f32 %v3097_v16, 0.0 }
0x25e7   :  { %v3102_v39 = vpack.c.bf16 %v3101_v36, %v3100_v34 }
0x25e9   :  { %3530 = vmatmul.mubr.bf16.vlgmr.msra.gmra.mrb[132].mxu0 %v3102_v39 }
0x26bc   :  { %v3208_v41 = vpop.f32.mrb[132].mxu0 }
0x26bd   :  { %v3209_v17 = vadd.f32 %v3412_v14, %v3208_v41  ;;  %v3531_v18 = vpop.f32.mrb[133].mxu0 }
0x26be   :  { %v3211_v19 = vpop.f32.mrb[134].mxu0 }
0x26bf   :  { %3216 = vst.msk [vmem:[%s5206_s10] sm:$0xff] %vm3215_vm5, %v3209_v17  ;;  %v3212_v7 = vadd.f32 %v3412_v14, %v3211_v19  ;;  %v3532_v42 = vpop.f32.mrb[135].mxu0 }
0x26c1   :  { %3217 = vst.msk [vmem:[%s5206_s10 + $0x8] sm:$0xff] %vm3215_vm5, %v3212_v7 }

</bundles_post_ra>
